<compile_context>
chip_gen: v7x
topology: tpu7x:2x2x1
jax: 0.10.0
libtpu: 0.0.40
codegen_flags: <defaults>
</compile_context>

<pallas_src>
import jax
import jax.numpy as jnp
from jax import lax
from jax.experimental import pallas as pl
from jax.experimental.pallas import tpu as pltpu


# ----------------------------- Pallas kernels -------------------------------

def posenc_proj_kernel(ctx_ref, table_ref, l_ref, wih_ref, bpre_ref, gx_ref):
    """One sentence block: embedding lookup + position encoding + GRU input projection.

    ctx_ref:   (1, B, T) int32 token ids of sentence s (time-major contexts)
    table_ref: (Vp, H)  f32 embedding table (vocab padded to a multiple of 128)
    l_ref:     (T, H)   f32 position-encoding weights
    wih_ref:   (H, 6H)  f32 [Wih_fwd^T | Wih_bwd^T]
    bpre_ref:  (1, 6H)  f32 folded biases (bih + bhh for the r,z gates, both dirs)
    gx_ref:    (1, B, 6H) f32 output: precomputed input-side gate pre-activations
    """
    B = ctx_ref.shape[1]
    T = ctx_ref.shape[2]
    Vp = table_ref.shape[0]
    H = table_ref.shape[1]

    ctx = ctx_ref[0]           # (B, T) int32
    table = table_ref[...]     # (Vp, H)
    l = l_ref[...]             # (T, H)

    # Position encoding: pe[b, :] = sum_t emb(ctx[b, t]) * l[t, :].
    # The gather runs as one-hot @ table on the MXU (no HBM intermediate);
    # T is small so the loop is statically unrolled.
    pe = jnp.zeros((B, H), jnp.float32)
    for t in range(T):
        ids_t = ctx[:, t:t + 1]                                      # (B, 1)
        onehot = (ids_t == lax.broadcasted_iota(jnp.int32, (B, Vp), 1)
                  ).astype(jnp.float32)                              # (B, Vp)
        emb_t = jnp.dot(onehot, table, preferred_element_type=jnp.float32)
        pe = pe + emb_t * l[t:t + 1, :]

    # Hoisted GRU input projection for both directions in one matmul, with the
    # input biases (and the r/z hidden biases) folded in once.
    gx = jnp.dot(pe, wih_ref[...], preferred_element_type=jnp.float32) + bpre_ref[...]
    gx_ref[0] = gx


def bigru_sum_kernel(gx_ref, whh_f_ref, whh_b_ref, bhhn_f_ref, bhhn_b_ref, out_ref):
    """Bidirectional GRU recurrence (PyTorch gate order r,z,n; h0 = 0), forward
    and backward directions interleaved in a single time loop; the two
    directional outputs are summed directly into out_ref.

    gx_ref : (S, B, 6H) precomputed input-side gates [fwd r,z,n | bwd r,z,n]
    whh_*  : (H, 3H) recurrent weights (transposed)
    bhhn_* : (1, H) hidden bias of the n gate (the only hidden bias that cannot
             be folded into gx because it is multiplied by r)
    out_ref: (S, B, H) time-major fwd + bwd hidden-state sum
    """
    S, B, _ = gx_ref.shape
    H = whh_f_ref.shape[0]

    whh_f = whh_f_ref[...]
    whh_b = whh_b_ref[...]
    # Hoist the (1,H)->(B,H) bias broadcasts out of the recurrence.
    bhhn_f = jnp.broadcast_to(bhhn_f_ref[...], (B, H))
    bhhn_b = jnp.broadcast_to(bhhn_b_ref[...], (B, H))

    out_ref[...] = jnp.zeros_like(out_ref)

    def gates(gx, gh, bhh_n, h):
        r = jax.nn.sigmoid(gx[:, 0 * H:1 * H] + gh[:, 0 * H:1 * H])
        z = jax.nn.sigmoid(gx[:, 1 * H:2 * H] + gh[:, 1 * H:2 * H])
        n = jnp.tanh(gx[:, 2 * H:3 * H] + r * (gh[:, 2 * H:3 * H] + bhh_n))
        return (1.0 - z) * n + z * h

    def step(i, carry):
        h_f, h_b = carry
        j = S - 1 - i
        gx_f = gx_ref[i]                       # (B, 6H)
        gx_b = gx_ref[j]                       # (B, 6H)
        # Only the h-dependent matmuls remain on the serial critical path; the
        # two directions are independent chains the scheduler can overlap.
        gh_f = jnp.dot(h_f, whh_f, preferred_element_type=jnp.float32)
        gh_b = jnp.dot(h_b, whh_b, preferred_element_type=jnp.float32)
        h_f_new = gates(gx_f[:, :3 * H], gh_f, bhhn_f, h_f)
        h_b_new = gates(gx_b[:, 3 * H:], gh_b, bhhn_b, h_b)
        out_ref[i] = out_ref[i] + h_f_new      # forward output at time i
        out_ref[j] = out_ref[j] + h_b_new      # backward output at time j
        return (h_f_new, h_b_new)

    h0 = jnp.zeros((B, H), jnp.float32)
    lax.fori_loop(0, S, step, (h0, h0), unroll=True)


# ------------------------------- wrappers ------------------------------------

def position_weights(token_num, hidden):
    """l[t, e] = 1 - t/(T-1) - e/(H-1) * (1 - 2 t/(T-1))  (same as the PyTorch list comp)."""
    s = jnp.arange(token_num, dtype=jnp.float32)[:, None]
    e = jnp.arange(hidden, dtype=jnp.float32)[None, :]
    return 1.0 - s / (token_num - 1) - (e / (hidden - 1)) * (1.0 - 2.0 * s / (token_num - 1))


def _round_up(x, m):
    return ((x + m - 1) // m) * m


def _batch_block(batch):
    # Whole batch if it can't be tiled on 8-sublane boundaries, else blocks of 8
    # (>=2 blocks lets the "parallel" grid axis use both TensorCores on v7x).
    return min(batch, 8) if batch % 8 == 0 else batch


def posenc_input_proj_pallas(ctx_sm, table, l, wih_cat, b_pre):
    """ctx_sm: (S, B, T) int32 -> gx: (S, B, 6H) f32."""
    S, B, T = ctx_sm.shape
    Vp, H = table.shape
    return pl.pallas_call(
        posenc_proj_kernel,
        out_shape=jax.ShapeDtypeStruct((S, B, 6 * H), jnp.float32),
        grid=(S,),
        in_specs=[
            pl.BlockSpec((1, B, T), lambda s: (s, 0, 0)),
            pl.BlockSpec((Vp, H), lambda s: (0, 0)),
            pl.BlockSpec((T, H), lambda s: (0, 0)),
            pl.BlockSpec((H, 6 * H), lambda s: (0, 0)),
            pl.BlockSpec((1, 6 * H), lambda s: (0, 0)),
        ],
        out_specs=pl.BlockSpec((1, B, 6 * H), lambda s: (s, 0, 0)),
        compiler_params=pltpu.CompilerParams(
            dimension_semantics=("parallel",),
            vmem_limit_bytes=32 * 1024 * 1024),
    )(ctx_sm, table, l, wih_cat, b_pre)


def bigru_sum_pallas(gx, params):
    """gx: (S, B, 6H) f32 -> facts time-major (S, B, H) f32."""
    S, B, G = gx.shape
    H = G // 6
    bb = _batch_block(B)
    return pl.pallas_call(
        bigru_sum_kernel,
        out_shape=jax.ShapeDtypeStruct((S, B, H), jnp.float32),
        grid=(B // bb,),
        in_specs=[
            pl.BlockSpec((S, bb, 6 * H), lambda b: (0, b, 0)),
            pl.BlockSpec((H, 3 * H), lambda b: (0, 0)),
            pl.BlockSpec((H, 3 * H), lambda b: (0, 0)),
            pl.BlockSpec((1, H), lambda b: (0, 0)),
            pl.BlockSpec((1, H), lambda b: (0, 0)),
        ],
        out_specs=pl.BlockSpec((S, bb, H), lambda b: (0, b, 0)),
        compiler_params=pltpu.CompilerParams(
            dimension_semantics=("parallel",),
            vmem_limit_bytes=32 * 1024 * 1024),
    )(gx, params["whh_f_T"], params["whh_b_T"], params["bhhn_f"], params["bhhn_b"])


def input_module_forward(contexts, embedding_table, params):
    """Mirrors InputModule.forward.

    contexts: (B, S, T) int32 token ids
    embedding_table: (V, H) f32 (plays the role of `word_embedding`)
    returns facts: (B, S, H) f32
    """
    B, S, T = contexts.shape
    V, H = embedding_table.shape

    # TODO(synk): nn.Dropout(0.1) treated as identity (inference mode); stochastic dropout not modeled.

    # Time-major token ids (tiny int32 transpose; the float activations between
    # the two kernels are produced/consumed time-major, no wrapper transposes).
    ctx_sm = jnp.transpose(contexts, (1, 0, 2)).astype(jnp.int32)

    # Pad the vocab so the in-kernel one-hot matmul contraction is lane-aligned.
    Vp = _round_up(V, 128)
    table = jnp.pad(embedding_table.astype(jnp.float32), ((0, Vp - V), (0, 0)))

    l = position_weights(T, H)

    gx = posenc_input_proj_pallas(ctx_sm, table, l, params["wih_cat"], params["b_pre"])
    facts_tm = bigru_sum_pallas(gx, params)
    return jnp.transpose(facts_tm, (1, 0, 2))   # back to (B, S, H)


# ------------------------------ parameter init -------------------------------

def init_gru_params(key, hidden):
    """nn.GRU(hidden, hidden, bidirectional=True) shapes: xavier-normal weights
    (PyTorch (3H, H) layout), uniform(-1/sqrt(H), 1/sqrt(H)) biases."""
    ks = jax.random.split(key, 8)

    def xavier(k, out_dim, in_dim):
        std = (2.0 / (in_dim + out_dim)) ** 0.5
        return std * jax.random.normal(k, (out_dim, in_dim), jnp.float32)

    def bias(k):
        b = 1.0 / (hidden ** 0.5)
        return jax.random.uniform(k, (1, 3 * hidden), jnp.float32, minval=-b, maxval=b)

    return {
        "wih_f": xavier(ks[0], 3 * hidden, hidden), "whh_f": xavier(ks[1], 3 * hidden, hidden),
        "wih_b": xavier(ks[2], 3 * hidden, hidden), "whh_b": xavier(ks[3], 3 * hidden, hidden),
        "bih_f": bias(ks[4]), "bhh_f": bias(ks[5]),
        "bih_b": bias(ks[6]), "bhh_b": bias(ks[7]),
    }


def prepare_gru_params(raw, hidden):
    """Kernel layout: both directions' Wih concatenated to (H, 6H) with bih and
    the r/z hidden biases folded into one (1, 6H) pre-bias; Whh transposed to
    (H, 3H); the n-gate hidden bias kept separate (it is gated by r)."""
    H = hidden

    def pre_bias(bih, bhh):
        return bih + jnp.concatenate([bhh[:, :2 * H], jnp.zeros((1, H), jnp.float32)], axis=1)

    return {
        "wih_cat": jnp.concatenate([raw["wih_f"].T, raw["wih_b"].T], axis=1),   # (H, 6H)
        "b_pre": jnp.concatenate([pre_bias(raw["bih_f"], raw["bhh_f"]),
                                  pre_bias(raw["bih_b"], raw["bhh_b"])], axis=1),  # (1, 6H)
        "whh_f_T": raw["whh_f"].T, "whh_b_T": raw["whh_b"].T,                  # (H, 3H)
        "bhhn_f": raw["bhh_f"][:, 2 * H:], "bhhn_b": raw["bhh_b"][:, 2 * H:],  # (1, H)
    }


# ---------------------------------- main --------------------------------------

if __name__ == "__main__":
    key = jax.random.PRNGKey(0)
    k_tok, k_emb, k_gru = jax.random.split(key, 3)

    B, S, T, H, V = 2, 8, 8, 32, 50   # batch, sentences, tokens, hidden(=embedding), vocab

    contexts = jax.random.randint(k_tok, (B, S, T), 0, V, dtype=jnp.int32)
    embedding_table = 0.1 * jax.random.normal(k_emb, (V, H), jnp.float32)
    gru_params = prepare_gru_params(init_gru_params(k_gru, H), H)

    forward = jax.jit(input_module_forward)
    facts = jax.block_until_ready(forward(contexts, embedding_table, gru_params))

    assert facts.shape == (B, S, H), facts.shape
    assert facts.dtype == jnp.float32
    assert bool(jnp.all(jnp.isfinite(facts)))
    print("KERNEL_OK")
</pallas_src>

<mosaic_0001>
module attributes {stable_mosaic.version = 11 : i64} {
  func.func @posenc_proj_kernel(%arg0: i32, %arg1: memref<1x2x8xi32, #tpu.memory_space<vmem>>, %arg2: memref<128x32xf32, #tpu.memory_space<vmem>>, %arg3: memref<8x32xf32, #tpu.memory_space<vmem>>, %arg4: memref<32x192xf32, #tpu.memory_space<vmem>>, %arg5: memref<1x192xf32, #tpu.memory_space<vmem>>, %arg6: memref<1x2x192xf32, #tpu.memory_space<vmem>>) attributes {dimension_semantics = [#tpu.dimension_semantics<parallel>], iteration_bounds = array<i64: 8>, scalar_prefetch = 0 : i64, scratch_operands = 0 : i64, tpu.core_type = #tpu.core_type<tc>, window_params = [{transform_indices = @transform_0, window_bounds = array<i64: 1, 2, 8>}, {pipeline_mode = #tpu.pipeline_mode<synchronous>, transform_indices = @transform_1, window_bounds = array<i64: 128, 32>}, {pipeline_mode = #tpu.pipeline_mode<synchronous>, transform_indices = @transform_2, window_bounds = array<i64: 8, 32>}, {pipeline_mode = #tpu.pipeline_mode<synchronous>, transform_indices = @transform_3, window_bounds = array<i64: 32, 192>}, {pipeline_mode = #tpu.pipeline_mode<synchronous>, transform_indices = @transform_4, window_bounds = array<i64: 1, 192>}, {transform_indices = @transform_5, window_bounds = array<i64: 1, 2, 192>}]} {
    %c0 = arith.constant 0 : index
    %c0_0 = arith.constant 0 : index
    %c0_1 = arith.constant 0 : index
    %0 = vector.load %arg1[%c0, %c0_0, %c0_1] : memref<1x2x8xi32, #tpu.memory_space<vmem>>, vector<1x2x8xi32>
    %1 = vector.shape_cast %0 : vector<1x2x8xi32> to vector<2x8xi32>
    %c0_2 = arith.constant 0 : index
    %c0_3 = arith.constant 0 : index
    %2 = vector.load %arg2[%c0_2, %c0_3] : memref<128x32xf32, #tpu.memory_space<vmem>>, vector<128x32xf32>
    %c0_4 = arith.constant 0 : index
    %c0_5 = arith.constant 0 : index
    %3 = vector.load %arg3[%c0_4, %c0_5] : memref<8x32xf32, #tpu.memory_space<vmem>>, vector<8x32xf32>
    %cst = arith.constant 0.000000e+00 : f32
    %4 = vector.broadcast %cst : f32 to vector<2x32xf32>
    %5 = vector.extract_strided_slice %1 {offsets = [0, 0], sizes = [2, 1], strides = [1, 1]} : vector<2x8xi32> to vector<2x1xi32>
    %6 = tpu.iota {dimensions = array<i32: 1>} : vector<2x128xi32>
    %7 = vector.broadcast %5 : vector<2x1xi32> to vector<2x128xi32>
    %8 = arith.cmpi eq, %7, %6 : vector<2x128xi32>
    %9 = arith.extui %8 : vector<2x128xi1> to vector<2x128xi32>
    %10 = arith.sitofp %9 : vector<2x128xi32> to vector<2x128xf32>
    %cst_6 = arith.constant dense<0.000000e+00> : vector<2x32xf32>
    %11 = tpu.matmul %10, %2, %cst_6 {dimension_numbers = #tpu.dot_dimension_numbers<[1], [0], [0], [1], [0, 0, 1, 1], [], []>} : vector<2x128xf32>, vector<128x32xf32>, vector<2x32xf32> -> vector<2x32xf32>
    %12 = vector.extract_strided_slice %3 {offsets = [0, 0], sizes = [1, 32], strides = [1, 1]} : vector<8x32xf32> to vector<1x32xf32>
    %13 = vector.broadcast %12 : vector<1x32xf32> to vector<2x32xf32>
    %14 = arith.mulf %11, %13 : vector<2x32xf32>
    %15 = arith.addf %4, %14 : vector<2x32xf32>
    %16 = vector.extract_strided_slice %1 {offsets = [0, 1], sizes = [2, 1], strides = [1, 1]} : vector<2x8xi32> to vector<2x1xi32>
    %17 = tpu.iota {dimensions = array<i32: 1>} : vector<2x128xi32>
    %18 = vector.broadcast %16 : vector<2x1xi32> to vector<2x128xi32>
    %19 = arith.cmpi eq, %18, %17 : vector<2x128xi32>
    %20 = arith.extui %19 : vector<2x128xi1> to vector<2x128xi32>
    %21 = arith.sitofp %20 : vector<2x128xi32> to vector<2x128xf32>
    %cst_7 = arith.constant dense<0.000000e+00> : vector<2x32xf32>
    %22 = tpu.matmul %21, %2, %cst_7 {dimension_numbers = #tpu.dot_dimension_numbers<[1], [0], [0], [1], [0, 0, 1, 1], [], []>} : vector<2x128xf32>, vector<128x32xf32>, vector<2x32xf32> -> vector<2x32xf32>
    %23 = vector.extract_strided_slice %3 {offsets = [1, 0], sizes = [1, 32], strides = [1, 1]} : vector<8x32xf32> to vector<1x32xf32>
    %24 = vector.broadcast %23 : vector<1x32xf32> to vector<2x32xf32>
    %25 = arith.mulf %22, %24 : vector<2x32xf32>
    %26 = arith.addf %15, %25 : vector<2x32xf32>
    %27 = vector.extract_strided_slice %1 {offsets = [0, 2], sizes = [2, 1], strides = [1, 1]} : vector<2x8xi32> to vector<2x1xi32>
    %28 = tpu.iota {dimensions = array<i32: 1>} : vector<2x128xi32>
    %29 = vector.broadcast %27 : vector<2x1xi32> to vector<2x128xi32>
    %30 = arith.cmpi eq, %29, %28 : vector<2x128xi32>
    %31 = arith.extui %30 : vector<2x128xi1> to vector<2x128xi32>
    %32 = arith.sitofp %31 : vector<2x128xi32> to vector<2x128xf32>
    %cst_8 = arith.constant dense<0.000000e+00> : vector<2x32xf32>
    %33 = tpu.matmul %32, %2, %cst_8 {dimension_numbers = #tpu.dot_dimension_numbers<[1], [0], [0], [1], [0, 0, 1, 1], [], []>} : vector<2x128xf32>, vector<128x32xf32>, vector<2x32xf32> -> vector<2x32xf32>
    %34 = vector.extract_strided_slice %3 {offsets = [2, 0], sizes = [1, 32], strides = [1, 1]} : vector<8x32xf32> to vector<1x32xf32>
    %35 = vector.broadcast %34 : vector<1x32xf32> to vector<2x32xf32>
    %36 = arith.mulf %33, %35 : vector<2x32xf32>
    %37 = arith.addf %26, %36 : vector<2x32xf32>
    %38 = vector.extract_strided_slice %1 {offsets = [0, 3], sizes = [2, 1], strides = [1, 1]} : vector<2x8xi32> to vector<2x1xi32>
    %39 = tpu.iota {dimensions = array<i32: 1>} : vector<2x128xi32>
    %40 = vector.broadcast %38 : vector<2x1xi32> to vector<2x128xi32>
    %41 = arith.cmpi eq, %40, %39 : vector<2x128xi32>
    %42 = arith.extui %41 : vector<2x128xi1> to vector<2x128xi32>
    %43 = arith.sitofp %42 : vector<2x128xi32> to vector<2x128xf32>
    %cst_9 = arith.constant dense<0.000000e+00> : vector<2x32xf32>
    %44 = tpu.matmul %43, %2, %cst_9 {dimension_numbers = #tpu.dot_dimension_numbers<[1], [0], [0], [1], [0, 0, 1, 1], [], []>} : vector<2x128xf32>, vector<128x32xf32>, vector<2x32xf32> -> vector<2x32xf32>
    %45 = vector.extract_strided_slice %3 {offsets = [3, 0], sizes = [1, 32], strides = [1, 1]} : vector<8x32xf32> to vector<1x32xf32>
    %46 = vector.broadcast %45 : vector<1x32xf32> to vector<2x32xf32>
    %47 = arith.mulf %44, %46 : vector<2x32xf32>
    %48 = arith.addf %37, %47 : vector<2x32xf32>
    %49 = vector.extract_strided_slice %1 {offsets = [0, 4], sizes = [2, 1], strides = [1, 1]} : vector<2x8xi32> to vector<2x1xi32>
    %50 = tpu.iota {dimensions = array<i32: 1>} : vector<2x128xi32>
    %51 = vector.broadcast %49 : vector<2x1xi32> to vector<2x128xi32>
    %52 = arith.cmpi eq, %51, %50 : vector<2x128xi32>
    %53 = arith.extui %52 : vector<2x128xi1> to vector<2x128xi32>
    %54 = arith.sitofp %53 : vector<2x128xi32> to vector<2x128xf32>
    %cst_10 = arith.constant dense<0.000000e+00> : vector<2x32xf32>
    %55 = tpu.matmul %54, %2, %cst_10 {dimension_numbers = #tpu.dot_dimension_numbers<[1], [0], [0], [1], [0, 0, 1, 1], [], []>} : vector<2x128xf32>, vector<128x32xf32>, vector<2x32xf32> -> vector<2x32xf32>
    %56 = vector.extract_strided_slice %3 {offsets = [4, 0], sizes = [1, 32], strides = [1, 1]} : vector<8x32xf32> to vector<1x32xf32>
    %57 = vector.broadcast %56 : vector<1x32xf32> to vector<2x32xf32>
    %58 = arith.mulf %55, %57 : vector<2x32xf32>
    %59 = arith.addf %48, %58 : vector<2x32xf32>
    %60 = vector.extract_strided_slice %1 {offsets = [0, 5], sizes = [2, 1], strides = [1, 1]} : vector<2x8xi32> to vector<2x1xi32>
    %61 = tpu.iota {dimensions = array<i32: 1>} : vector<2x128xi32>
    %62 = vector.broadcast %60 : vector<2x1xi32> to vector<2x128xi32>
    %63 = arith.cmpi eq, %62, %61 : vector<2x128xi32>
    %64 = arith.extui %63 : vector<2x128xi1> to vector<2x128xi32>
    %65 = arith.sitofp %64 : vector<2x128xi32> to vector<2x128xf32>
    %cst_11 = arith.constant dense<0.000000e+00> : vector<2x32xf32>
    %66 = tpu.matmul %65, %2, %cst_11 {dimension_numbers = #tpu.dot_dimension_numbers<[1], [0], [0], [1], [0, 0, 1, 1], [], []>} : vector<2x128xf32>, vector<128x32xf32>, vector<2x32xf32> -> vector<2x32xf32>
    %67 = vector.extract_strided_slice %3 {offsets = [5, 0], sizes = [1, 32], strides = [1, 1]} : vector<8x32xf32> to vector<1x32xf32>
    %68 = vector.broadcast %67 : vector<1x32xf32> to vector<2x32xf32>
    %69 = arith.mulf %66, %68 : vector<2x32xf32>
    %70 = arith.addf %59, %69 : vector<2x32xf32>
    %71 = vector.extract_strided_slice %1 {offsets = [0, 6], sizes = [2, 1], strides = [1, 1]} : vector<2x8xi32> to vector<2x1xi32>
    %72 = tpu.iota {dimensions = array<i32: 1>} : vector<2x128xi32>
    %73 = vector.broadcast %71 : vector<2x1xi32> to vector<2x128xi32>
    %74 = arith.cmpi eq, %73, %72 : vector<2x128xi32>
    %75 = arith.extui %74 : vector<2x128xi1> to vector<2x128xi32>
    %76 = arith.sitofp %75 : vector<2x128xi32> to vector<2x128xf32>
    %cst_12 = arith.constant dense<0.000000e+00> : vector<2x32xf32>
    %77 = tpu.matmul %76, %2, %cst_12 {dimension_numbers = #tpu.dot_dimension_numbers<[1], [0], [0], [1], [0, 0, 1, 1], [], []>} : vector<2x128xf32>, vector<128x32xf32>, vector<2x32xf32> -> vector<2x32xf32>
    %78 = vector.extract_strided_slice %3 {offsets = [6, 0], sizes = [1, 32], strides = [1, 1]} : vector<8x32xf32> to vector<1x32xf32>
    %79 = vector.broadcast %78 : vector<1x32xf32> to vector<2x32xf32>
    %80 = arith.mulf %77, %79 : vector<2x32xf32>
    %81 = arith.addf %70, %80 : vector<2x32xf32>
    %82 = vector.extract_strided_slice %1 {offsets = [0, 7], sizes = [2, 1], strides = [1, 1]} : vector<2x8xi32> to vector<2x1xi32>
    %83 = tpu.iota {dimensions = array<i32: 1>} : vector<2x128xi32>
    %84 = vector.broadcast %82 : vector<2x1xi32> to vector<2x128xi32>
    %85 = arith.cmpi eq, %84, %83 : vector<2x128xi32>
    %86 = arith.extui %85 : vector<2x128xi1> to vector<2x128xi32>
    %87 = arith.sitofp %86 : vector<2x128xi32> to vector<2x128xf32>
    %cst_13 = arith.constant dense<0.000000e+00> : vector<2x32xf32>
    %88 = tpu.matmul %87, %2, %cst_13 {dimension_numbers = #tpu.dot_dimension_numbers<[1], [0], [0], [1], [0, 0, 1, 1], [], []>} : vector<2x128xf32>, vector<128x32xf32>, vector<2x32xf32> -> vector<2x32xf32>
    %89 = vector.extract_strided_slice %3 {offsets = [7, 0], sizes = [1, 32], strides = [1, 1]} : vector<8x32xf32> to vector<1x32xf32>
    %90 = vector.broadcast %89 : vector<1x32xf32> to vector<2x32xf32>
    %91 = arith.mulf %88, %90 : vector<2x32xf32>
    %92 = arith.addf %81, %91 : vector<2x32xf32>
    %c0_14 = arith.constant 0 : index
    %c0_15 = arith.constant 0 : index
    %93 = vector.load %arg4[%c0_14, %c0_15] : memref<32x192xf32, #tpu.memory_space<vmem>>, vector<32x192xf32>
    %cst_16 = arith.constant dense<0.000000e+00> : vector<2x192xf32>
    %94 = tpu.matmul %92, %93, %cst_16 {dimension_numbers = #tpu.dot_dimension_numbers<[1], [0], [0], [1], [0, 0, 1, 1], [], []>} : vector<2x32xf32>, vector<32x192xf32>, vector<2x192xf32> -> vector<2x192xf32>
    %c0_17 = arith.constant 0 : index
    %c0_18 = arith.constant 0 : index
    %95 = vector.load %arg5[%c0_17, %c0_18] : memref<1x192xf32, #tpu.memory_space<vmem>>, vector<1x192xf32>
    %96 = vector.broadcast %95 : vector<1x192xf32> to vector<2x192xf32>
    %97 = arith.addf %94, %96 : vector<2x192xf32>
    %c0_19 = arith.constant 0 : index
    %c0_20 = arith.constant 0 : index
    %c0_21 = arith.constant 0 : index
    %98 = vector.load %arg6[%c0_19, %c0_20, %c0_21] : memref<1x2x192xf32, #tpu.memory_space<vmem>>, vector<1x2x192xf32>
    %99 = vector.shape_cast %98 : vector<1x2x192xf32> to vector<2x192xf32>
    %100 = vector.shape_cast %97 : vector<2x192xf32> to vector<1x2x192xf32>
    tpu.vector_store %arg6[%c0_19, %c0_20, %c0_21], %100 {strides = array<i32>} : memref<1x2x192xf32, #tpu.memory_space<vmem>>, vector<1x2x192xf32>,
    return
  }
  func.func @transform_0(%arg0: i32) -> (i32, i32, i32) {
    %c0_i32 = arith.constant 0 : i32
    %c0_i32_0 = arith.constant 0 : i32
    %c0_i32_1 = arith.constant 0 : i32
    return %arg0, %c0_i32, %c0_i32_0 : i32, i32, i32
  }
  func.func @transform_1(%arg0: i32) -> (i32, i32) {
    %c0_i32 = arith.constant 0 : i32
    %c0_i32_0 = arith.constant 0 : i32
    %c0_i32_1 = arith.constant 0 : i32
    return %c0_i32, %c0_i32_0 : i32, i32
  }
  func.func @transform_2(%arg0: i32) -> (i32, i32) {
    %c0_i32 = arith.constant 0 : i32
    %c0_i32_0 = arith.constant 0 : i32
    %c0_i32_1 = arith.constant 0 : i32
    return %c0_i32, %c0_i32_0 : i32, i32
  }
  func.func @transform_3(%arg0: i32) -> (i32, i32) {
    %c0_i32 = arith.constant 0 : i32
    %c0_i32_0 = arith.constant 0 : i32
    %c0_i32_1 = arith.constant 0 : i32
    return %c0_i32, %c0_i32_0 : i32, i32
  }
  func.func @transform_4(%arg0: i32) -> (i32, i32) {
    %c0_i32 = arith.constant 0 : i32
    %c0_i32_0 = arith.constant 0 : i32
    %c0_i32_1 = arith.constant 0 : i32
    return %c0_i32, %c0_i32_0 : i32, i32
  }
  func.func @transform_5(%arg0: i32) -> (i32, i32, i32) {
    %c0_i32 = arith.constant 0 : i32
    %c0_i32_0 = arith.constant 0 : i32
    %c0_i32_1 = arith.constant 0 : i32
    return %arg0, %c0_i32, %c0_i32_0 : i32, i32, i32
  }
}

module attributes {stable_mosaic.version = 11 : i64} {
  func.func @bigru_sum_kernel(%arg0: i32, %arg1: memref<8x2x192xf32, #tpu.memory_space<vmem>>, %arg2: memref<32x96xf32, #tpu.memory_space<vmem>>, %arg3: memref<32x96xf32, #tpu.memory_space<vmem>>, %arg4: memref<1x32xf32, #tpu.memory_space<vmem>>, %arg5: memref<1x32xf32, #tpu.memory_space<vmem>>, %arg6: memref<8x2x32xf32, #tpu.memory_space<vmem>>) attributes {dimension_semantics = [#tpu.dimension_semantics<parallel>], iteration_bounds = array<i64: 1>, scalar_prefetch = 0 : i64, scratch_operands = 0 : i64, tpu.core_type = #tpu.core_type<tc>, window_params = [{transform_indices = @transform_0, window_bounds = array<i64: 8, 2, 192>}, {pipeline_mode = #tpu.pipeline_mode<synchronous>, transform_indices = @transform_1, window_bounds = array<i64: 32, 96>}, {pipeline_mode = #tpu.pipeline_mode<synchronous>, transform_indices = @transform_2, window_bounds = array<i64: 32, 96>}, {pipeline_mode = #tpu.pipeline_mode<synchronous>, transform_indices = @transform_3, window_bounds = array<i64: 1, 32>}, {pipeline_mode = #tpu.pipeline_mode<synchronous>, transform_indices = @transform_4, window_bounds = array<i64: 1, 32>}, {transform_indices = @transform_5, window_bounds = array<i64: 8, 2, 32>}]} {
    %c0 = arith.constant 0 : index
    %c0_0 = arith.constant 0 : index
    %0 = vector.load %arg2[%c0, %c0_0] : memref<32x96xf32, #tpu.memory_space<vmem>>, vector<32x96xf32>
    %c0_1 = arith.constant 0 : index
    %c0_2 = arith.constant 0 : index
    %1 = vector.load %arg3[%c0_1, %c0_2] : memref<32x96xf32, #tpu.memory_space<vmem>>, vector<32x96xf32>
    %c0_3 = arith.constant 0 : index
    %c0_4 = arith.constant 0 : index
    %2 = vector.load %arg4[%c0_3, %c0_4] : memref<1x32xf32, #tpu.memory_space<vmem>>, vector<1x32xf32>
    %3 = vector.shape_cast %2 : vector<1x32xf32> to vector<1x32xf32>
    %4 = vector.broadcast %3 : vector<1x32xf32> to vector<2x32xf32>
    %c0_5 = arith.constant 0 : index
    %c0_6 = arith.constant 0 : index
    %5 = vector.load %arg5[%c0_5, %c0_6] : memref<1x32xf32, #tpu.memory_space<vmem>>, vector<1x32xf32>
    %6 = vector.shape_cast %5 : vector<1x32xf32> to vector<1x32xf32>
    %7 = vector.broadcast %6 : vector<1x32xf32> to vector<2x32xf32>
    %cst = arith.constant 0.000000e+00 : f32
    %8 = vector.broadcast %cst : f32 to vector<8x2x32xf32>
    %c0_7 = arith.constant 0 : index
    %c0_8 = arith.constant 0 : index
    %c0_9 = arith.constant 0 : index
    %9 = vector.load %arg6[%c0_7, %c0_8, %c0_9] : memref<8x2x32xf32, #tpu.memory_space<vmem>>, vector<8x2x32xf32>
    tpu.vector_store %arg6[%c0_7, %c0_8, %c0_9], %8 {strides = array<i32>} : memref<8x2x32xf32, #tpu.memory_space<vmem>>, vector<8x2x32xf32>,
    %cst_10 = arith.constant 0.000000e+00 : f32
    %10 = vector.broadcast %cst_10 : f32 to vector<2x32xf32>
    %c0_i32 = arith.constant 0 : i32
    %c7_i32 = arith.constant 7 : i32
    %11 = arith.subi %c7_i32, %c0_i32 : i32
    %12 = arith.index_cast %c0_i32 : i32 to index
    %c0_11 = arith.constant 0 : index
    %c0_12 = arith.constant 0 : index
    %13 = vector.load %arg1[%12, %c0_11, %c0_12] : memref<8x2x192xf32, #tpu.memory_space<vmem>>, vector<1x2x192xf32>
    %14 = vector.shape_cast %13 : vector<1x2x192xf32> to vector<2x192xf32>
    %15 = arith.index_cast %11 : i32 to index
    %c0_13 = arith.constant 0 : index
    %c0_14 = arith.constant 0 : index
    %16 = vector.load %arg1[%15, %c0_13, %c0_14] : memref<8x2x192xf32, #tpu.memory_space<vmem>>, vector<1x2x192xf32>
    %17 = vector.shape_cast %16 : vector<1x2x192xf32> to vector<2x192xf32>
    %cst_15 = arith.constant dense<0.000000e+00> : vector<2x96xf32>
    %18 = tpu.matmul %10, %0, %cst_15 {dimension_numbers = #tpu.dot_dimension_numbers<[1], [0], [0], [1], [0, 0, 1, 1], [], []>} : vector<2x32xf32>, vector<32x96xf32>, vector<2x96xf32> -> vector<2x96xf32>
    %cst_16 = arith.constant dense<0.000000e+00> : vector<2x96xf32>
    %19 = tpu.matmul %10, %1, %cst_16 {dimension_numbers = #tpu.dot_dimension_numbers<[1], [0], [0], [1], [0, 0, 1, 1], [], []>} : vector<2x32xf32>, vector<32x96xf32>, vector<2x96xf32> -> vector<2x96xf32>
    %20 = vector.extract_strided_slice %14 {offsets = [0, 0], sizes = [2, 96], strides = [1, 1]} : vector<2x192xf32> to vector<2x96xf32>
    %21 = vector.extract_strided_slice %20 {offsets = [0, 0], sizes = [2, 32], strides = [1, 1]} : vector<2x96xf32> to vector<2x32xf32>
    %22 = vector.extract_strided_slice %18 {offsets = [0, 0], sizes = [2, 32], strides = [1, 1]} : vector<2x96xf32> to vector<2x32xf32>
    %23 = arith.addf %21, %22 : vector<2x32xf32>
    %24 = arith.negf %23 : vector<2x32xf32>
    %25 = math.exp %24 : vector<2x32xf32>
    %cst_17 = arith.constant 1.000000e+00 : f32
    %26 = vector.broadcast %cst_17 : f32 to vector<2x32xf32>
    %27 = arith.addf %26, %25 : vector<2x32xf32>
    %28 = arith.divf %26, %27 : vector<2x32xf32>
    %29 = vector.extract_strided_slice %20 {offsets = [0, 32], sizes = [2, 32], strides = [1, 1]} : vector<2x96xf32> to vector<2x32xf32>
    %30 = vector.extract_strided_slice %18 {offsets = [0, 32], sizes = [2, 32], strides = [1, 1]} : vector<2x96xf32> to vector<2x32xf32>
    %31 = arith.addf %29, %30 : vector<2x32xf32>
    %32 = arith.negf %31 : vector<2x32xf32>
    %33 = math.exp %32 : vector<2x32xf32>
    %cst_18 = arith.constant 1.000000e+00 : f32
    %34 = vector.broadcast %cst_18 : f32 to vector<2x32xf32>
    %35 = arith.addf %34, %33 : vector<2x32xf32>
    %36 = arith.divf %34, %35 : vector<2x32xf32>
    %37 = vector.extract_strided_slice %20 {offsets = [0, 64], sizes = [2, 32], strides = [1, 1]} : vector<2x96xf32> to vector<2x32xf32>
    %38 = vector.extract_strided_slice %18 {offsets = [0, 64], sizes = [2, 32], strides = [1, 1]} : vector<2x96xf32> to vector<2x32xf32>
    %39 = arith.addf %38, %4 : vector<2x32xf32>
    %40 = arith.mulf %28, %39 : vector<2x32xf32>
    %41 = arith.addf %37, %40 : vector<2x32xf32>
    %42 = math.tanh %41 : vector<2x32xf32>
    %cst_19 = arith.constant 1.000000e+00 : f32
    %43 = vector.broadcast %cst_19 : f32 to vector<2x32xf32>
    %44 = arith.subf %43, %36 : vector<2x32xf32>
    %45 = arith.mulf %44, %42 : vector<2x32xf32>
    %46 = arith.mulf %36, %10 : vector<2x32xf32>
    %47 = arith.addf %45, %46 : vector<2x32xf32>
    %48 = vector.extract_strided_slice %17 {offsets = [0, 96], sizes = [2, 96], strides = [1, 1]} : vector<2x192xf32> to vector<2x96xf32>
    %49 = vector.extract_strided_slice %48 {offsets = [0, 0], sizes = [2, 32], strides = [1, 1]} : vector<2x96xf32> to vector<2x32xf32>
    %50 = vector.extract_strided_slice %19 {offsets = [0, 0], sizes = [2, 32], strides = [1, 1]} : vector<2x96xf32> to vector<2x32xf32>
    %51 = arith.addf %49, %50 : vector<2x32xf32>
    %52 = arith.negf %51 : vector<2x32xf32>
    %53 = math.exp %52 : vector<2x32xf32>
    %cst_20 = arith.constant 1.000000e+00 : f32
    %54 = vector.broadcast %cst_20 : f32 to vector<2x32xf32>
    %55 = arith.addf %54, %53 : vector<2x32xf32>
    %56 = arith.divf %54, %55 : vector<2x32xf32>
    %57 = vector.extract_strided_slice %48 {offsets = [0, 32], sizes = [2, 32], strides = [1, 1]} : vector<2x96xf32> to vector<2x32xf32>
    %58 = vector.extract_strided_slice %19 {offsets = [0, 32], sizes = [2, 32], strides = [1, 1]} : vector<2x96xf32> to vector<2x32xf32>
    %59 = arith.addf %57, %58 : vector<2x32xf32>
    %60 = arith.negf %59 : vector<2x32xf32>
    %61 = math.exp %60 : vector<2x32xf32>
    %cst_21 = arith.constant 1.000000e+00 : f32
    %62 = vector.broadcast %cst_21 : f32 to vector<2x32xf32>
    %63 = arith.addf %62, %61 : vector<2x32xf32>
    %64 = arith.divf %62, %63 : vector<2x32xf32>
    %65 = vector.extract_strided_slice %48 {offsets = [0, 64], sizes = [2, 32], strides = [1, 1]} : vector<2x96xf32> to vector<2x32xf32>
    %66 = vector.extract_strided_slice %19 {offsets = [0, 64], sizes = [2, 32], strides = [1, 1]} : vector<2x96xf32> to vector<2x32xf32>
    %67 = arith.addf %66, %7 : vector<2x32xf32>
    %68 = arith.mulf %56, %67 : vector<2x32xf32>
    %69 = arith.addf %65, %68 : vector<2x32xf32>
    %70 = math.tanh %69 : vector<2x32xf32>
    %cst_22 = arith.constant 1.000000e+00 : f32
    %71 = vector.broadcast %cst_22 : f32 to vector<2x32xf32>
    %72 = arith.subf %71, %64 : vector<2x32xf32>
    %73 = arith.mulf %72, %70 : vector<2x32xf32>
    %74 = arith.mulf %64, %10 : vector<2x32xf32>
    %75 = arith.addf %73, %74 : vector<2x32xf32>
    %76 = arith.index_cast %c0_i32 : i32 to index
    %c0_23 = arith.constant 0 : index
    %c0_24 = arith.constant 0 : index
    %77 = vector.load %arg6[%76, %c0_23, %c0_24] : memref<8x2x32xf32, #tpu.memory_space<vmem>>, vector<1x2x32xf32>
    %78 = vector.shape_cast %77 : vector<1x2x32xf32> to vector<2x32xf32>
    %79 = arith.addf %78, %47 : vector<2x32xf32>
    %80 = arith.index_cast %c0_i32 : i32 to index
    %c0_25 = arith.constant 0 : index
    %c0_26 = arith.constant 0 : index
    %81 = vector.load %arg6[%80, %c0_25, %c0_26] : memref<8x2x32xf32, #tpu.memory_space<vmem>>, vector<1x2x32xf32>
    %82 = vector.shape_cast %81 : vector<1x2x32xf32> to vector<2x32xf32>
    %83 = vector.shape_cast %79 : vector<2x32xf32> to vector<1x2x32xf32>
    tpu.vector_store %arg6[%80, %c0_25, %c0_26], %83 {strides = array<i32>} : memref<8x2x32xf32, #tpu.memory_space<vmem>>, vector<1x2x32xf32>,
    %84 = arith.index_cast %11 : i32 to index
    %c0_27 = arith.constant 0 : index
    %c0_28 = arith.constant 0 : index
    %85 = vector.load %arg6[%84, %c0_27, %c0_28] : memref<8x2x32xf32, #tpu.memory_space<vmem>>, vector<1x2x32xf32>
    %86 = vector.shape_cast %85 : vector<1x2x32xf32> to vector<2x32xf32>
    %87 = arith.addf %86, %75 : vector<2x32xf32>
    %88 = arith.index_cast %11 : i32 to index
    %c0_29 = arith.constant 0 : index
    %c0_30 = arith.constant 0 : index
    %89 = vector.load %arg6[%88, %c0_29, %c0_30] : memref<8x2x32xf32, #tpu.memory_space<vmem>>, vector<1x2x32xf32>
    %90 = vector.shape_cast %89 : vector<1x2x32xf32> to vector<2x32xf32>
    %91 = vector.shape_cast %87 : vector<2x32xf32> to vector<1x2x32xf32>
    tpu.vector_store %arg6[%88, %c0_29, %c0_30], %91 {strides = array<i32>} : memref<8x2x32xf32, #tpu.memory_space<vmem>>, vector<1x2x32xf32>,
    %c1_i32 = arith.constant 1 : i32
    %c7_i32_31 = arith.constant 7 : i32
    %92 = arith.subi %c7_i32_31, %c1_i32 : i32
    %93 = arith.index_cast %c1_i32 : i32 to index
    %c0_32 = arith.constant 0 : index
    %c0_33 = arith.constant 0 : index
    %94 = vector.load %arg1[%93, %c0_32, %c0_33] : memref<8x2x192xf32, #tpu.memory_space<vmem>>, vector<1x2x192xf32>
    %95 = vector.shape_cast %94 : vector<1x2x192xf32> to vector<2x192xf32>
    %96 = arith.index_cast %92 : i32 to index
    %c0_34 = arith.constant 0 : index
    %c0_35 = arith.constant 0 : index
    %97 = vector.load %arg1[%96, %c0_34, %c0_35] : memref<8x2x192xf32, #tpu.memory_space<vmem>>, vector<1x2x192xf32>
    %98 = vector.shape_cast %97 : vector<1x2x192xf32> to vector<2x192xf32>
    %cst_36 = arith.constant dense<0.000000e+00> : vector<2x96xf32>
    %99 = tpu.matmul %47, %0, %cst_36 {dimension_numbers = #tpu.dot_dimension_numbers<[1], [0], [0], [1], [0, 0, 1, 1], [], []>} : vector<2x32xf32>, vector<32x96xf32>, vector<2x96xf32> -> vector<2x96xf32>
    %cst_37 = arith.constant dense<0.000000e+00> : vector<2x96xf32>
    %100 = tpu.matmul %75, %1, %cst_37 {dimension_numbers = #tpu.dot_dimension_numbers<[1], [0], [0], [1], [0, 0, 1, 1], [], []>} : vector<2x32xf32>, vector<32x96xf32>, vector<2x96xf32> -> vector<2x96xf32>
    %101 = vector.extract_strided_slice %95 {offsets = [0, 0], sizes = [2, 96], strides = [1, 1]} : vector<2x192xf32> to vector<2x96xf32>
    %102 = vector.extract_strided_slice %101 {offsets = [0, 0], sizes = [2, 32], strides = [1, 1]} : vector<2x96xf32> to vector<2x32xf32>
    %103 = vector.extract_strided_slice %99 {offsets = [0, 0], sizes = [2, 32], strides = [1, 1]} : vector<2x96xf32> to vector<2x32xf32>
    %104 = arith.addf %102, %103 : vector<2x32xf32>
    %105 = arith.negf %104 : vector<2x32xf32>
    %106 = math.exp %105 : vector<2x32xf32>
    %cst_38 = arith.constant 1.000000e+00 : f32
    %107 = vector.broadcast %cst_38 : f32 to vector<2x32xf32>
    %108 = arith.addf %107, %106 : vector<2x32xf32>
    %109 = arith.divf %107, %108 : vector<2x32xf32>
    %110 = vector.extract_strided_slice %101 {offsets = [0, 32], sizes = [2, 32], strides = [1, 1]} : vector<2x96xf32> to vector<2x32xf32>
    %111 = vector.extract_strided_slice %99 {offsets = [0, 32], sizes = [2, 32], strides = [1, 1]} : vector<2x96xf32> to vector<2x32xf32>
    %112 = arith.addf %110, %111 : vector<2x32xf32>
    %113 = arith.negf %112 : vector<2x32xf32>
    %114 = math.exp %113 : vector<2x32xf32>
    %cst_39 = arith.constant 1.000000e+00 : f32
    %115 = vector.broadcast %cst_39 : f32 to vector<2x32xf32>
    %116 = arith.addf %115, %114 : vector<2x32xf32>
    %117 = arith.divf %115, %116 : vector<2x32xf32>
    %118 = vector.extract_strided_slice %101 {offsets = [0, 64], sizes = [2, 32], strides = [1, 1]} : vector<2x96xf32> to vector<2x32xf32>
    %119 = vector.extract_strided_slice %99 {offsets = [0, 64], sizes = [2, 32], strides = [1, 1]} : vector<2x96xf32> to vector<2x32xf32>
    %120 = arith.addf %119, %4 : vector<2x32xf32>
    %121 = arith.mulf %109, %120 : vector<2x32xf32>
    %122 = arith.addf %118, %121 : vector<2x32xf32>
    %123 = math.tanh %122 : vector<2x32xf32>
    %cst_40 = arith.constant 1.000000e+00 : f32
    %124 = vector.broadcast %cst_40 : f32 to vector<2x32xf32>
    %125 = arith.subf %124, %117 : vector<2x32xf32>
    %126 = arith.mulf %125, %123 : vector<2x32xf32>
    %127 = arith.mulf %117, %47 : vector<2x32xf32>
    %128 = arith.addf %126, %127 : vector<2x32xf32>
    %129 = vector.extract_strided_slice %98 {offsets = [0, 96], sizes = [2, 96], strides = [1, 1]} : vector<2x192xf32> to vector<2x96xf32>
    %130 = vector.extract_strided_slice %129 {offsets = [0, 0], sizes = [2, 32], strides = [1, 1]} : vector<2x96xf32> to vector<2x32xf32>
    %131 = vector.extract_strided_slice %100 {offsets = [0, 0], sizes = [2, 32], strides = [1, 1]} : vector<2x96xf32> to vector<2x32xf32>
    %132 = arith.addf %130, %131 : vector<2x32xf32>
    %133 = arith.negf %132 : vector<2x32xf32>
    %134 = math.exp %133 : vector<2x32xf32>
    %cst_41 = arith.constant 1.000000e+00 : f32
    %135 = vector.broadcast %cst_41 : f32 to vector<2x32xf32>
    %136 = arith.addf %135, %134 : vector<2x32xf32>
    %137 = arith.divf %135, %136 : vector<2x32xf32>
    %138 = vector.extract_strided_slice %129 {offsets = [0, 32], sizes = [2, 32], strides = [1, 1]} : vector<2x96xf32> to vector<2x32xf32>
    %139 = vector.extract_strided_slice %100 {offsets = [0, 32], sizes = [2, 32], strides = [1, 1]} : vector<2x96xf32> to vector<2x32xf32>
    %140 = arith.addf %138, %139 : vector<2x32xf32>
    %141 = arith.negf %140 : vector<2x32xf32>
    %142 = math.exp %141 : vector<2x32xf32>
    %cst_42 = arith.constant 1.000000e+00 : f32
    %143 = vector.broadcast %cst_42 : f32 to vector<2x32xf32>
    %144 = arith.addf %143, %142 : vector<2x32xf32>
    %145 = arith.divf %143, %144 : vector<2x32xf32>
    %146 = vector.extract_strided_slice %129 {offsets = [0, 64], sizes = [2, 32], strides = [1, 1]} : vector<2x96xf32> to vector<2x32xf32>
    %147 = vector.extract_strided_slice %100 {offsets = [0, 64], sizes = [2, 32], strides = [1, 1]} : vector<2x96xf32> to vector<2x32xf32>
    %148 = arith.addf %147, %7 : vector<2x32xf32>
    %149 = arith.mulf %137, %148 : vector<2x32xf32>
    %150 = arith.addf %146, %149 : vector<2x32xf32>
    %151 = math.tanh %150 : vector<2x32xf32>
    %cst_43 = arith.constant 1.000000e+00 : f32
    %152 = vector.broadcast %cst_43 : f32 to vector<2x32xf32>
    %153 = arith.subf %152, %145 : vector<2x32xf32>
    %154 = arith.mulf %153, %151 : vector<2x32xf32>
    %155 = arith.mulf %145, %75 : vector<2x32xf32>
    %156 = arith.addf %154, %155 : vector<2x32xf32>
    %157 = arith.index_cast %c1_i32 : i32 to index
    %c0_44 = arith.constant 0 : index
    %c0_45 = arith.constant 0 : index
    %158 = vector.load %arg6[%157, %c0_44, %c0_45] : memref<8x2x32xf32, #tpu.memory_space<vmem>>, vector<1x2x32xf32>
    %159 = vector.shape_cast %158 : vector<1x2x32xf32> to vector<2x32xf32>
    %160 = arith.addf %159, %128 : vector<2x32xf32>
    %161 = arith.index_cast %c1_i32 : i32 to index
    %c0_46 = arith.constant 0 : index
    %c0_47 = arith.constant 0 : index
    %162 = vector.load %arg6[%161, %c0_46, %c0_47] : memref<8x2x32xf32, #tpu.memory_space<vmem>>, vector<1x2x32xf32>
    %163 = vector.shape_cast %162 : vector<1x2x32xf32> to vector<2x32xf32>
    %164 = vector.shape_cast %160 : vector<2x32xf32> to vector<1x2x32xf32>
    tpu.vector_store %arg6[%161, %c0_46, %c0_47], %164 {strides = array<i32>} : memref<8x2x32xf32, #tpu.memory_space<vmem>>, vector<1x2x32xf32>,
    %165 = arith.index_cast %92 : i32 to index
    %c0_48 = arith.constant 0 : index
    %c0_49 = arith.constant 0 : index
    %166 = vector.load %arg6[%165, %c0_48, %c0_49] : memref<8x2x32xf32, #tpu.memory_space<vmem>>, vector<1x2x32xf32>
    %167 = vector.shape_cast %166 : vector<1x2x32xf32> to vector<2x32xf32>
    %168 = arith.addf %167, %156 : vector<2x32xf32>
    %169 = arith.index_cast %92 : i32 to index
    %c0_50 = arith.constant 0 : index
    %c0_51 = arith.constant 0 : index
    %170 = vector.load %arg6[%169, %c0_50, %c0_51] : memref<8x2x32xf32, #tpu.memory_space<vmem>>, vector<1x2x32xf32>
    %171 = vector.shape_cast %170 : vector<1x2x32xf32> to vector<2x32xf32>
    %172 = vector.shape_cast %168 : vector<2x32xf32> to vector<1x2x32xf32>
    tpu.vector_store %arg6[%169, %c0_50, %c0_51], %172 {strides = array<i32>} : memref<8x2x32xf32, #tpu.memory_space<vmem>>, vector<1x2x32xf32>,
    %c2_i32 = arith.constant 2 : i32
    %c7_i32_52 = arith.constant 7 : i32
    %173 = arith.subi %c7_i32_52, %c2_i32 : i32
    %174 = arith.index_cast %c2_i32 : i32 to index
    %c0_53 = arith.constant 0 : index
    %c0_54 = arith.constant 0 : index
    %175 = vector.load %arg1[%174, %c0_53, %c0_54] : memref<8x2x192xf32, #tpu.memory_space<vmem>>, vector<1x2x192xf32>
    %176 = vector.shape_cast %175 : vector<1x2x192xf32> to vector<2x192xf32>
    %177 = arith.index_cast %173 : i32 to index
    %c0_55 = arith.constant 0 : index
    %c0_56 = arith.constant 0 : index
    %178 = vector.load %arg1[%177, %c0_55, %c0_56] : memref<8x2x192xf32, #tpu.memory_space<vmem>>, vector<1x2x192xf32>
    %179 = vector.shape_cast %178 : vector<1x2x192xf32> to vector<2x192xf32>
    %cst_57 = arith.constant dense<0.000000e+00> : vector<2x96xf32>
    %180 = tpu.matmul %128, %0, %cst_57 {dimension_numbers = #tpu.dot_dimension_numbers<[1], [0], [0], [1], [0, 0, 1, 1], [], []>} : vector<2x32xf32>, vector<32x96xf32>, vector<2x96xf32> -> vector<2x96xf32>
    %cst_58 = arith.constant dense<0.000000e+00> : vector<2x96xf32>
    %181 = tpu.matmul %156, %1, %cst_58 {dimension_numbers = #tpu.dot_dimension_numbers<[1], [0], [0], [1], [0, 0, 1, 1], [], []>} : vector<2x32xf32>, vector<32x96xf32>, vector<2x96xf32> -> vector<2x96xf32>
    %182 = vector.extract_strided_slice %176 {offsets = [0, 0], sizes = [2, 96], strides = [1, 1]} : vector<2x192xf32> to vector<2x96xf32>
    %183 = vector.extract_strided_slice %182 {offsets = [0, 0], sizes = [2, 32], strides = [1, 1]} : vector<2x96xf32> to vector<2x32xf32>
    %184 = vector.extract_strided_slice %180 {offsets = [0, 0], sizes = [2, 32], strides = [1, 1]} : vector<2x96xf32> to vector<2x32xf32>
    %185 = arith.addf %183, %184 : vector<2x32xf32>
    %186 = arith.negf %185 : vector<2x32xf32>
    %187 = math.exp %186 : vector<2x32xf32>
    %cst_59 = arith.constant 1.000000e+00 : f32
    %188 = vector.broadcast %cst_59 : f32 to vector<2x32xf32>
    %189 = arith.addf %188, %187 : vector<2x32xf32>
    %190 = arith.divf %188, %189 : vector<2x32xf32>
    %191 = vector.extract_strided_slice %182 {offsets = [0, 32], sizes = [2, 32], strides = [1, 1]} : vector<2x96xf32> to vector<2x32xf32>
    %192 = vector.extract_strided_slice %180 {offsets = [0, 32], sizes = [2, 32], strides = [1, 1]} : vector<2x96xf32> to vector<2x32xf32>
    %193 = arith.addf %191, %192 : vector<2x32xf32>
    %194 = arith.negf %193 : vector<2x32xf32>
    %195 = math.exp %194 : vector<2x32xf32>
    %cst_60 = arith.constant 1.000000e+00 : f32
    %196 = vector.broadcast %cst_60 : f32 to vector<2x32xf32>
    %197 = arith.addf %196, %195 : vector<2x32xf32>
    %198 = arith.divf %196, %197 : vector<2x32xf32>
    %199 = vector.extract_strided_slice %182 {offsets = [0, 64], sizes = [2, 32], strides = [1, 1]} : vector<2x96xf32> to vector<2x32xf32>
    %200 = vector.extract_strided_slice %180 {offsets = [0, 64], sizes = [2, 32], strides = [1, 1]} : vector<2x96xf32> to vector<2x32xf32>
    %201 = arith.addf %200, %4 : vector<2x32xf32>
    %202 = arith.mulf %190, %201 : vector<2x32xf32>
    %203 = arith.addf %199, %202 : vector<2x32xf32>
    %204 = math.tanh %203 : vector<2x32xf32>
    %cst_61 = arith.constant 1.000000e+00 : f32
    %205 = vector.broadcast %cst_61 : f32 to vector<2x32xf32>
    %206 = arith.subf %205, %198 : vector<2x32xf32>
    %207 = arith.mulf %206, %204 : vector<2x32xf32>
    %208 = arith.mulf %198, %128 : vector<2x32xf32>
    %209 = arith.addf %207, %208 : vector<2x32xf32>
    %210 = vector.extract_strided_slice %179 {offsets = [0, 96], sizes = [2, 96], strides = [1, 1]} : vector<2x192xf32> to vector<2x96xf32>
    %211 = vector.extract_strided_slice %210 {offsets = [0, 0], sizes = [2, 32], strides = [1, 1]} : vector<2x96xf32> to vector<2x32xf32>
    %212 = vector.extract_strided_slice %181 {offsets = [0, 0], sizes = [2, 32], strides = [1, 1]} : vector<2x96xf32> to vector<2x32xf32>
    %213 = arith.addf %211, %212 : vector<2x32xf32>
    %214 = arith.negf %213 : vector<2x32xf32>
    %215 = math.exp %214 : vector<2x32xf32>
    %cst_62 = arith.constant 1.000000e+00 : f32
    %216 = vector.broadcast %cst_62 : f32 to vector<2x32xf32>
    %217 = arith.addf %216, %215 : vector<2x32xf32>
    %218 = arith.divf %216, %217 : vector<2x32xf32>
    %219 = vector.extract_strided_slice %210 {offsets = [0, 32], sizes = [2, 32], strides = [1, 1]} : vector<2x96xf32> to vector<2x32xf32>
    %220 = vector.extract_strided_slice %181 {offsets = [0, 32], sizes = [2, 32], strides = [1, 1]} : vector<2x96xf32> to vector<2x32xf32>
    %221 = arith.addf %219, %220 : vector<2x32xf32>
    %222 = arith.negf %221 : vector<2x32xf32>
    %223 = math.exp %222 : vector<2x32xf32>
    %cst_63 = arith.constant 1.000000e+00 : f32
    %224 = vector.broadcast %cst_63 : f32 to vector<2x32xf32>
    %225 = arith.addf %224, %223 : vector<2x32xf32>
    %226 = arith.divf %224, %225 : vector<2x32xf32>
    %227 = vector.extract_strided_slice %210 {offsets = [0, 64], sizes = [2, 32], strides = [1, 1]} : vector<2x96xf32> to vector<2x32xf32>
    %228 = vector.extract_strided_slice %181 {offsets = [0, 64], sizes = [2, 32], strides = [1, 1]} : vector<2x96xf32> to vector<2x32xf32>
    %229 = arith.addf %228, %7 : vector<2x32xf32>
    %230 = arith.mulf %218, %229 : vector<2x32xf32>
    %231 = arith.addf %227, %230 : vector<2x32xf32>
    %232 = math.tanh %231 : vector<2x32xf32>
    %cst_64 = arith.constant 1.000000e+00 : f32
    %233 = vector.broadcast %cst_64 : f32 to vector<2x32xf32>
    %234 = arith.subf %233, %226 : vector<2x32xf32>
    %235 = arith.mulf %234, %232 : vector<2x32xf32>
    %236 = arith.mulf %226, %156 : vector<2x32xf32>
    %237 = arith.addf %235, %236 : vector<2x32xf32>
    %238 = arith.index_cast %c2_i32 : i32 to index
    %c0_65 = arith.constant 0 : index
    %c0_66 = arith.constant 0 : index
    %239 = vector.load %arg6[%238, %c0_65, %c0_66] : memref<8x2x32xf32, #tpu.memory_space<vmem>>, vector<1x2x32xf32>
    %240 = vector.shape_cast %239 : vector<1x2x32xf32> to vector<2x32xf32>
    %241 = arith.addf %240, %209 : vector<2x32xf32>
    %242 = arith.index_cast %c2_i32 : i32 to index
    %c0_67 = arith.constant 0 : index
    %c0_68 = arith.constant 0 : index
    %243 = vector.load %arg6[%242, %c0_67, %c0_68] : memref<8x2x32xf32, #tpu.memory_space<vmem>>, vector<1x2x32xf32>
    %244 = vector.shape_cast %243 : vector<1x2x32xf32> to vector<2x32xf32>
    %245 = vector.shape_cast %241 : vector<2x32xf32> to vector<1x2x32xf32>
    tpu.vector_store %arg6[%242, %c0_67, %c0_68], %245 {strides = array<i32>} : memref<8x2x32xf32, #tpu.memory_space<vmem>>, vector<1x2x32xf32>,
    %246 = arith.index_cast %173 : i32 to index
    %c0_69 = arith.constant 0 : index
    %c0_70 = arith.constant 0 : index
    %247 = vector.load %arg6[%246, %c0_69, %c0_70] : memref<8x2x32xf32, #tpu.memory_space<vmem>>, vector<1x2x32xf32>
    %248 = vector.shape_cast %247 : vector<1x2x32xf32> to vector<2x32xf32>
    %249 = arith.addf %248, %237 : vector<2x32xf32>
    %250 = arith.index_cast %173 : i32 to index
    %c0_71 = arith.constant 0 : index
    %c0_72 = arith.constant 0 : index
    %251 = vector.load %arg6[%250, %c0_71, %c0_72] : memref<8x2x32xf32, #tpu.memory_space<vmem>>, vector<1x2x32xf32>
    %252 = vector.shape_cast %251 : vector<1x2x32xf32> to vector<2x32xf32>
    %253 = vector.shape_cast %249 : vector<2x32xf32> to vector<1x2x32xf32>
    tpu.vector_store %arg6[%250, %c0_71, %c0_72], %253 {strides = array<i32>} : memref<8x2x32xf32, #tpu.memory_space<vmem>>, vector<1x2x32xf32>,
    %c3_i32 = arith.constant 3 : i32
    %c7_i32_73 = arith.constant 7 : i32
    %254 = arith.subi %c7_i32_73, %c3_i32 : i32
    %255 = arith.index_cast %c3_i32 : i32 to index
    %c0_74 = arith.constant 0 : index
    %c0_75 = arith.constant 0 : index
    %256 = vector.load %arg1[%255, %c0_74, %c0_75] : memref<8x2x192xf32, #tpu.memory_space<vmem>>, vector<1x2x192xf32>
    %257 = vector.shape_cast %256 : vector<1x2x192xf32> to vector<2x192xf32>
    %258 = arith.index_cast %254 : i32 to index
    %c0_76 = arith.constant 0 : index
    %c0_77 = arith.constant 0 : index
    %259 = vector.load %arg1[%258, %c0_76, %c0_77] : memref<8x2x192xf32, #tpu.memory_space<vmem>>, vector<1x2x192xf32>
    %260 = vector.shape_cast %259 : vector<1x2x192xf32> to vector<2x192xf32>
    %cst_78 = arith.constant dense<0.000000e+00> : vector<2x96xf32>
    %261 = tpu.matmul %209, %0, %cst_78 {dimension_numbers = #tpu.dot_dimension_numbers<[1], [0], [0], [1], [0, 0, 1, 1], [], []>} : vector<2x32xf32>, vector<32x96xf32>, vector<2x96xf32> -> vector<2x96xf32>
    %cst_79 = arith.constant dense<0.000000e+00> : vector<2x96xf32>
    %262 = tpu.matmul %237, %1, %cst_79 {dimension_numbers = #tpu.dot_dimension_numbers<[1], [0], [0], [1], [0, 0, 1, 1], [], []>} : vector<2x32xf32>, vector<32x96xf32>, vector<2x96xf32> -> vector<2x96xf32>
    %263 = vector.extract_strided_slice %257 {offsets = [0, 0], sizes = [2, 96], strides = [1, 1]} : vector<2x192xf32> to vector<2x96xf32>
    %264 = vector.extract_strided_slice %263 {offsets = [0, 0], sizes = [2, 32], strides = [1, 1]} : vector<2x96xf32> to vector<2x32xf32>
    %265 = vector.extract_strided_slice %261 {offsets = [0, 0], sizes = [2, 32], strides = [1, 1]} : vector<2x96xf32> to vector<2x32xf32>
    %266 = arith.addf %264, %265 : vector<2x32xf32>
    %267 = arith.negf %266 : vector<2x32xf32>
    %268 = math.exp %267 : vector<2x32xf32>
    %cst_80 = arith.constant 1.000000e+00 : f32
    %269 = vector.broadcast %cst_80 : f32 to vector<2x32xf32>
    %270 = arith.addf %269, %268 : vector<2x32xf32>
    %271 = arith.divf %269, %270 : vector<2x32xf32>
    %272 = vector.extract_strided_slice %263 {offsets = [0, 32], sizes = [2, 32], strides = [1, 1]} : vector<2x96xf32> to vector<2x32xf32>
    %273 = vector.extract_strided_slice %261 {offsets = [0, 32], sizes = [2, 32], strides = [1, 1]} : vector<2x96xf32> to vector<2x32xf32>
    %274 = arith.addf %272, %273 : vector<2x32xf32>
    %275 = arith.negf %274 : vector<2x32xf32>
    %276 = math.exp %275 : vector<2x32xf32>
    %cst_81 = arith.constant 1.000000e+00 : f32
    %277 = vector.broadcast %cst_81 : f32 to vector<2x32xf32>
    %278 = arith.addf %277, %276 : vector<2x32xf32>
    %279 = arith.divf %277, %278 : vector<2x32xf32>
    %280 = vector.extract_strided_slice %263 {offsets = [0, 64], sizes = [2, 32], strides = [1, 1]} : vector<2x96xf32> to vector<2x32xf32>
    %281 = vector.extract_strided_slice %261 {offsets = [0, 64], sizes = [2, 32], strides = [1, 1]} : vector<2x96xf32> to vector<2x32xf32>
    %282 = arith.addf %281, %4 : vector<2x32xf32>
    %283 = arith.mulf %271, %282 : vector<2x32xf32>
    %284 = arith.addf %280, %283 : vector<2x32xf32>
    %285 = math.tanh %284 : vector<2x32xf32>
    %cst_82 = arith.constant 1.000000e+00 : f32
    %286 = vector.broadcast %cst_82 : f32 to vector<2x32xf32>
    %287 = arith.subf %286, %279 : vector<2x32xf32>
    %288 = arith.mulf %287, %285 : vector<2x32xf32>
    %289 = arith.mulf %279, %209 : vector<2x32xf32>
    %290 = arith.addf %288, %289 : vector<2x32xf32>
    %291 = vector.extract_strided_slice %260 {offsets = [0, 96], sizes = [2, 96], strides = [1, 1]} : vector<2x192xf32> to vector<2x96xf32>
    %292 = vector.extract_strided_slice %291 {offsets = [0, 0], sizes = [2, 32], strides = [1, 1]} : vector<2x96xf32> to vector<2x32xf32>
    %293 = vector.extract_strided_slice %262 {offsets = [0, 0], sizes = [2, 32], strides = [1, 1]} : vector<2x96xf32> to vector<2x32xf32>
    %294 = arith.addf %292, %293 : vector<2x32xf32>
    %295 = arith.negf %294 : vector<2x32xf32>
    %296 = math.exp %295 : vector<2x32xf32>
    %cst_83 = arith.constant 1.000000e+00 : f32
    %297 = vector.broadcast %cst_83 : f32 to vector<2x32xf32>
    %298 = arith.addf %297, %296 : vector<2x32xf32>
    %299 = arith.divf %297, %298 : vector<2x32xf32>
    %300 = vector.extract_strided_slice %291 {offsets = [0, 32], sizes = [2, 32], strides = [1, 1]} : vector<2x96xf32> to vector<2x32xf32>
    %301 = vector.extract_strided_slice %262 {offsets = [0, 32], sizes = [2, 32], strides = [1, 1]} : vector<2x96xf32> to vector<2x32xf32>
    %302 = arith.addf %300, %301 : vector<2x32xf32>
    %303 = arith.negf %302 : vector<2x32xf32>
    %304 = math.exp %303 : vector<2x32xf32>
    %cst_84 = arith.constant 1.000000e+00 : f32
    %305 = vector.broadcast %cst_84 : f32 to vector<2x32xf32>
    %306 = arith.addf %305, %304 : vector<2x32xf32>
    %307 = arith.divf %305, %306 : vector<2x32xf32>
    %308 = vector.extract_strided_slice %291 {offsets = [0, 64], sizes = [2, 32], strides = [1, 1]} : vector<2x96xf32> to vector<2x32xf32>
    %309 = vector.extract_strided_slice %262 {offsets = [0, 64], sizes = [2, 32], strides = [1, 1]} : vector<2x96xf32> to vector<2x32xf32>
    %310 = arith.addf %309, %7 : vector<2x32xf32>
    %311 = arith.mulf %299, %310 : vector<2x32xf32>
    %312 = arith.addf %308, %311 : vector<2x32xf32>
    %313 = math.tanh %312 : vector<2x32xf32>
    %cst_85 = arith.constant 1.000000e+00 : f32
    %314 = vector.broadcast %cst_85 : f32 to vector<2x32xf32>
    %315 = arith.subf %314, %307 : vector<2x32xf32>
    %316 = arith.mulf %315, %313 : vector<2x32xf32>
    %317 = arith.mulf %307, %237 : vector<2x32xf32>
    %318 = arith.addf %316, %317 : vector<2x32xf32>
    %319 = arith.index_cast %c3_i32 : i32 to index
    %c0_86 = arith.constant 0 : index
    %c0_87 = arith.constant 0 : index
    %320 = vector.load %arg6[%319, %c0_86, %c0_87] : memref<8x2x32xf32, #tpu.memory_space<vmem>>, vector<1x2x32xf32>
    %321 = vector.shape_cast %320 : vector<1x2x32xf32> to vector<2x32xf32>
    %322 = arith.addf %321, %290 : vector<2x32xf32>
    %323 = arith.index_cast %c3_i32 : i32 to index
    %c0_88 = arith.constant 0 : index
    %c0_89 = arith.constant 0 : index
    %324 = vector.load %arg6[%323, %c0_88, %c0_89] : memref<8x2x32xf32, #tpu.memory_space<vmem>>, vector<1x2x32xf32>
    %325 = vector.shape_cast %324 : vector<1x2x32xf32> to vector<2x32xf32>
    %326 = vector.shape_cast %322 : vector<2x32xf32> to vector<1x2x32xf32>
    tpu.vector_store %arg6[%323, %c0_88, %c0_89], %326 {strides = array<i32>} : memref<8x2x32xf32, #tpu.memory_space<vmem>>, vector<1x2x32xf32>,
    %327 = arith.index_cast %254 : i32 to index
    %c0_90 = arith.constant 0 : index
    %c0_91 = arith.constant 0 : index
    %328 = vector.load %arg6[%327, %c0_90, %c0_91] : memref<8x2x32xf32, #tpu.memory_space<vmem>>, vector<1x2x32xf32>
    %329 = vector.shape_cast %328 : vector<1x2x32xf32> to vector<2x32xf32>
    %330 = arith.addf %329, %318 : vector<2x32xf32>
    %331 = arith.index_cast %254 : i32 to index
    %c0_92 = arith.constant 0 : index
    %c0_93 = arith.constant 0 : index
    %332 = vector.load %arg6[%331, %c0_92, %c0_93] : memref<8x2x32xf32, #tpu.memory_space<vmem>>, vector<1x2x32xf32>
    %333 = vector.shape_cast %332 : vector<1x2x32xf32> to vector<2x32xf32>
    %334 = vector.shape_cast %330 : vector<2x32xf32> to vector<1x2x32xf32>
    tpu.vector_store %arg6[%331, %c0_92, %c0_93], %334 {strides = array<i32>} : memref<8x2x32xf32, #tpu.memory_space<vmem>>, vector<1x2x32xf32>,
    %c4_i32 = arith.constant 4 : i32
    %c7_i32_94 = arith.constant 7 : i32
    %335 = arith.subi %c7_i32_94, %c4_i32 : i32
    %336 = arith.index_cast %c4_i32 : i32 to index
    %c0_95 = arith.constant 0 : index
    %c0_96 = arith.constant 0 : index
    %337 = vector.load %arg1[%336, %c0_95, %c0_96] : memref<8x2x192xf32, #tpu.memory_space<vmem>>, vector<1x2x192xf32>
    %338 = vector.shape_cast %337 : vector<1x2x192xf32> to vector<2x192xf32>
    %339 = arith.index_cast %335 : i32 to index
    %c0_97 = arith.constant 0 : index
    %c0_98 = arith.constant 0 : index
    %340 = vector.load %arg1[%339, %c0_97, %c0_98] : memref<8x2x192xf32, #tpu.memory_space<vmem>>, vector<1x2x192xf32>
    %341 = vector.shape_cast %340 : vector<1x2x192xf32> to vector<2x192xf32>
    %cst_99 = arith.constant dense<0.000000e+00> : vector<2x96xf32>
    %342 = tpu.matmul %290, %0, %cst_99 {dimension_numbers = #tpu.dot_dimension_numbers<[1], [0], [0], [1], [0, 0, 1, 1], [], []>} : vector<2x32xf32>, vector<32x96xf32>, vector<2x96xf32> -> vector<2x96xf32>
    %cst_100 = arith.constant dense<0.000000e+00> : vector<2x96xf32>
    %343 = tpu.matmul %318, %1, %cst_100 {dimension_numbers = #tpu.dot_dimension_numbers<[1], [0], [0], [1], [0, 0, 1, 1], [], []>} : vector<2x32xf32>, vector<32x96xf32>, vector<2x96xf32> -> vector<2x96xf32>
    %344 = vector.extract_strided_slice %338 {offsets = [0, 0], sizes = [2, 96], strides = [1, 1]} : vector<2x192xf32> to vector<2x96xf32>
    %345 = vector.extract_strided_slice %344 {offsets = [0, 0], sizes = [2, 32], strides = [1, 1]} : vector<2x96xf32> to vector<2x32xf32>
    %346 = vector.extract_strided_slice %342 {offsets = [0, 0], sizes = [2, 32], strides = [1, 1]} : vector<2x96xf32> to vector<2x32xf32>
    %347 = arith.addf %345, %346 : vector<2x32xf32>
    %348 = arith.negf %347 : vector<2x32xf32>
    %349 = math.exp %348 : vector<2x32xf32>
    %cst_101 = arith.constant 1.000000e+00 : f32
    %350 = vector.broadcast %cst_101 : f32 to vector<2x32xf32>
    %351 = arith.addf %350, %349 : vector<2x32xf32>
    %352 = arith.divf %350, %351 : vector<2x32xf32>
    %353 = vector.extract_strided_slice %344 {offsets = [0, 32], sizes = [2, 32], strides = [1, 1]} : vector<2x96xf32> to vector<2x32xf32>
    %354 = vector.extract_strided_slice %342 {offsets = [0, 32], sizes = [2, 32], strides = [1, 1]} : vector<2x96xf32> to vector<2x32xf32>
    %355 = arith.addf %353, %354 : vector<2x32xf32>
    %356 = arith.negf %355 : vector<2x32xf32>
    %357 = math.exp %356 : vector<2x32xf32>
    %cst_102 = arith.constant 1.000000e+00 : f32
    %358 = vector.broadcast %cst_102 : f32 to vector<2x32xf32>
    %359 = arith.addf %358, %357 : vector<2x32xf32>
    %360 = arith.divf %358, %359 : vector<2x32xf32>
    %361 = vector.extract_strided_slice %344 {offsets = [0, 64], sizes = [2, 32], strides = [1, 1]} : vector<2x96xf32> to vector<2x32xf32>
    %362 = vector.extract_strided_slice %342 {offsets = [0, 64], sizes = [2, 32], strides = [1, 1]} : vector<2x96xf32> to vector<2x32xf32>
    %363 = arith.addf %362, %4 : vector<2x32xf32>
    %364 = arith.mulf %352, %363 : vector<2x32xf32>
    %365 = arith.addf %361, %364 : vector<2x32xf32>
    %366 = math.tanh %365 : vector<2x32xf32>
    %cst_103 = arith.constant 1.000000e+00 : f32
    %367 = vector.broadcast %cst_103 : f32 to vector<2x32xf32>
    %368 = arith.subf %367, %360 : vector<2x32xf32>
    %369 = arith.mulf %368, %366 : vector<2x32xf32>
    %370 = arith.mulf %360, %290 : vector<2x32xf32>
    %371 = arith.addf %369, %370 : vector<2x32xf32>
    %372 = vector.extract_strided_slice %341 {offsets = [0, 96], sizes = [2, 96], strides = [1, 1]} : vector<2x192xf32> to vector<2x96xf32>
    %373 = vector.extract_strided_slice %372 {offsets = [0, 0], sizes = [2, 32], strides = [1, 1]} : vector<2x96xf32> to vector<2x32xf32>
    %374 = vector.extract_strided_slice %343 {offsets = [0, 0], sizes = [2, 32], strides = [1, 1]} : vector<2x96xf32> to vector<2x32xf32>
    %375 = arith.addf %373, %374 : vector<2x32xf32>
    %376 = arith.negf %375 : vector<2x32xf32>
    %377 = math.exp %376 : vector<2x32xf32>
    %cst_104 = arith.constant 1.000000e+00 : f32
    %378 = vector.broadcast %cst_104 : f32 to vector<2x32xf32>
    %379 = arith.addf %378, %377 : vector<2x32xf32>
    %380 = arith.divf %378, %379 : vector<2x32xf32>
    %381 = vector.extract_strided_slice %372 {offsets = [0, 32], sizes = [2, 32], strides = [1, 1]} : vector<2x96xf32> to vector<2x32xf32>
    %382 = vector.extract_strided_slice %343 {offsets = [0, 32], sizes = [2, 32], strides = [1, 1]} : vector<2x96xf32> to vector<2x32xf32>
    %383 = arith.addf %381, %382 : vector<2x32xf32>
    %384 = arith.negf %383 : vector<2x32xf32>
    %385 = math.exp %384 : vector<2x32xf32>
    %cst_105 = arith.constant 1.000000e+00 : f32
    %386 = vector.broadcast %cst_105 : f32 to vector<2x32xf32>
    %387 = arith.addf %386, %385 : vector<2x32xf32>
    %388 = arith.divf %386, %387 : vector<2x32xf32>
    %389 = vector.extract_strided_slice %372 {offsets = [0, 64], sizes = [2, 32], strides = [1, 1]} : vector<2x96xf32> to vector<2x32xf32>
    %390 = vector.extract_strided_slice %343 {offsets = [0, 64], sizes = [2, 32], strides = [1, 1]} : vector<2x96xf32> to vector<2x32xf32>
    %391 = arith.addf %390, %7 : vector<2x32xf32>
    %392 = arith.mulf %380, %391 : vector<2x32xf32>
    %393 = arith.addf %389, %392 : vector<2x32xf32>
    %394 = math.tanh %393 : vector<2x32xf32>
    %cst_106 = arith.constant 1.000000e+00 : f32
    %395 = vector.broadcast %cst_106 : f32 to vector<2x32xf32>
    %396 = arith.subf %395, %388 : vector<2x32xf32>
    %397 = arith.mulf %396, %394 : vector<2x32xf32>
    %398 = arith.mulf %388, %318 : vector<2x32xf32>
    %399 = arith.addf %397, %398 : vector<2x32xf32>
    %400 = arith.index_cast %c4_i32 : i32 to index
    %c0_107 = arith.constant 0 : index
    %c0_108 = arith.constant 0 : index
    %401 = vector.load %arg6[%400, %c0_107, %c0_108] : memref<8x2x32xf32, #tpu.memory_space<vmem>>, vector<1x2x32xf32>
    %402 = vector.shape_cast %401 : vector<1x2x32xf32> to vector<2x32xf32>
    %403 = arith.addf %402, %371 : vector<2x32xf32>
    %404 = arith.index_cast %c4_i32 : i32 to index
    %c0_109 = arith.constant 0 : index
    %c0_110 = arith.constant 0 : index
    %405 = vector.load %arg6[%404, %c0_109, %c0_110] : memref<8x2x32xf32, #tpu.memory_space<vmem>>, vector<1x2x32xf32>
    %406 = vector.shape_cast %405 : vector<1x2x32xf32> to vector<2x32xf32>
    %407 = vector.shape_cast %403 : vector<2x32xf32> to vector<1x2x32xf32>
    tpu.vector_store %arg6[%404, %c0_109, %c0_110], %407 {strides = array<i32>} : memref<8x2x32xf32, #tpu.memory_space<vmem>>, vector<1x2x32xf32>,
    %408 = arith.index_cast %335 : i32 to index
    %c0_111 = arith.constant 0 : index
    %c0_112 = arith.constant 0 : index
    %409 = vector.load %arg6[%408, %c0_111, %c0_112] : memref<8x2x32xf32, #tpu.memory_space<vmem>>, vector<1x2x32xf32>
    %410 = vector.shape_cast %409 : vector<1x2x32xf32> to vector<2x32xf32>
    %411 = arith.addf %410, %399 : vector<2x32xf32>
    %412 = arith.index_cast %335 : i32 to index
    %c0_113 = arith.constant 0 : index
    %c0_114 = arith.constant 0 : index
    %413 = vector.load %arg6[%412, %c0_113, %c0_114] : memref<8x2x32xf32, #tpu.memory_space<vmem>>, vector<1x2x32xf32>
    %414 = vector.shape_cast %413 : vector<1x2x32xf32> to vector<2x32xf32>
    %415 = vector.shape_cast %411 : vector<2x32xf32> to vector<1x2x32xf32>
    tpu.vector_store %arg6[%412, %c0_113, %c0_114], %415 {strides = array<i32>} : memref<8x2x32xf32, #tpu.memory_space<vmem>>, vector<1x2x32xf32>,
    %c5_i32 = arith.constant 5 : i32
    %c7_i32_115 = arith.constant 7 : i32
    %416 = arith.subi %c7_i32_115, %c5_i32 : i32
    %417 = arith.index_cast %c5_i32 : i32 to index
    %c0_116 = arith.constant 0 : index
    %c0_117 = arith.constant 0 : index
    %418 = vector.load %arg1[%417, %c0_116, %c0_117] : memref<8x2x192xf32, #tpu.memory_space<vmem>>, vector<1x2x192xf32>
    %419 = vector.shape_cast %418 : vector<1x2x192xf32> to vector<2x192xf32>
    %420 = arith.index_cast %416 : i32 to index
    %c0_118 = arith.constant 0 : index
    %c0_119 = arith.constant 0 : index
    %421 = vector.load %arg1[%420, %c0_118, %c0_119] : memref<8x2x192xf32, #tpu.memory_space<vmem>>, vector<1x2x192xf32>
    %422 = vector.shape_cast %421 : vector<1x2x192xf32> to vector<2x192xf32>
    %cst_120 = arith.constant dense<0.000000e+00> : vector<2x96xf32>
    %423 = tpu.matmul %371, %0, %cst_120 {dimension_numbers = #tpu.dot_dimension_numbers<[1], [0], [0], [1], [0, 0, 1, 1], [], []>} : vector<2x32xf32>, vector<32x96xf32>, vector<2x96xf32> -> vector<2x96xf32>
    %cst_121 = arith.constant dense<0.000000e+00> : vector<2x96xf32>
    %424 = tpu.matmul %399, %1, %cst_121 {dimension_numbers = #tpu.dot_dimension_numbers<[1], [0], [0], [1], [0, 0, 1, 1], [], []>} : vector<2x32xf32>, vector<32x96xf32>, vector<2x96xf32> -> vector<2x96xf32>
    %425 = vector.extract_strided_slice %419 {offsets = [0, 0], sizes = [2, 96], strides = [1, 1]} : vector<2x192xf32> to vector<2x96xf32>
    %426 = vector.extract_strided_slice %425 {offsets = [0, 0], sizes = [2, 32], strides = [1, 1]} : vector<2x96xf32> to vector<2x32xf32>
    %427 = vector.extract_strided_slice %423 {offsets = [0, 0], sizes = [2, 32], strides = [1, 1]} : vector<2x96xf32> to vector<2x32xf32>
    %428 = arith.addf %426, %427 : vector<2x32xf32>
    %429 = arith.negf %428 : vector<2x32xf32>
    %430 = math.exp %429 : vector<2x32xf32>
    %cst_122 = arith.constant 1.000000e+00 : f32
    %431 = vector.broadcast %cst_122 : f32 to vector<2x32xf32>
    %432 = arith.addf %431, %430 : vector<2x32xf32>
    %433 = arith.divf %431, %432 : vector<2x32xf32>
    %434 = vector.extract_strided_slice %425 {offsets = [0, 32], sizes = [2, 32], strides = [1, 1]} : vector<2x96xf32> to vector<2x32xf32>
    %435 = vector.extract_strided_slice %423 {offsets = [0, 32], sizes = [2, 32], strides = [1, 1]} : vector<2x96xf32> to vector<2x32xf32>
    %436 = arith.addf %434, %435 : vector<2x32xf32>
    %437 = arith.negf %436 : vector<2x32xf32>
    %438 = math.exp %437 : vector<2x32xf32>
    %cst_123 = arith.constant 1.000000e+00 : f32
    %439 = vector.broadcast %cst_123 : f32 to vector<2x32xf32>
    %440 = arith.addf %439, %438 : vector<2x32xf32>
    %441 = arith.divf %439, %440 : vector<2x32xf32>
    %442 = vector.extract_strided_slice %425 {offsets = [0, 64], sizes = [2, 32], strides = [1, 1]} : vector<2x96xf32> to vector<2x32xf32>
    %443 = vector.extract_strided_slice %423 {offsets = [0, 64], sizes = [2, 32], strides = [1, 1]} : vector<2x96xf32> to vector<2x32xf32>
    %444 = arith.addf %443, %4 : vector<2x32xf32>
    %445 = arith.mulf %433, %444 : vector<2x32xf32>
    %446 = arith.addf %442, %445 : vector<2x32xf32>
    %447 = math.tanh %446 : vector<2x32xf32>
    %cst_124 = arith.constant 1.000000e+00 : f32
    %448 = vector.broadcast %cst_124 : f32 to vector<2x32xf32>
    %449 = arith.subf %448, %441 : vector<2x32xf32>
    %450 = arith.mulf %449, %447 : vector<2x32xf32>
    %451 = arith.mulf %441, %371 : vector<2x32xf32>
    %452 = arith.addf %450, %451 : vector<2x32xf32>
    %453 = vector.extract_strided_slice %422 {offsets = [0, 96], sizes = [2, 96], strides = [1, 1]} : vector<2x192xf32> to vector<2x96xf32>
    %454 = vector.extract_strided_slice %453 {offsets = [0, 0], sizes = [2, 32], strides = [1, 1]} : vector<2x96xf32> to vector<2x32xf32>
    %455 = vector.extract_strided_slice %424 {offsets = [0, 0], sizes = [2, 32], strides = [1, 1]} : vector<2x96xf32> to vector<2x32xf32>
    %456 = arith.addf %454, %455 : vector<2x32xf32>
    %457 = arith.negf %456 : vector<2x32xf32>
    %458 = math.exp %457 : vector<2x32xf32>
    %cst_125 = arith.constant 1.000000e+00 : f32
    %459 = vector.broadcast %cst_125 : f32 to vector<2x32xf32>
    %460 = arith.addf %459, %458 : vector<2x32xf32>
    %461 = arith.divf %459, %460 : vector<2x32xf32>
    %462 = vector.extract_strided_slice %453 {offsets = [0, 32], sizes = [2, 32], strides = [1, 1]} : vector<2x96xf32> to vector<2x32xf32>
    %463 = vector.extract_strided_slice %424 {offsets = [0, 32], sizes = [2, 32], strides = [1, 1]} : vector<2x96xf32> to vector<2x32xf32>
    %464 = arith.addf %462, %463 : vector<2x32xf32>
    %465 = arith.negf %464 : vector<2x32xf32>
    %466 = math.exp %465 : vector<2x32xf32>
    %cst_126 = arith.constant 1.000000e+00 : f32
    %467 = vector.broadcast %cst_126 : f32 to vector<2x32xf32>
    %468 = arith.addf %467, %466 : vector<2x32xf32>
    %469 = arith.divf %467, %468 : vector<2x32xf32>
    %470 = vector.extract_strided_slice %453 {offsets = [0, 64], sizes = [2, 32], strides = [1, 1]} : vector<2x96xf32> to vector<2x32xf32>
    %471 = vector.extract_strided_slice %424 {offsets = [0, 64], sizes = [2, 32], strides = [1, 1]} : vector<2x96xf32> to vector<2x32xf32>
    %472 = arith.addf %471, %7 : vector<2x32xf32>
    %473 = arith.mulf %461, %472 : vector<2x32xf32>
    %474 = arith.addf %470, %473 : vector<2x32xf32>
    %475 = math.tanh %474 : vector<2x32xf32>
    %cst_127 = arith.constant 1.000000e+00 : f32
    %476 = vector.broadcast %cst_127 : f32 to vector<2x32xf32>
    %477 = arith.subf %476, %469 : vector<2x32xf32>
    %478 = arith.mulf %477, %475 : vector<2x32xf32>
    %479 = arith.mulf %469, %399 : vector<2x32xf32>
    %480 = arith.addf %478, %479 : vector<2x32xf32>
    %481 = arith.index_cast %c5_i32 : i32 to index
    %c0_128 = arith.constant 0 : index
    %c0_129 = arith.constant 0 : index
    %482 = vector.load %arg6[%481, %c0_128, %c0_129] : memref<8x2x32xf32, #tpu.memory_space<vmem>>, vector<1x2x32xf32>
    %483 = vector.shape_cast %482 : vector<1x2x32xf32> to vector<2x32xf32>
    %484 = arith.addf %483, %452 : vector<2x32xf32>
    %485 = arith.index_cast %c5_i32 : i32 to index
    %c0_130 = arith.constant 0 : index
    %c0_131 = arith.constant 0 : index
    %486 = vector.load %arg6[%485, %c0_130, %c0_131] : memref<8x2x32xf32, #tpu.memory_space<vmem>>, vector<1x2x32xf32>
    %487 = vector.shape_cast %486 : vector<1x2x32xf32> to vector<2x32xf32>
    %488 = vector.shape_cast %484 : vector<2x32xf32> to vector<1x2x32xf32>
    tpu.vector_store %arg6[%485, %c0_130, %c0_131], %488 {strides = array<i32>} : memref<8x2x32xf32, #tpu.memory_space<vmem>>, vector<1x2x32xf32>,
    %489 = arith.index_cast %416 : i32 to index
    %c0_132 = arith.constant 0 : index
    %c0_133 = arith.constant 0 : index
    %490 = vector.load %arg6[%489, %c0_132, %c0_133] : memref<8x2x32xf32, #tpu.memory_space<vmem>>, vector<1x2x32xf32>
    %491 = vector.shape_cast %490 : vector<1x2x32xf32> to vector<2x32xf32>
    %492 = arith.addf %491, %480 : vector<2x32xf32>
    %493 = arith.index_cast %416 : i32 to index
    %c0_134 = arith.constant 0 : index
    %c0_135 = arith.constant 0 : index
    %494 = vector.load %arg6[%493, %c0_134, %c0_135] : memref<8x2x32xf32, #tpu.memory_space<vmem>>, vector<1x2x32xf32>
    %495 = vector.shape_cast %494 : vector<1x2x32xf32> to vector<2x32xf32>
    %496 = vector.shape_cast %492 : vector<2x32xf32> to vector<1x2x32xf32>
    tpu.vector_store %arg6[%493, %c0_134, %c0_135], %496 {strides = array<i32>} : memref<8x2x32xf32, #tpu.memory_space<vmem>>, vector<1x2x32xf32>,
    %c6_i32 = arith.constant 6 : i32
    %c7_i32_136 = arith.constant 7 : i32
    %497 = arith.subi %c7_i32_136, %c6_i32 : i32
    %498 = arith.index_cast %c6_i32 : i32 to index
    %c0_137 = arith.constant 0 : index
    %c0_138 = arith.constant 0 : index
    %499 = vector.load %arg1[%498, %c0_137, %c0_138] : memref<8x2x192xf32, #tpu.memory_space<vmem>>, vector<1x2x192xf32>
    %500 = vector.shape_cast %499 : vector<1x2x192xf32> to vector<2x192xf32>
    %501 = arith.index_cast %497 : i32 to index
    %c0_139 = arith.constant 0 : index
    %c0_140 = arith.constant 0 : index
    %502 = vector.load %arg1[%501, %c0_139, %c0_140] : memref<8x2x192xf32, #tpu.memory_space<vmem>>, vector<1x2x192xf32>
    %503 = vector.shape_cast %502 : vector<1x2x192xf32> to vector<2x192xf32>
    %cst_141 = arith.constant dense<0.000000e+00> : vector<2x96xf32>
    %504 = tpu.matmul %452, %0, %cst_141 {dimension_numbers = #tpu.dot_dimension_numbers<[1], [0], [0], [1], [0, 0, 1, 1], [], []>} : vector<2x32xf32>, vector<32x96xf32>, vector<2x96xf32> -> vector<2x96xf32>
    %cst_142 = arith.constant dense<0.000000e+00> : vector<2x96xf32>
    %505 = tpu.matmul %480, %1, %cst_142 {dimension_numbers = #tpu.dot_dimension_numbers<[1], [0], [0], [1], [0, 0, 1, 1], [], []>} : vector<2x32xf32>, vector<32x96xf32>, vector<2x96xf32> -> vector<2x96xf32>
    %506 = vector.extract_strided_slice %500 {offsets = [0, 0], sizes = [2, 96], strides = [1, 1]} : vector<2x192xf32> to vector<2x96xf32>
    %507 = vector.extract_strided_slice %506 {offsets = [0, 0], sizes = [2, 32], strides = [1, 1]} : vector<2x96xf32> to vector<2x32xf32>
    %508 = vector.extract_strided_slice %504 {offsets = [0, 0], sizes = [2, 32], strides = [1, 1]} : vector<2x96xf32> to vector<2x32xf32>
    %509 = arith.addf %507, %508 : vector<2x32xf32>
    %510 = arith.negf %509 : vector<2x32xf32>
    %511 = math.exp %510 : vector<2x32xf32>
    %cst_143 = arith.constant 1.000000e+00 : f32
    %512 = vector.broadcast %cst_143 : f32 to vector<2x32xf32>
    %513 = arith.addf %512, %511 : vector<2x32xf32>
    %514 = arith.divf %512, %513 : vector<2x32xf32>
    %515 = vector.extract_strided_slice %506 {offsets = [0, 32], sizes = [2, 32], strides = [1, 1]} : vector<2x96xf32> to vector<2x32xf32>
    %516 = vector.extract_strided_slice %504 {offsets = [0, 32], sizes = [2, 32], strides = [1, 1]} : vector<2x96xf32> to vector<2x32xf32>
    %517 = arith.addf %515, %516 : vector<2x32xf32>
    %518 = arith.negf %517 : vector<2x32xf32>
    %519 = math.exp %518 : vector<2x32xf32>
    %cst_144 = arith.constant 1.000000e+00 : f32
    %520 = vector.broadcast %cst_144 : f32 to vector<2x32xf32>
    %521 = arith.addf %520, %519 : vector<2x32xf32>
    %522 = arith.divf %520, %521 : vector<2x32xf32>
    %523 = vector.extract_strided_slice %506 {offsets = [0, 64], sizes = [2, 32], strides = [1, 1]} : vector<2x96xf32> to vector<2x32xf32>
    %524 = vector.extract_strided_slice %504 {offsets = [0, 64], sizes = [2, 32], strides = [1, 1]} : vector<2x96xf32> to vector<2x32xf32>
    %525 = arith.addf %524, %4 : vector<2x32xf32>
    %526 = arith.mulf %514, %525 : vector<2x32xf32>
    %527 = arith.addf %523, %526 : vector<2x32xf32>
    %528 = math.tanh %527 : vector<2x32xf32>
    %cst_145 = arith.constant 1.000000e+00 : f32
    %529 = vector.broadcast %cst_145 : f32 to vector<2x32xf32>
    %530 = arith.subf %529, %522 : vector<2x32xf32>
    %531 = arith.mulf %530, %528 : vector<2x32xf32>
    %532 = arith.mulf %522, %452 : vector<2x32xf32>
    %533 = arith.addf %531, %532 : vector<2x32xf32>
    %534 = vector.extract_strided_slice %503 {offsets = [0, 96], sizes = [2, 96], strides = [1, 1]} : vector<2x192xf32> to vector<2x96xf32>
    %535 = vector.extract_strided_slice %534 {offsets = [0, 0], sizes = [2, 32], strides = [1, 1]} : vector<2x96xf32> to vector<2x32xf32>
    %536 = vector.extract_strided_slice %505 {offsets = [0, 0], sizes = [2, 32], strides = [1, 1]} : vector<2x96xf32> to vector<2x32xf32>
    %537 = arith.addf %535, %536 : vector<2x32xf32>
    %538 = arith.negf %537 : vector<2x32xf32>
    %539 = math.exp %538 : vector<2x32xf32>
    %cst_146 = arith.constant 1.000000e+00 : f32
    %540 = vector.broadcast %cst_146 : f32 to vector<2x32xf32>
    %541 = arith.addf %540, %539 : vector<2x32xf32>
    %542 = arith.divf %540, %541 : vector<2x32xf32>
    %543 = vector.extract_strided_slice %534 {offsets = [0, 32], sizes = [2, 32], strides = [1, 1]} : vector<2x96xf32> to vector<2x32xf32>
    %544 = vector.extract_strided_slice %505 {offsets = [0, 32], sizes = [2, 32], strides = [1, 1]} : vector<2x96xf32> to vector<2x32xf32>
    %545 = arith.addf %543, %544 : vector<2x32xf32>
    %546 = arith.negf %545 : vector<2x32xf32>
    %547 = math.exp %546 : vector<2x32xf32>
    %cst_147 = arith.constant 1.000000e+00 : f32
    %548 = vector.broadcast %cst_147 : f32 to vector<2x32xf32>
    %549 = arith.addf %548, %547 : vector<2x32xf32>
    %550 = arith.divf %548, %549 : vector<2x32xf32>
    %551 = vector.extract_strided_slice %534 {offsets = [0, 64], sizes = [2, 32], strides = [1, 1]} : vector<2x96xf32> to vector<2x32xf32>
    %552 = vector.extract_strided_slice %505 {offsets = [0, 64], sizes = [2, 32], strides = [1, 1]} : vector<2x96xf32> to vector<2x32xf32>
    %553 = arith.addf %552, %7 : vector<2x32xf32>
    %554 = arith.mulf %542, %553 : vector<2x32xf32>
    %555 = arith.addf %551, %554 : vector<2x32xf32>
    %556 = math.tanh %555 : vector<2x32xf32>
    %cst_148 = arith.constant 1.000000e+00 : f32
    %557 = vector.broadcast %cst_148 : f32 to vector<2x32xf32>
    %558 = arith.subf %557, %550 : vector<2x32xf32>
    %559 = arith.mulf %558, %556 : vector<2x32xf32>
    %560 = arith.mulf %550, %480 : vector<2x32xf32>
    %561 = arith.addf %559, %560 : vector<2x32xf32>
    %562 = arith.index_cast %c6_i32 : i32 to index
    %c0_149 = arith.constant 0 : index
    %c0_150 = arith.constant 0 : index
    %563 = vector.load %arg6[%562, %c0_149, %c0_150] : memref<8x2x32xf32, #tpu.memory_space<vmem>>, vector<1x2x32xf32>
    %564 = vector.shape_cast %563 : vector<1x2x32xf32> to vector<2x32xf32>
    %565 = arith.addf %564, %533 : vector<2x32xf32>
    %566 = arith.index_cast %c6_i32 : i32 to index
    %c0_151 = arith.constant 0 : index
    %c0_152 = arith.constant 0 : index
    %567 = vector.load %arg6[%566, %c0_151, %c0_152] : memref<8x2x32xf32, #tpu.memory_space<vmem>>, vector<1x2x32xf32>
    %568 = vector.shape_cast %567 : vector<1x2x32xf32> to vector<2x32xf32>
    %569 = vector.shape_cast %565 : vector<2x32xf32> to vector<1x2x32xf32>
    tpu.vector_store %arg6[%566, %c0_151, %c0_152], %569 {strides = array<i32>} : memref<8x2x32xf32, #tpu.memory_space<vmem>>, vector<1x2x32xf32>,
    %570 = arith.index_cast %497 : i32 to index
    %c0_153 = arith.constant 0 : index
    %c0_154 = arith.constant 0 : index
    %571 = vector.load %arg6[%570, %c0_153, %c0_154] : memref<8x2x32xf32, #tpu.memory_space<vmem>>, vector<1x2x32xf32>
    %572 = vector.shape_cast %571 : vector<1x2x32xf32> to vector<2x32xf32>
    %573 = arith.addf %572, %561 : vector<2x32xf32>
    %574 = arith.index_cast %497 : i32 to index
    %c0_155 = arith.constant 0 : index
    %c0_156 = arith.constant 0 : index
    %575 = vector.load %arg6[%574, %c0_155, %c0_156] : memref<8x2x32xf32, #tpu.memory_space<vmem>>, vector<1x2x32xf32>
    %576 = vector.shape_cast %575 : vector<1x2x32xf32> to vector<2x32xf32>
    %577 = vector.shape_cast %573 : vector<2x32xf32> to vector<1x2x32xf32>
    tpu.vector_store %arg6[%574, %c0_155, %c0_156], %577 {strides = array<i32>} : memref<8x2x32xf32, #tpu.memory_space<vmem>>, vector<1x2x32xf32>,
    %c7_i32_157 = arith.constant 7 : i32
    %c7_i32_158 = arith.constant 7 : i32
    %578 = arith.subi %c7_i32_158, %c7_i32_157 : i32
    %579 = arith.index_cast %c7_i32_157 : i32 to index
    %c0_159 = arith.constant 0 : index
    %c0_160 = arith.constant 0 : index
    %580 = vector.load %arg1[%579, %c0_159, %c0_160] : memref<8x2x192xf32, #tpu.memory_space<vmem>>, vector<1x2x192xf32>
    %581 = vector.shape_cast %580 : vector<1x2x192xf32> to vector<2x192xf32>
    %582 = arith.index_cast %578 : i32 to index
    %c0_161 = arith.constant 0 : index
    %c0_162 = arith.constant 0 : index
    %583 = vector.load %arg1[%582, %c0_161, %c0_162] : memref<8x2x192xf32, #tpu.memory_space<vmem>>, vector<1x2x192xf32>
    %584 = vector.shape_cast %583 : vector<1x2x192xf32> to vector<2x192xf32>
    %cst_163 = arith.constant dense<0.000000e+00> : vector<2x96xf32>
    %585 = tpu.matmul %533, %0, %cst_163 {dimension_numbers = #tpu.dot_dimension_numbers<[1], [0], [0], [1], [0, 0, 1, 1], [], []>} : vector<2x32xf32>, vector<32x96xf32>, vector<2x96xf32> -> vector<2x96xf32>
    %cst_164 = arith.constant dense<0.000000e+00> : vector<2x96xf32>
    %586 = tpu.matmul %561, %1, %cst_164 {dimension_numbers = #tpu.dot_dimension_numbers<[1], [0], [0], [1], [0, 0, 1, 1], [], []>} : vector<2x32xf32>, vector<32x96xf32>, vector<2x96xf32> -> vector<2x96xf32>
    %587 = vector.extract_strided_slice %581 {offsets = [0, 0], sizes = [2, 96], strides = [1, 1]} : vector<2x192xf32> to vector<2x96xf32>
    %588 = vector.extract_strided_slice %587 {offsets = [0, 0], sizes = [2, 32], strides = [1, 1]} : vector<2x96xf32> to vector<2x32xf32>
    %589 = vector.extract_strided_slice %585 {offsets = [0, 0], sizes = [2, 32], strides = [1, 1]} : vector<2x96xf32> to vector<2x32xf32>
    %590 = arith.addf %588, %589 : vector<2x32xf32>
    %591 = arith.negf %590 : vector<2x32xf32>
    %592 = math.exp %591 : vector<2x32xf32>
    %cst_165 = arith.constant 1.000000e+00 : f32
    %593 = vector.broadcast %cst_165 : f32 to vector<2x32xf32>
    %594 = arith.addf %593, %592 : vector<2x32xf32>
    %595 = arith.divf %593, %594 : vector<2x32xf32>
    %596 = vector.extract_strided_slice %587 {offsets = [0, 32], sizes = [2, 32], strides = [1, 1]} : vector<2x96xf32> to vector<2x32xf32>
    %597 = vector.extract_strided_slice %585 {offsets = [0, 32], sizes = [2, 32], strides = [1, 1]} : vector<2x96xf32> to vector<2x32xf32>
    %598 = arith.addf %596, %597 : vector<2x32xf32>
    %599 = arith.negf %598 : vector<2x32xf32>
    %600 = math.exp %599 : vector<2x32xf32>
    %cst_166 = arith.constant 1.000000e+00 : f32
    %601 = vector.broadcast %cst_166 : f32 to vector<2x32xf32>
    %602 = arith.addf %601, %600 : vector<2x32xf32>
    %603 = arith.divf %601, %602 : vector<2x32xf32>
    %604 = vector.extract_strided_slice %587 {offsets = [0, 64], sizes = [2, 32], strides = [1, 1]} : vector<2x96xf32> to vector<2x32xf32>
    %605 = vector.extract_strided_slice %585 {offsets = [0, 64], sizes = [2, 32], strides = [1, 1]} : vector<2x96xf32> to vector<2x32xf32>
    %606 = arith.addf %605, %4 : vector<2x32xf32>
    %607 = arith.mulf %595, %606 : vector<2x32xf32>
    %608 = arith.addf %604, %607 : vector<2x32xf32>
    %609 = math.tanh %608 : vector<2x32xf32>
    %cst_167 = arith.constant 1.000000e+00 : f32
    %610 = vector.broadcast %cst_167 : f32 to vector<2x32xf32>
    %611 = arith.subf %610, %603 : vector<2x32xf32>
    %612 = arith.mulf %611, %609 : vector<2x32xf32>
    %613 = arith.mulf %603, %533 : vector<2x32xf32>
    %614 = arith.addf %612, %613 : vector<2x32xf32>
    %615 = vector.extract_strided_slice %584 {offsets = [0, 96], sizes = [2, 96], strides = [1, 1]} : vector<2x192xf32> to vector<2x96xf32>
    %616 = vector.extract_strided_slice %615 {offsets = [0, 0], sizes = [2, 32], strides = [1, 1]} : vector<2x96xf32> to vector<2x32xf32>
    %617 = vector.extract_strided_slice %586 {offsets = [0, 0], sizes = [2, 32], strides = [1, 1]} : vector<2x96xf32> to vector<2x32xf32>
    %618 = arith.addf %616, %617 : vector<2x32xf32>
    %619 = arith.negf %618 : vector<2x32xf32>
    %620 = math.exp %619 : vector<2x32xf32>
    %cst_168 = arith.constant 1.000000e+00 : f32
    %621 = vector.broadcast %cst_168 : f32 to vector<2x32xf32>
    %622 = arith.addf %621, %620 : vector<2x32xf32>
    %623 = arith.divf %621, %622 : vector<2x32xf32>
    %624 = vector.extract_strided_slice %615 {offsets = [0, 32], sizes = [2, 32], strides = [1, 1]} : vector<2x96xf32> to vector<2x32xf32>
    %625 = vector.extract_strided_slice %586 {offsets = [0, 32], sizes = [2, 32], strides = [1, 1]} : vector<2x96xf32> to vector<2x32xf32>
    %626 = arith.addf %624, %625 : vector<2x32xf32>
    %627 = arith.negf %626 : vector<2x32xf32>
    %628 = math.exp %627 : vector<2x32xf32>
    %cst_169 = arith.constant 1.000000e+00 : f32
    %629 = vector.broadcast %cst_169 : f32 to vector<2x32xf32>
    %630 = arith.addf %629, %628 : vector<2x32xf32>
    %631 = arith.divf %629, %630 : vector<2x32xf32>
    %632 = vector.extract_strided_slice %615 {offsets = [0, 64], sizes = [2, 32], strides = [1, 1]} : vector<2x96xf32> to vector<2x32xf32>
    %633 = vector.extract_strided_slice %586 {offsets = [0, 64], sizes = [2, 32], strides = [1, 1]} : vector<2x96xf32> to vector<2x32xf32>
    %634 = arith.addf %633, %7 : vector<2x32xf32>
    %635 = arith.mulf %623, %634 : vector<2x32xf32>
    %636 = arith.addf %632, %635 : vector<2x32xf32>
    %637 = math.tanh %636 : vector<2x32xf32>
    %cst_170 = arith.constant 1.000000e+00 : f32
    %638 = vector.broadcast %cst_170 : f32 to vector<2x32xf32>
    %639 = arith.subf %638, %631 : vector<2x32xf32>
    %640 = arith.mulf %639, %637 : vector<2x32xf32>
    %641 = arith.mulf %631, %561 : vector<2x32xf32>
    %642 = arith.addf %640, %641 : vector<2x32xf32>
    %643 = arith.index_cast %c7_i32_157 : i32 to index
    %c0_171 = arith.constant 0 : index
    %c0_172 = arith.constant 0 : index
    %644 = vector.load %arg6[%643, %c0_171, %c0_172] : memref<8x2x32xf32, #tpu.memory_space<vmem>>, vector<1x2x32xf32>
    %645 = vector.shape_cast %644 : vector<1x2x32xf32> to vector<2x32xf32>
    %646 = arith.addf %645, %614 : vector<2x32xf32>
    %647 = arith.index_cast %c7_i32_157 : i32 to index
    %c0_173 = arith.constant 0 : index
    %c0_174 = arith.constant 0 : index
    %648 = vector.load %arg6[%647, %c0_173, %c0_174] : memref<8x2x32xf32, #tpu.memory_space<vmem>>, vector<1x2x32xf32>
    %649 = vector.shape_cast %648 : vector<1x2x32xf32> to vector<2x32xf32>
    %650 = vector.shape_cast %646 : vector<2x32xf32> to vector<1x2x32xf32>
    tpu.vector_store %arg6[%647, %c0_173, %c0_174], %650 {strides = array<i32>} : memref<8x2x32xf32, #tpu.memory_space<vmem>>, vector<1x2x32xf32>,
    %651 = arith.index_cast %578 : i32 to index
    %c0_175 = arith.constant 0 : index
    %c0_176 = arith.constant 0 : index
    %652 = vector.load %arg6[%651, %c0_175, %c0_176] : memref<8x2x32xf32, #tpu.memory_space<vmem>>, vector<1x2x32xf32>
    %653 = vector.shape_cast %652 : vector<1x2x32xf32> to vector<2x32xf32>
    %654 = arith.addf %653, %642 : vector<2x32xf32>
    %655 = arith.index_cast %578 : i32 to index
    %c0_177 = arith.constant 0 : index
    %c0_178 = arith.constant 0 : index
    %656 = vector.load %arg6[%655, %c0_177, %c0_178] : memref<8x2x32xf32, #tpu.memory_space<vmem>>, vector<1x2x32xf32>
    %657 = vector.shape_cast %656 : vector<1x2x32xf32> to vector<2x32xf32>
    %658 = vector.shape_cast %654 : vector<2x32xf32> to vector<1x2x32xf32>
    tpu.vector_store %arg6[%655, %c0_177, %c0_178], %658 {strides = array<i32>} : memref<8x2x32xf32, #tpu.memory_space<vmem>>, vector<1x2x32xf32>,
    %c8_i32 = arith.constant 8 : i32
    return
  }
  func.func @transform_0(%arg0: i32) -> (i32, i32, i32) {
    %c0_i32 = arith.constant 0 : i32
    %c0_i32_0 = arith.constant 0 : i32
    %c0_i32_1 = arith.constant 0 : i32
    return %c0_i32, %arg0, %c0_i32_0 : i32, i32, i32
  }
  func.func @transform_1(%arg0: i32) -> (i32, i32) {
    %c0_i32 = arith.constant 0 : i32
    %c0_i32_0 = arith.constant 0 : i32
    %c0_i32_1 = arith.constant 0 : i32
    return %c0_i32, %c0_i32_0 : i32, i32
  }
  func.func @transform_2(%arg0: i32) -> (i32, i32) {
    %c0_i32 = arith.constant 0 : i32
    %c0_i32_0 = arith.constant 0 : i32
    %c0_i32_1 = arith.constant 0 : i32
    return %c0_i32, %c0_i32_0 : i32, i32
  }
  func.func @transform_3(%arg0: i32) -> (i32, i32) {
    %c0_i32 = arith.constant 0 : i32
    %c0_i32_0 = arith.constant 0 : i32
    %c0_i32_1 = arith.constant 0 : i32
    return %c0_i32, %c0_i32_0 : i32, i32
  }
  func.func @transform_4(%arg0: i32) -> (i32, i32) {
    %c0_i32 = arith.constant 0 : i32
    %c0_i32_0 = arith.constant 0 : i32
    %c0_i32_1 = arith.constant 0 : i32
    return %c0_i32, %c0_i32_0 : i32, i32
  }
  func.func @transform_5(%arg0: i32) -> (i32, i32, i32) {
    %c0_i32 = arith.constant 0 : i32
    %c0_i32_0 = arith.constant 0 : i32
    %c0_i32_1 = arith.constant 0 : i32
    return %c0_i32, %arg0, %c0_i32_0 : i32, i32, i32
  }
}

</mosaic_0001>

<bundles_post_ra>
// kernel: input_module_forward.2
= control target key start
LH: loop header
LB: loop body
LE: loop exit
PB: predicated region body
PF: predicated region fallthrough
CT: control target
= control target key end

     0   :  { %s1788_s18 = smov 0   ;;  %s2068_s0 = inlined_call_operand.vmem [shape: s32[8,2,8], index: 0, kind: input, shape index: {}]   ;;  %s2069_s1 = inlined_call_operand.vmem [shape: f32[128,32], index: 1, kind: input, shape index: {}]   ;;  %s2070_s2 = inlined_call_operand.vmem [shape: f32[8,32], index: 2, kind: input, shape index: {}]   ;;  %s2071_s3 = inlined_call_operand.vmem [shape: f32[32,192], index: 3, kind: input, shape index: {}]   ;;  %s2072_s4 = inlined_call_operand.vmem [shape: f32[1,192], index: 4, kind: input, shape index: {}]   ;;  %s2073_s5 = inlined_call_operand.vmem [shape: f32[8,2,192], index: 5, kind: output, shape index: {}]  }
   0x1 LB: > { %s1063_s19 = sadd.s32 4294967295, %s1743_s18   ;;  %p1067_p0 = scmp.ge.s32.totalorder %s1743_s18, 1  ;;  %s1743_s18 = sphi %s1788_s18, %s15_s18  }
   0x2   : > { %p186_p1 = scmp.lt.s32.totalorder %s1743_s18, 9 }
   0x4   : > { %p187_p2 = pnand %p1067_p0, %p186_p1 }
   0x5   : > { %p213_p3 = scmp.lt.s32.totalorder (!%p187_p2), %s1063_s19, 7  ;;  %v223_v0 = vld [vmem:[%s2069_s1] sm:$0xff] (!%p187_p2)  ;;  %v1745_v1 = vmov (!%p187_p2), 0   ;;  %v1746_v2 = vmov (!%p187_p2), 2   ;;  %v224_v3 = vld [vmem:[%s2069_s1 + $0x8] sm:$0xff] (!%p187_p2)  ;;  %v225_v4 = vld [vmem:[%s2069_s1 + $0x10] sm:$0xff] (!%p187_p2)  ;;  %v240_v35 = vlaneseq (!%p187_p2) }
   0x6   : > { %190 = sbr.rel (%p187_p2) target bundleno = 683 (0x2ab), region = 40  ;;  %1728 = vset.pattern.permute.xlu0 (!%p187_p2), %v1745_v1  ;;  %1730 = vset.pattern.permute.xlu1 (!%p187_p2), %v1746_v2  ;;  %v1747_v5 = vmov (!%p187_p2), 0.0|0.0   ;;  %v1808_v6 = vpack.c.bf16 (!%p187_p2), %v224_v3, %v223_v0  ;;  %v226_v7 = vld [vmem:[%s2069_s1 + $0x18] sm:$0xff] (!%p187_p2)  ;;  %v227_v10 = vld [vmem:[%s2069_s1 + $0x20] sm:$0xff] (!%p187_p2)  ;;  %v228_v11 = vld [vmem:[%s2069_s1 + $0x28] sm:$0xff] (!%p187_p2)  ;;  %vm1748_vm0 = vmmov (!%p187_p2), 0  }
   0x7   : > { %1507 = vmatprep.subr.bf16.mxu0 (!%p187_p2), %v1747_v5  ;;  %1531 = vmatprep.subr.bf16.mxu1 (!%p187_p2), %v1747_v5  ;;  %v1816_v8 = vpack.c.bf16 (!%p187_p2), %v226_v7, %v225_v4  ;;  %v1833_v12 = vpack.c.bf16 (!%p187_p2), %v228_v11, %v227_v10  ;;  %v1749_v13 = vmov (!%p187_p2), 0.0   ;;  %v1750_v14 = vmov (!%p187_p2), 1   ;;  %v229_v16 = vld [vmem:[%s2069_s1 + $0x30] sm:$0xff] (!%p187_p2)  ;;  %v230_v17 = vld [vmem:[%s2069_s1 + $0x38] sm:$0xff] (!%p187_p2)  ;;  %v231_v19 = vld [vmem:[%s2069_s1 + $0x40] sm:$0xff] (!%p187_p2) }
   0x8   : > { %1509 = vmatpush3.bf16.msra.mxu0 (!%p187_p2), %v1808_v6  ;;  %1533 = vmatpush3.bf16.msra.mxu1 (!%p187_p2), %v1808_v6  ;;  %v1751_v15 = vmov (!%p187_p2), 3   ;;  %v1849_v18 = vpack.c.bf16 (!%p187_p2), %v230_v17, %v229_v16  ;;  %v232_v20 = vld [vmem:[%s2069_s1 + $0x48] sm:$0xff] (!%p187_p2)  ;;  %v1752_v21 = vmov (!%p187_p2), 4   ;;  %v1753_v22 = vmov (!%p187_p2), 5   ;;  %v233_v24 = vld [vmem:[%s2069_s1 + $0x50] sm:$0xff] (!%p187_p2)  ;;  %v234_v25 = vld [vmem:[%s2069_s1 + $0x58] sm:$0xff] (!%p187_p2) }
   0x9   : > { %1510 = vmatprep.subr.bf16.mxu0 (!%p187_p2), %v1747_v5  ;;  %1534 = vmatprep.subr.bf16.mxu1 (!%p187_p2), %v1747_v5  ;;  %v1859_v23 = vpack.c.bf16 (!%p187_p2), %v232_v20, %v231_v19  ;;  %v1754_v26 = vmov (!%p187_p2), 6   ;;  %v1755_v27 = vmov (!%p187_p2), 7   ;;  %v1871_v28 = vpack.c.bf16 (!%p187_p2), %v234_v25, %v233_v24  ;;  %v235_v29 = vld [vmem:[%s2069_s1 + $0x60] sm:$0xff] (!%p187_p2)  ;;  %v236_v30 = vld [vmem:[%s2069_s1 + $0x68] sm:$0xff] (!%p187_p2)  ;;  %v237_v32 = vld [vmem:[%s2069_s1 + $0x70] sm:$0xff] (!%p187_p2) }
   0xa   : > { %1259 = vmatprep.mubr.msk.f32.mxu0 (!%p187_p2), %vm1748_vm0, %v1749_v13  ;;  %1294 = vmatprep.mubr.msk.f32.mxu1 (!%p187_p2), %vm1748_vm0, %v1749_v13  ;;  %v1883_v31 = vpack.c.bf16 (!%p187_p2), %v236_v30, %v235_v29  ;;  %v238_v33 = vld [vmem:[%s2069_s1 + $0x78] sm:$0xff] (!%p187_p2)  ;;  %v1905_v36 = vand.u32 (!%p187_p2), 127, %v240_v35  ;;  %v1756_v38 = vmov (!%p187_p2), 1.0   ;;  %v899_v46 = vld [vmem:[%s2071_s3 + $0x8] sm:$0xff] (!%p187_p2)  ;;  %v898_v49 = vld [vmem:[%s2071_s3] sm:$0xff] (!%p187_p2)  ;;  %v319_v58 = vshrl.u32 (!%p187_p2), %v240_v35, 7 }
   0xb   : > { %v1895_v34 = vpack.c.bf16 (!%p187_p2), %v238_v33, %v237_v32  ;;  %v901_v47 = vld [vmem:[%s2071_s3 + $0x18] sm:$0xff] (!%p187_p2)  ;;  %v900_v50 = vld [vmem:[%s2071_s3 + $0x10] sm:$0xff] (!%p187_p2)  ;;  %v903_v52 = vld [vmem:[%s2071_s3 + $0x28] sm:$0xff] (!%p187_p2)  ;;  %vm918_vm9 = vcmask (!%p187_p2), 261120   ;;  %vm1004_vm10 = vcmask (!%p187_p2), 1041408   ;;  %vm1005_vm11 = vcmask (!%p187_p2), 519170  }
   0xc   : > { %1512 = vmatpush3.bf16.msra.mxu0 (!%p187_p2), %v1816_v8  ;;  %1536 = vmatpush3.bf16.msra.mxu1 (!%p187_p2), %v1816_v8  ;;  %v1699_v48 = vpack.c.bf16 (!%p187_p2), %v901_v47, %v899_v46  ;;  %v1701_v51 = vpack.c.bf16 (!%p187_p2), %v900_v50, %v898_v49  ;;  %v905_v53 = vld [vmem:[%s2071_s3 + $0x38] sm:$0xff] (!%p187_p2)  ;;  %v902_v55 = vld [vmem:[%s2071_s3 + $0x20] sm:$0xff] (!%p187_p2)  ;;  %v904_v56 = vld [vmem:[%s2071_s3 + $0x30] sm:$0xff] (!%p187_p2)  ;;  %v320_v59 = vsub.s32 (!%p187_p2), 0, %v319_v58  ;;  %v402_v60 = vsub.s32 (!%p187_p2), 1, %v319_v58 }
   0xd   : > { %s2075_s19 = smov (!%p213_p3, %s1063_s19), 7  ;;  %1513 = vmatprep.subr.bf16.mxu0 %v1747_v5  ;;  %1537 = vmatprep.subr.bf16.mxu1 %v1747_v5  ;;  %v1703_v54 = vpack.c.bf16 %v905_v53, %v903_v52  ;;  %v1705_v57 = vpack.c.bf16 %v904_v56, %v902_v55  ;;  %v239_v61 = vld [vmem:[%s2070_s2] sm:$0xff]  ;;  %v484_v7 = vsub.s32 2, %v319_v58  ;;  %v648_v19 = vsub.s32 4, %v319_v58  ;;  %vm1006_vm12 = vmor %vm1005_vm11, %vm1004_vm10 }
   0xe   : > { %s1068_s28 = sshll.u32 %s2075_s19, 1  ;;  %v321_v0 = vrot.slane %v239_v61, %v320_v59  ;;  %v403_v1 = vrot.slane %v239_v61, %v402_v60  ;;  %v894_v33 = vsub.s32 7, %v319_v58  ;;  %s1090_s30 = sshll.u32 %s2075_s19, 2 }
   0xf   : > { %s216_s6 = scalar_lea.vmem %s2068_s0, %s1068_s28  ;;  %v649_v20 = vrot.slane %v239_v61, %v648_v19  ;;  %s221_s8 = scalar_lea.vmem %s2073_s5, %s1090_s30 }
  0x10   : > { %v222_v9 = vld [vmem:[%s216_s6] sm:$0x3]  ;;  %1515 = vmatpush3.bf16.msra.mxu0 %v1833_v12  ;;  %1539 = vmatpush3.bf16.msra.mxu1 %v1833_v12 }
  0x11   : > { %243 = vperm.xlu0 %1728, %v222_v9   ;;  %407 = vperm.xlu1 %1730, %v222_v9  }
  0x12   : > { %1516 = vmatprep.subr.bf16.mxu0 %v1747_v5  ;;  %1540 = vmatprep.subr.bf16.mxu1 %v1747_v5 }
  0x14   : > { %1518 = vmatpush3.bf16.msra.mxu0 %v1849_v18  ;;  %1542 = vmatpush3.bf16.msra.mxu1 %v1849_v18 }
  0x15   : > { %1729 = vset.pattern.permute.xlu0 %v1750_v14  ;;  %1731 = vset.pattern.permute.xlu1 %v1751_v15 }
  0x16   : > { %325 = vperm.xlu0 %1729, %v222_v9   ;;  %489 = vperm.xlu1 %1731, %v222_v9  }
  0x17   : > { %1519 = vmatprep.subr.bf16.mxu0 %v1747_v5  ;;  %1543 = vmatprep.subr.bf16.mxu1 %v1747_v5 }
  0x18   : > { %1521 = vmatpush3.bf16.msra.mxu0 %v1859_v23  ;;  %1545 = vmatpush3.bf16.msra.mxu1 %v1859_v23 }
  0x19   : > { %1522 = vmatprep.subr.bf16.mxu0 %v1747_v5  ;;  %1546 = vmatprep.subr.bf16.mxu1 %v1747_v5 }
  0x1a   : > { %1732 = vset.pattern.permute.xlu1 %v1752_v21  ;;  %1733 = vset.pattern.permute.xlu0 %v1753_v22  ;;  %v730_v21 = vsub.s32 5, %v319_v58 }
  0x1b   : > { %571 = vperm.xlu1 %1732, %v222_v9   ;;  %653 = vperm.xlu0 %1733, %v222_v9  }
  0x1c   : > { %1524 = vmatpush3.bf16.msra.mxu0 %v1871_v28  ;;  %1548 = vmatpush3.bf16.msra.mxu1 %v1871_v28  ;;  %v731_v25 = vrot.slane %v239_v61, %v730_v21 }
  0x1d   : > { %1525 = vmatprep.subr.bf16.mxu0 %v1747_v5  ;;  %1549 = vmatprep.subr.bf16.mxu1 %v1747_v5 }
  0x1f   : > { %1734 = vset.pattern.permute.xlu1 %v1754_v26  ;;  %1736 = vset.pattern.permute.xlu0 %v1755_v27 }
  0x20   : > { %735 = vperm.xlu1 %1734, %v222_v9   ;;  %1527 = vmatpush3.bf16.msra.mxu0 %v1883_v31 }
  0x21   : > { %1528 = vmatprep.subr.bf16.mxu0 %v1747_v5  ;;  %1551 = vmatpush3.bf16.msra.mxu1 %v1883_v31 }
  0x22   : > { %1552 = vmatprep.subr.bf16.mxu1 %v1747_v5 }
  0x24   : > { %1735 = vset.pattern.permute.xlu1 %v1755_v27  ;;  %1530 = vmatpush3.bf16.msra.mxu0 %v1895_v34 }
  0x25   : > { %817 = vperm.xlu1 %1735, %v222_v9   ;;  %1555 = vmatprep.subr.bf16.mxu0 %v1747_v5  ;;  %v566_v9 = vsub.s32 3, %v319_v58 }
  0x26   : > { %1554 = vmatpush3.bf16.msra.mxu1 %v1895_v34 }
  0x27   : > { %1579 = vmatprep.subr.bf16.mxu1 %v1747_v5 }
  0x90   : > { %v244_v37 = vpop.permute.xlu0 %243  ;;  %v408_v40 = vpop.permute.xlu1 %407 }
  0x91   : > { %vm245_vm1 = vcmp.eq.s32.totalorder %v244_v37, %v1905_v36  ;;  %vm409_vm3 = vcmp.eq.s32.totalorder %v408_v40, %v1905_v36  ;;  %v895_v37 = vrot.slane %v239_v61, %v894_v33 }
  0x92   : > { %1260 = vmatmul.mubr.msk.f32.vlgmr.msra.gmra.mrb[0].mxu0 %vm245_vm1, %v1756_v38 }
  0x93   : > { %1557 = vmatpush3.bf16.msra.mxu0 %v1808_v6  ;;  %1329 = vmatprep.mubr.msk.f32.mxu0 %vm1748_vm0, %v1749_v13 }
  0x94   : > { %1558 = vmatprep.subr.bf16.mxu0 %v1747_v5 }
  0x95   : > { %v326_v39 = vpop.permute.xlu0 %325  ;;  %v490_v41 = vpop.permute.xlu1 %489 }
  0x96   : > { %vm327_vm2 = vcmp.eq.s32.totalorder %v326_v39, %v1905_v36  ;;  %vm491_vm4 = vcmp.eq.s32.totalorder %v490_v41, %v1905_v36 }
  0x97   : > { %1560 = vmatpush3.bf16.msra.mxu0 %v1816_v8  ;;  %1295 = vmatmul.mubr.msk.f32.vlgmr.msra.gmra.mrb[0].mxu1 %vm327_vm2, %v1756_v38 }
  0x98   : > { %1581 = vmatpush3.bf16.msra.mxu1 %v1808_v6  ;;  %1561 = vmatprep.subr.bf16.mxu0 %v1747_v5 }
  0x99   : > { %1582 = vmatprep.subr.bf16.mxu1 %v1747_v5  ;;  %1364 = vmatprep.mubr.msk.f32.mxu1 %vm1748_vm0, %v1749_v13 }
  0x9a   : > { %v572_v42 = vpop.permute.xlu1 %571  ;;  %v654_v43 = vpop.permute.xlu0 %653 }
  0x9b   : > { %1563 = vmatpush3.bf16.msra.mxu0 %v1833_v12  ;;  %vm573_vm5 = vcmp.eq.s32.totalorder %v572_v42, %v1905_v36  ;;  %vm655_vm6 = vcmp.eq.s32.totalorder %v654_v43, %v1905_v36  ;;  %v906_v43 = vld [vmem:[%s2072_s4] sm:$0x3] }
  0x9c   : > { %1584 = vmatpush3.bf16.msra.mxu1 %v1816_v8  ;;  %1564 = vmatprep.subr.bf16.mxu0 %v1747_v5  ;;  %v911_v46 = vrot.slane %v906_v43, %v320_v59  ;;  %v915_v47 = vrot.slane %v906_v43, %v402_v60 }
  0x9d   : > { %1585 = vmatprep.subr.bf16.mxu1 %v1747_v5 }
  0x9f   : > { %1566 = vmatpush3.bf16.msra.mxu0 %v1849_v18  ;;  %v736_v44 = vpop.permute.xlu1 %735 }
  0xa0   : > { %1587 = vmatpush3.bf16.msra.mxu1 %v1833_v12  ;;  %1567 = vmatprep.subr.bf16.mxu0 %v1747_v5  ;;  %vm737_vm7 = vcmp.eq.s32.totalorder %v736_v44, %v1905_v36  ;;  %v1757_v44 = vmov 1983009808  }
  0xa1   : > { %1588 = vmatprep.subr.bf16.mxu1 %v1747_v5 }
  0xa3   : > { %1569 = vmatpush3.bf16.msra.mxu0 %v1859_v23 }
  0xa4   : > { %1590 = vmatpush3.bf16.msra.mxu1 %v1849_v18  ;;  %1570 = vmatprep.subr.bf16.mxu0 %v1747_v5  ;;  %v818_v45 = vpop.permute.xlu1 %817 }
  0xa5   : > { %1591 = vmatprep.subr.bf16.mxu1 %v1747_v5  ;;  %vm819_vm8 = vcmp.eq.s32.totalorder %v818_v45, %v1905_v36  ;;  %v997_v45 = vunpack.c.l.s4 %v1757_v44 }
  0xa7   : > { %1572 = vmatpush3.bf16.msra.mxu0 %v1871_v28 }
  0xa8   : > { %1593 = vmatpush3.bf16.msra.mxu1 %v1859_v23  ;;  %1573 = vmatprep.subr.bf16.mxu0 %v1747_v5 }
  0xa9   : > { %1594 = vmatprep.subr.bf16.mxu1 %v1747_v5 }
  0xab   : > { %1575 = vmatpush3.bf16.msra.mxu0 %v1883_v31 }
  0xac   : > { %1596 = vmatpush3.bf16.msra.mxu1 %v1871_v28  ;;  %1576 = vmatprep.subr.bf16.mxu0 %v1747_v5 }
  0xad   : > { %1597 = vmatprep.subr.bf16.mxu1 %v1747_v5 }
  0xaf   : > { %1578 = vmatpush3.bf16.msra.mxu0 %v1895_v34 }
  0xb0   : > { %1599 = vmatpush3.bf16.msra.mxu1 %v1883_v31  ;;  %1603 = vmatprep.subr.bf16.mxu0 %v1747_v5 }
  0xb1   : > { %1600 = vmatprep.subr.bf16.mxu1 %v1747_v5 }
  0xb2   : > { %1330 = vmatmul.mubr.msk.f32.vlgmr.msra.gmra.mrb[2].mxu0 %vm409_vm3, %v1756_v38 }
  0xb3   : > { %1605 = vmatpush3.bf16.msra.mxu0 %v1808_v6  ;;  %1399 = vmatprep.mubr.msk.f32.mxu0 %vm1748_vm0, %v1749_v13 }
  0xb4   : > { %1602 = vmatpush3.bf16.msra.mxu1 %v1895_v34  ;;  %1606 = vmatprep.subr.bf16.mxu0 %v1747_v5 }
  0xb5   : > { %1627 = vmatprep.subr.bf16.mxu1 %v1747_v5 }
  0xb7   : > { %1365 = vmatmul.mubr.msk.f32.vlgmr.msra.gmra.mrb[2].mxu1 %vm491_vm4, %v1756_v38  ;;  %1608 = vmatpush3.bf16.msra.mxu0 %v1816_v8 }
  0xb8   : > { %1629 = vmatpush3.bf16.msra.mxu1 %v1808_v6  ;;  %1609 = vmatprep.subr.bf16.mxu0 %v1747_v5 }
  0xb9   : > { %1630 = vmatprep.subr.bf16.mxu1 %v1747_v5  ;;  %1434 = vmatprep.mubr.msk.f32.mxu1 %vm1748_vm0, %v1749_v13 }
  0xbb   : > { %1611 = vmatpush3.bf16.msra.mxu0 %v1833_v12 }
  0xbc   : > { %1632 = vmatpush3.bf16.msra.mxu1 %v1816_v8  ;;  %1612 = vmatprep.subr.bf16.mxu0 %v1747_v5 }
  0xbd   : > { %1633 = vmatprep.subr.bf16.mxu1 %v1747_v5 }
  0xbf   : > { %1614 = vmatpush3.bf16.msra.mxu0 %v1849_v18 }
  0xc0   : > { %1635 = vmatpush3.bf16.msra.mxu1 %v1833_v12  ;;  %1615 = vmatprep.subr.bf16.mxu0 %v1747_v5 }
  0xc1   : > { %1636 = vmatprep.subr.bf16.mxu1 %v1747_v5 }
  0xc3   : > { %1617 = vmatpush3.bf16.msra.mxu0 %v1859_v23 }
  0xc4   : > { %1638 = vmatpush3.bf16.msra.mxu1 %v1849_v18  ;;  %1618 = vmatprep.subr.bf16.mxu0 %v1747_v5 }
  0xc5   : > { %1639 = vmatprep.subr.bf16.mxu1 %v1747_v5 }
  0xc7   : > { %1620 = vmatpush3.bf16.msra.mxu0 %v1871_v28 }
  0xc8   : > { %1641 = vmatpush3.bf16.msra.mxu1 %v1859_v23  ;;  %1621 = vmatprep.subr.bf16.mxu0 %v1747_v5 }
  0xc9   : > { %1642 = vmatprep.subr.bf16.mxu1 %v1747_v5 }
  0xcb   : > { %1623 = vmatpush3.bf16.msra.mxu0 %v1883_v31 }
  0xcc   : > { %1644 = vmatpush3.bf16.msra.mxu1 %v1871_v28  ;;  %1624 = vmatprep.subr.bf16.mxu0 %v1747_v5 }
  0xcd   : > { %1645 = vmatprep.subr.bf16.mxu1 %v1747_v5 }
  0xcf   : > { %1626 = vmatpush3.bf16.msra.mxu0 %v1895_v34 }
  0xd0   : > { %1647 = vmatpush3.bf16.msra.mxu1 %v1883_v31  ;;  %1651 = vmatprep.subr.bf16.mxu0 %v1747_v5 }
  0xd1   : > { %1648 = vmatprep.subr.bf16.mxu1 %v1747_v5 }
  0xd2   : > { %1400 = vmatmul.mubr.msk.f32.vlgmr.msra.gmra.mrb[4].mxu0 %vm573_vm5, %v1756_v38 }
  0xd3   : > { %1653 = vmatpush3.bf16.msra.mxu0 %v1808_v6  ;;  %1469 = vmatprep.mubr.msk.f32.mxu0 %vm1748_vm0, %v1749_v13 }
  0xd4   : > { %1650 = vmatpush3.bf16.msra.mxu1 %v1895_v34  ;;  %1654 = vmatprep.subr.bf16.mxu0 %v1747_v5 }
  0xd5   : > { %1675 = vmatprep.subr.bf16.mxu1 %v1747_v5 }
  0xd7   : > { %1435 = vmatmul.mubr.msk.f32.vlgmr.msra.gmra.mrb[4].mxu1 %vm655_vm6, %v1756_v38  ;;  %1656 = vmatpush3.bf16.msra.mxu0 %v1816_v8 }
  0xd8   : > { %1677 = vmatpush3.bf16.msra.mxu1 %v1808_v6  ;;  %1657 = vmatprep.subr.bf16.mxu0 %v1747_v5 }
  0xd9   : > { %1678 = vmatprep.subr.bf16.mxu1 %v1747_v5  ;;  %1504 = vmatprep.mubr.msk.f32.mxu1 %vm1748_vm0, %v1749_v13 }
  0xdb   : > { %1659 = vmatpush3.bf16.msra.mxu0 %v1833_v12 }
  0xdc   : > { %1680 = vmatpush3.bf16.msra.mxu1 %v1816_v8  ;;  %1660 = vmatprep.subr.bf16.mxu0 %v1747_v5  ;;  %v485_v8 = vrot.slane %v239_v61, %v484_v7 }
  0xdd   : > { %1681 = vmatprep.subr.bf16.mxu1 %v1747_v5 }
  0xdf   : > { %1662 = vmatpush3.bf16.msra.mxu0 %v1849_v18 }
  0xe0   : > { %1683 = vmatpush3.bf16.msra.mxu1 %v1833_v12  ;;  %1663 = vmatprep.subr.bf16.mxu0 %v1747_v5 }
  0xe1   : > { %1684 = vmatprep.subr.bf16.mxu1 %v1747_v5 }
  0xe3   : > { %1665 = vmatpush3.bf16.msra.mxu0 %v1859_v23 }
  0xe4   : > { %1686 = vmatpush3.bf16.msra.mxu1 %v1849_v18  ;;  %1666 = vmatprep.subr.bf16.mxu0 %v1747_v5 }
  0xe5   : > { %1687 = vmatprep.subr.bf16.mxu1 %v1747_v5 }
  0xe7   : > { %1668 = vmatpush3.bf16.msra.mxu0 %v1871_v28 }
  0xe8   : > { %1689 = vmatpush3.bf16.msra.mxu1 %v1859_v23  ;;  %1669 = vmatprep.subr.bf16.mxu0 %v1747_v5 }
  0xe9   : > { %1690 = vmatprep.subr.bf16.mxu1 %v1747_v5 }
  0xeb   : > { %1671 = vmatpush3.bf16.msra.mxu0 %v1883_v31 }
  0xec   : > { %1692 = vmatpush3.bf16.msra.mxu1 %v1871_v28  ;;  %1672 = vmatprep.subr.bf16.mxu0 %v1747_v5 }
  0xed   : > { %1693 = vmatprep.subr.bf16.mxu1 %v1747_v5 }
  0xef   : > { %1674 = vmatpush3.bf16.msra.mxu0 %v1895_v34 }
  0xf0   : > { %1695 = vmatpush3.bf16.msra.mxu1 %v1883_v31  ;;  %1700 = vmatprep.subr.bf16.mxu0 %v1699_v48  ;;  %v812_v31 = vsub.s32 6, %v319_v58  ;;  %v998_v48 = vunpack.c.0.s8 %v997_v45 }
  0xf1   : > { %1696 = vmatprep.subr.bf16.mxu1 %v1747_v5 }
  0xf2   : > { %1470 = vmatmul.mubr.msk.f32.vlgmr.msra.gmra.mrb[6].mxu0 %vm737_vm7, %v1756_v38  ;;  %v813_v32 = vrot.slane %v239_v61, %v812_v31  ;;  %v1001_v53 = vsub.s32 %v998_v48, %v319_v58 }
  0xf3   : > { %986 = vmatprep.mubr.f32.mxu0 %v1749_v13  ;;  %1702 = vmatpush1.bf16.msra.mxu0 %v1701_v51  ;;  %v567_v13 = vrot.slane %v239_v61, %v566_v9 }
  0xf4   : > { %1698 = vmatpush3.bf16.msra.mxu1 %v1895_v34  ;;  %1704 = vmatprep.subr.bf16.mxu0 %v1703_v54 }
  0xf7   : > { %1505 = vmatmul.mubr.msk.f32.vlgmr.msra.gmra.mrb[6].mxu1 %vm819_vm8, %v1756_v38  ;;  %1706 = vmatpush1.bf16.msra.mxu0 %v1705_v57 }
 0x165   : > { %v314_v62 = vpop.f32.mrb[0].mxu0 }
 0x166   : > { %v1261_v63 = vpop.f32.mrb[1].mxu0  ;;  %v322_v3 = vmul.f32 %v321_v0, %v314_v62 }
 0x16a   : > { %v396_v2 = vpop.f32.mrb[0].mxu1 }
 0x16b   : > { %v404_v4 = vmul.f32 %v403_v1, %v396_v2  ;;  %v1296_v5 = vpop.f32.mrb[1].mxu1 }
 0x16d   : > { %v405_v6 = vadd.f32 %v404_v4, %v322_v3 }
 0x185   : > { %v478_v10 = vpop.f32.mrb[2].mxu0 }
 0x186   : > { %v486_v11 = vmul.f32 %v485_v8, %v478_v10  ;;  %v1331_v12 = vpop.f32.mrb[3].mxu0 }
 0x188   : > { %v487_v14 = vadd.f32 %v486_v11, %v405_v6 }
 0x18a   : > { %v560_v15 = vpop.f32.mrb[2].mxu1 }
 0x18b   : > { %v568_v16 = vmul.f32 %v567_v13, %v560_v15  ;;  %v1366_v17 = vpop.f32.mrb[3].mxu1 }
 0x18d   : > { %v569_v18 = vadd.f32 %v568_v16, %v487_v14 }
 0x1a5   : > { %v642_v22 = vpop.f32.mrb[4].mxu0 }
 0x1a6   : > { %v650_v23 = vmul.f32 %v649_v20, %v642_v22  ;;  %v1401_v24 = vpop.f32.mrb[5].mxu0 }
 0x1a8   : > { %v651_v26 = vadd.f32 %v650_v23, %v569_v18 }
 0x1aa   : > { %v724_v27 = vpop.f32.mrb[4].mxu1 }
 0x1ab   : > { %v732_v28 = vmul.f32 %v731_v25, %v724_v27  ;;  %v1436_v29 = vpop.f32.mrb[5].mxu1 }
 0x1ad   : > { %v733_v30 = vadd.f32 %v732_v28, %v651_v26 }
 0x1c5   : > { %v806_v34 = vpop.f32.mrb[6].mxu0 }
 0x1c6   : > { %v814_v35 = vmul.f32 %v813_v32, %v806_v34  ;;  %v1471_v36 = vpop.f32.mrb[7].mxu0 }
 0x1c8   : > { %v815_v38 = vadd.f32 %v814_v35, %v733_v30 }
 0x1ca   : > { %v888_v39 = vpop.f32.mrb[6].mxu1 }
 0x1cb   : > { %v896_v40 = vmul.f32 %v895_v37, %v888_v39  ;;  %v1506_v41 = vpop.f32.mrb[7].mxu1 }
 0x1cd   : > { %v897_v42 = vadd.f32 %v896_v40, %v815_v38 }
 0x1cf   : > { %1087 = vmatmul.mubr.msk.f32.vlgmr.msra.gmra.mrb[8].mxu0 %vm918_vm9, %v897_v42 }
 0x2a2   : > { %v988_v49 = vpop.f32.mrb[8].mxu0 }
 0x2a3   : > { %v989_v50 = vadd.f32 %v988_v49, %v911_v46  ;;  %v990_v51 = vpop.f32.mrb[9].mxu0 }
 0x2a4   : > { %v991_v52 = vadd.f32 %v990_v51, %v915_v47 }
 0x2a6   : > { %v995_v54 = vcombine.low %v989_v50, %v991_v52 }
 0x2a8   : > { %v1002_v55 = vrot.slane %v995_v54, %v1001_v53 }
 0x2aa   : > { %1007 = vst.msk [vmem:[%s221_s8] sm:$0xf] %vm1006_vm12, %v1002_v55 }
 0x2ab PF: > { %s15_s18 = sadd.s32 1, %s1743_s18  }
 0x2ac   : > { %p12_p4 = scmp.ge.s32.totalorder %s15_s18, 10  }
 0x2ae   :  { %14 = sbr.rel (!%p12_p4) target bundleno = 1 (0x1), region = 70 }

// kernel: input_module_forward.3
= control target key start
LH: loop header
LB: loop body
LE: loop exit
PB: predicated region body
PF: predicated region fallthrough
CT: control target
= control target key end

     0   :  { %v2665_v0 = vmov 0.0|0.0   ;;  %vm2666_vm0 = vmmov 0   ;;  %v2667_v4 = vmov 0.0   ;;  %s2668_s28 = smov 64   ;;  %v2669_v9 = vmov 1983009808   ;;  %s3231_s1 = inlined_call_operand.vmem [shape: f32[32,96], index: 1, kind: input, shape index: {}]   ;;  %s3232_s3 = inlined_call_operand.vmem [shape: f32[1,32], index: 3, kind: input, shape index: {}]   ;;  %s3233_s0 = inlined_call_operand.vmem [shape: f32[8,2,192], index: 0, kind: input, shape index: {}]   ;;  %s3234_s5 = inlined_call_operand.vmem [shape: f32[8,2,32], index: 5, kind: output, shape index: {}]   ;;  %s3235_s2 = inlined_call_operand.vmem [shape: f32[32,96], index: 2, kind: input, shape index: {}]   ;;  %s3236_s4 = inlined_call_operand.vmem [shape: f32[1,32], index: 4, kind: input, shape index: {}]  }
   0x1   :  { %2434 = vmatprep.subr.bf16.mxu0 %v2665_v0  ;;  %v20_v1 = vld [vmem:[%s3231_s1] sm:$0xff]  ;;  %v21_v2 = vld [vmem:[%s3231_s1 + $0x8] sm:$0xff]  ;;  %v22_v3 = vld [vmem:[%s3231_s1 + $0x10] sm:$0xff]  ;;  %2266 = vmatprep.mubr.msk.f32.mxu0 %vm2666_vm0, %v2667_v4  ;;  %v209_v10 = vunpack.c.l.s4 %v2669_v9  ;;  %v211_v11 = vlaneseq  ;;  %vm40_vm1 = vcmask 254976   ;;  %s2670_s20 = smov 96   ;;  %vm52_vm2 = vcmask 261120  }
   0x2   :  { %v2714_v5 = vpack.c.bf16 %v21_v2, %v20_v1  ;;  %v23_v6 = vld [vmem:[%s3231_s1 + $0x18] sm:$0xff]  ;;  %v2096_v7 = vld [vmem:[%s3232_s3] ss:$0 sm:$0xff]  ;;  %2440 = vmatprep.subr.bf16.mxu1 %v2665_v0  ;;  %2277 = vmatprep.mubr.msk.f32.mxu1 %vm2666_vm0, %v2667_v4  ;;  %41 = vst.msk [vmem:[%s3234_s5] sm:$0x3] %vm40_vm1, %v2667_v4  ;;  %v25_v41 = vld [vmem:[%s3235_s2 + $0x8] sm:$0xff] }
   0x3   :  { %203 = vrot.lane.b32.xlu0 %v2096_v7, %s2668_s28  ;;  %v2727_v8 = vpack.c.bf16 %v23_v6, %v22_v3  ;;  %v210_v12 = vunpack.c.0.s8 %v209_v10  ;;  %v212_v13 = vshrl.u32 %v211_v11, 7  ;;  %v49_v20 = vld [vmem:[%s3233_s0] sm:$0xf]  ;;  %42 = vst.msk [vmem:[%s3234_s5 + $0x2] sm:$0x3] %vm40_vm1, %v2667_v4  ;;  %v26_v42 = vld [vmem:[%s3235_s2 + $0x10] sm:$0xff] }
   0x4   :  { %2436 = vmatpush3.bf16.msra.mxu0 %v2714_v5  ;;  %43 = vst.msk [vmem:[%s3234_s5 + $0x4] sm:$0x3] %vm40_vm1, %v2667_v4  ;;  %44 = vst.msk [vmem:[%s3234_s5 + $0x6] sm:$0x3] %vm40_vm1, %v2667_v4  ;;  %v24_v40 = vld [vmem:[%s3235_s2] sm:$0xff]  ;;  %v27_v44 = vld [vmem:[%s3235_s2 + $0x18] sm:$0xff] }
   0x5   :  { %2437 = vmatprep.subr.bf16.mxu0 %v2665_v0  ;;  %v2741_v15 = vsub.s32 %v210_v12, %v212_v13  ;;  %45 = vst.msk [vmem:[%s3234_s5 + $0x8] sm:$0x3] %vm40_vm1, %v2667_v4  ;;  %46 = vst.msk [vmem:[%s3234_s5 + $0xa] sm:$0x3] %vm40_vm1, %v2667_v4  ;;  %v2816_v43 = vpack.c.bf16 %v25_v41, %v24_v40  ;;  %v2822_v45 = vpack.c.bf16 %v27_v44, %v26_v42  ;;  %v2104_v50 = vld [vmem:[%s3233_s0 + $0x4] sm:$0xf] }
   0x6   :  { %47 = vst.msk [vmem:[%s3234_s5 + $0xc] sm:$0x3] %vm40_vm1, %v2667_v4  ;;  %48 = vst.msk [vmem:[%s3234_s5 + $0xe] sm:$0x3] %vm40_vm1, %v2667_v4  ;;  %v2097_v63 = vld [vmem:[%s3236_s4] ss:$0 sm:$0xff] }
   0x7   :  { %2442 = vmatpush3.bf16.msra.mxu1 %v2816_v43  ;;  %s2671_s4 = smov 32  }
   0x8   :  { %2439 = vmatpush3.bf16.msra.mxu0 %v2727_v8  ;;  %2443 = vmatprep.subr.bf16.mxu1 %v2665_v0 }
   0x9   :  { %2446 = vmatprep.subr.bf16.mxu0 %v2665_v0  ;;  %v291_v37 = vld [vmem:[%s3234_s5] sm:$0x3] }
   0xb   :  { %2267 = vmatmul.mubr.f32.vlgmr.msra.gmra.mrb[0].mxu0 %v2667_v4  ;;  %2445 = vmatpush3.bf16.msra.mxu1 %v2822_v45 }
   0xc   :  { %2448 = vmatpush3.bf16.msra.mxu0 %v2714_v5  ;;  %2288 = vmatprep.mubr.msk.f32.mxu0 %vm2666_vm0, %v2667_v4 }
   0xd   :  { %2449 = vmatprep.subr.bf16.mxu0 %v2665_v0  ;;  %2452 = vmatprep.subr.bf16.mxu1 %v2665_v0  ;;  %v2102_v42 = vld [vmem:[%s3234_s5 + $0xe] sm:$0x3] }
   0xe   :  { %2278 = vmatmul.mubr.f32.vlgmr.msra.gmra.mrb[0].mxu1 %v2667_v4 }
   0xf   :  { %2454 = vmatpush3.bf16.msra.mxu1 %v2816_v43  ;;  %2299 = vmatprep.mubr.msk.f32.mxu1 %vm2666_vm0, %v2667_v4 }
  0x10   :  { %2451 = vmatpush3.bf16.msra.mxu0 %v2727_v8  ;;  %2455 = vmatprep.subr.bf16.mxu1 %v2665_v0 }
  0x11   :  { %2458 = vmatprep.subr.bf16.mxu0 %v2665_v0 }
  0x13   :  { %2457 = vmatpush3.bf16.msra.mxu1 %v2822_v45 }
  0x14   :  { %2464 = vmatprep.subr.bf16.mxu1 %v2665_v0 }
  0x75   :  { %v2739_v14 = vpop.permute.xlu0 %203 }
  0xde   :  { %v122_v16 = vpop.f32.mrb[0].mxu0 }
  0xdf   :  { %v206_v17 = vadd.f32 %v2739_v14, %v122_v16  ;;  %v2268_v18 = vpop.f32.mrb[1].mxu0  ;;  %v196_v21 = vadd.f32 %v122_v16, %v49_v20  ;;  %v2098_v16 = vld [vmem:[%s3233_s0 + $0x1c] sm:$0xf] }
  0xe1   :  { %v214_v19 = vrot.slane %v206_v17, %v2741_v15  ;;  %v2099_v22 = vmul.f32 -1.442695, %v196_v21  ;;  %v192_v60 = vpop.f32.mrb[0].mxu1  ;;  %v2111_v17 = vld [vmem:[%s3234_s5 + $0x2] sm:$0x3] }
  0xe2   :  { %v2279_v61 = vpop.f32.mrb[1].mxu1  ;;  %v240_v12 = vrot.slane %v192_v60, %v2741_v15 }
  0xe3   :  { %215 = vrot.lane.b32.xlu0 %v214_v19, %s2668_s28  ;;  %2537 = vpow2.f32 %v2099_v22 }
  0xed   :  { %v2538_v23 = vpop.eup %2537 }
  0xee   :  { %v200_v24 = vadd.f32 1.0, %v2538_v23 }
  0xf0   :  { %2539 = vrcp.f32 %v200_v24 }
  0xfa   :  { %v2540_v25 = vpop.eup %2539 }
  0xfb   :  { %v225_v31 = vsub.f32 1.0, %v2540_v25  ;;  %v231_v33 = vmul.f32 0.0, %v2540_v25 }
 0x155   :  { %v216_v26 = vpop.permute.xlu0 %215 }
 0x156   :  { %v218_v27 = vmul.f32 %v2540_v25, %v216_v26 }
 0x158   :  { %220 = vrot.lane.b32.xlu1 %v218_v27, %s2668_s28 }
 0x1ca   :  { %v221_v28 = vpop.permute.xlu1 %220 }
 0x1cb   :  { %v223_v29 = vadd.f32 %v221_v28, %v49_v20  ;;  %v252_v28 = vrot.slane %v2098_v16, 2 }
 0x1cd   :  { %2541 = vtanh.f32 %v223_v29 }
 0x1d7   :  { %v2542_v30 = vpop.eup %2541 }
 0x1d8   :  { %227 = vrot.lane.b32.xlu1 %v2542_v30, %s2670_s20 }
 0x24a   :  { %v228_v32 = vpop.permute.xlu1 %227 }
 0x24b   :  { %v230_v34 = vmul.f32 %v228_v32, %v225_v31 }
 0x24d   :  { %v232_v35 = vadd.f32 %v231_v33, %v230_v34 }
 0x24f   :  { %v299_v36 = vrot.slane %v232_v35, %v2741_v15 }
 0x251   :  { %300 = vrot.lane.b32.xlu0 %v299_v36, %s2670_s20 }
 0x2c3   :  { %v301_v38 = vpop.permute.xlu0 %300 }
 0x2c4   :  { %v303_v39 = vadd.f32 %v301_v38, %v291_v37  ;;  %2289 = vmatmul.mubr.msk.f32.vlgmr.msra.gmra.mrb[2].mxu0 %vm52_vm2, %v301_v38 }
 0x2c5   :  { %2460 = vmatpush3.bf16.msra.mxu0 %v2714_v5  ;;  %2310 = vmatprep.mubr.msk.f32.mxu0 %vm2666_vm0, %v2667_v4 }
 0x2c6   :  { %304 = vst.msk [vmem:[%s3234_s5] sm:$0x3] %vm40_vm1, %v303_v39  ;;  %2461 = vmatprep.subr.bf16.mxu0 %v2665_v0 }
 0x2c9   :  { %2463 = vmatpush3.bf16.msra.mxu0 %v2727_v8 }
 0x2ca   :  { %2470 = vmatprep.subr.bf16.mxu0 %v2665_v0 }
 0x397   :  { %v381_v46 = vpop.f32.mrb[2].mxu0 }
 0x398   :  { %v465_v47 = vadd.f32 %v381_v46, %v2739_v14  ;;  %v2290_v48 = vpop.f32.mrb[3].mxu0  ;;  %v458_v51 = vadd.f32 %v2104_v50, %v381_v46 }
 0x39a   :  { %v473_v49 = vrot.slane %v465_v47, %v2741_v15  ;;  %v2108_v52 = vmul.f32 -1.442695, %v458_v51  ;;  %v2115_v51 = vld [vmem:[%s3233_s0 + $0x8] sm:$0xf] }
 0x39c   :  { %474 = vrot.lane.b32.xlu1 %v473_v49, %s2668_s28  ;;  %2543 = vpow2.f32 %v2108_v52 }
 0x3a6   :  { %v2544_v53 = vpop.eup %2543 }
 0x3a7   :  { %v462_v54 = vadd.f32 1.0, %v2544_v53 }
 0x3a9   :  { %2545 = vrcp.f32 %v462_v54 }
 0x3b3   :  { %v2546_v55 = vpop.eup %2545 }
 0x3b4   :  { %v484_v1 = vsub.f32 1.0, %v2546_v55  ;;  %v490_v3 = vmul.f32 %v2546_v55, %v232_v35 }
 0x40e   :  { %v475_v56 = vpop.permute.xlu1 %474 }
 0x40f   :  { %v477_v57 = vmul.f32 %v2546_v55, %v475_v56 }
 0x411   :  { %479 = vrot.lane.b32.xlu0 %v477_v57, %s2668_s28 }
 0x483   :  { %v480_v58 = vpop.permute.xlu0 %479 }
 0x484   :  { %v482_v59 = vadd.f32 %v2104_v50, %v480_v58 }
 0x486   :  { %2547 = vtanh.f32 %v482_v59 }
 0x490   :  { %v2548_v62 = vpop.eup %2547 }
 0x491   :  { %486 = vrot.lane.b32.xlu1 %v2548_v62, %s2670_s20 }
 0x495   :  { %261 = vrot.lane.b32.xlu1 %v2097_v63, %s2668_s28 }
 0x503   :  { %v487_v2 = vpop.permute.xlu1 %486 }
 0x504   :  { %v489_v6 = vmul.f32 %v487_v2, %v484_v1 }
 0x506   :  { %v2846_v7 = vadd.f32 %v490_v3, %v489_v6  ;;  %v2105_v6 = vld [vmem:[%s3233_s0 + $0x18] sm:$0xf] }
 0x507   :  { %v2848_v9 = vpop.permute.xlu1 %261 }
 0x508   :  { %v556_v10 = vrot.slane %v2846_v7, %v2741_v15  ;;  %v264_v11 = vadd.f32 %v2848_v9, %v192_v60 }
 0x50a   :  { %557 = vrot.lane.b32.xlu0 %v556_v10, %s2670_s20  ;;  %v272_v13 = vrot.slane %v264_v11, %v2741_v15 }
 0x50c   :  { %273 = vrot.lane.b32.xlu1 %v272_v13, %s2671_s4 }
 0x50e   :  { %241 = vrot.lane.b32.xlu0 %v240_v12, %s2670_s20 }
 0x512   :  { %277 = vrot.lane.b32.xlu0 %v2098_v16, %s2670_s20 }
 0x57c   :  { %v558_v18 = vpop.permute.xlu0 %557 }
 0x57d   :  { %v560_v19 = vadd.f32 %v2111_v17, %v558_v18  ;;  %2311 = vmatmul.mubr.msk.f32.vlgmr.msra.gmra.mrb[4].mxu0 %vm52_vm2, %v558_v18 }
 0x57e   :  { %2472 = vmatpush3.bf16.msra.mxu0 %v2714_v5  ;;  %2332 = vmatprep.mubr.msk.f32.mxu0 %vm2666_vm0, %v2667_v4  ;;  %v274_v25 = vpop.permute.xlu1 %273 }
 0x57f   :  { %2112 = vst.msk [vmem:[%s3234_s5 + $0x2] sm:$0x3] %vm40_vm1, %v560_v19  ;;  %2473 = vmatprep.subr.bf16.mxu0 %v2665_v0 }
 0x580   :  { %v242_v20 = vpop.permute.xlu0 %241 }
 0x581   :  { %v244_v21 = vadd.f32 %v2098_v16, %v242_v20  ;;  %v254_v29 = vadd.f32 %v252_v28, %v242_v20 }
 0x582   :  { %2475 = vmatpush3.bf16.msra.mxu0 %v2727_v8 }
 0x583   :  { %v2100_v22 = vmul.f32 -1.442695, %v244_v21  ;;  %2482 = vmatprep.subr.bf16.mxu0 %v2665_v0  ;;  %v2101_v30 = vmul.f32 -1.442695, %v254_v29  ;;  %v2122_v29 = vld [vmem:[%s3234_s5 + $0x4] sm:$0x3] }
 0x584   :  { %v278_v33 = vpop.permute.xlu0 %277 }
 0x585   :  { %2549 = vpow2.f32 %v2100_v22  ;;  %v279_v34 = vrot.slane %v278_v33, 2 }
 0x58f   :  { %v2550_v23 = vpop.eup %2549 }
 0x590   :  { %v248_v24 = vadd.f32 1.0, %v2550_v23 }
 0x592   :  { %2551 = vrcp.f32 %v248_v24 }
 0x593   :  { %2553 = vpow2.f32 %v2101_v30 }
 0x59c   :  { %v2552_v26 = vpop.eup %2551 }
 0x59d   :  { %v276_v27 = vmul.f32 %v2552_v26, %v274_v25  ;;  %v2554_v31 = vpop.eup %2553  ;;  %v511_v26 = vrot.slane %v2105_v6, 2 }
 0x59e   :  { %v258_v32 = vadd.f32 1.0, %v2554_v31 }
 0x59f   :  { %282 = vrot.lane.b32.xlu1 %v276_v27, %s2671_s4 }
 0x5a0   :  { %2555 = vrcp.f32 %v258_v32 }
 0x5aa   :  { %v2556_v37 = vpop.eup %2555 }
 0x5ab   :  { %v287_v38 = vsub.f32 1.0, %v2556_v37  ;;  %v289_v39 = vmul.f32 0.0, %v2556_v37 }
 0x611   :  { %v283_v35 = vpop.permute.xlu1 %282 }
 0x612   :  { %v285_v36 = vadd.f32 %v283_v35, %v279_v34 }
 0x614   :  { %2557 = vtanh.f32 %v285_v36 }
 0x61e   :  { %v2558_v40 = vpop.eup %2557 }
 0x61f   :  { %v288_v41 = vmul.f32 %v2558_v40, %v287_v38 }
 0x621   :  { %v2880_v44 = vadd.f32 %v289_v39, %v288_v41 }
 0x623   :  { %v307_v46 = vadd.f32 %v2102_v42, %v2880_v44  ;;  %2300 = vmatmul.mubr.msk.f32.vlgmr.msra.gmra.mrb[2].mxu1 %vm52_vm2, %v2880_v44  ;;  %v2113_v42 = vld [vmem:[%s3234_s5 + $0xc] sm:$0x3] }
 0x624   :  { %2466 = vmatpush3.bf16.msra.mxu1 %v2816_v43  ;;  %2321 = vmatprep.mubr.msk.f32.mxu1 %vm2666_vm0, %v2667_v4 }
 0x625   :  { %2103 = vst.msk [vmem:[%s3234_s5 + $0xe] sm:$0x3] %vm40_vm1, %v307_v46  ;;  %2467 = vmatprep.subr.bf16.mxu1 %v2665_v0 }
 0x628   :  { %2469 = vmatpush3.bf16.msra.mxu1 %v2822_v45 }
 0x629   :  { %2476 = vmatprep.subr.bf16.mxu1 %v2665_v0 }
 0x650   :  { %v638_v47 = vpop.f32.mrb[4].mxu0 }
 0x651   :  { %v722_v48 = vadd.f32 %v638_v47, %v2739_v14  ;;  %v2312_v49 = vpop.f32.mrb[5].mxu0  ;;  %v715_v52 = vadd.f32 %v2115_v51, %v638_v47 }
 0x653   :  { %v730_v50 = vrot.slane %v722_v48, %v2741_v15  ;;  %v2119_v53 = vmul.f32 -1.442695, %v715_v52 }
 0x655   :  { %731 = vrot.lane.b32.xlu0 %v730_v50, %s2668_s28  ;;  %2559 = vpow2.f32 %v2119_v53 }
 0x65f   :  { %v2560_v54 = vpop.eup %2559 }
 0x660   :  { %v719_v55 = vadd.f32 1.0, %v2560_v54  ;;  %v2126_v54 = vld [vmem:[%s3233_s0 + $0xc] sm:$0xf] }
 0x662   :  { %2561 = vrcp.f32 %v719_v55 }
 0x66c   :  { %v2562_v56 = vpop.eup %2561 }
 0x66d   :  { %v741_v20 = vsub.f32 1.0, %v2562_v56  ;;  %v747_v22 = vmul.f32 %v2562_v56, %v2846_v7 }
 0x6c7   :  { %v732_v57 = vpop.permute.xlu0 %731 }
 0x6c8   :  { %v734_v58 = vmul.f32 %v2562_v56, %v732_v57 }
 0x6ca   :  { %736 = vrot.lane.b32.xlu1 %v734_v58, %s2668_s28 }
 0x6f6   :  { %v454_v59 = vpop.f32.mrb[2].mxu1 }
 0x6f7   :  { %v499_v60 = vrot.slane %v454_v59, %v2741_v15  ;;  %v520_v61 = vadd.f32 %v454_v59, %v2848_v9  ;;  %v2301_v62 = vpop.f32.mrb[3].mxu1 }
 0x6f9   :  { %500 = vrot.lane.b32.xlu1 %v499_v60, %s2670_s20  ;;  %v528_v63 = vrot.slane %v520_v61, %v2741_v15 }
 0x6fd   :  { %529 = vrot.lane.b32.xlu1 %v528_v63, %s2671_s4 }
 0x73c   :  { %v737_v1 = vpop.permute.xlu1 %736 }
 0x73d   :  { %v739_v2 = vadd.f32 %v2115_v51, %v737_v1  ;;  %v2116_v1 = vld [vmem:[%s3233_s0 + $0x14] sm:$0xf] }
 0x73f   :  { %2563 = vtanh.f32 %v739_v2 }
 0x749   :  { %v2564_v3 = vpop.eup %2563 }
 0x74a   :  { %743 = vrot.lane.b32.xlu0 %v2564_v3, %s2670_s20 }
 0x76b   :  { %v501_v10 = vpop.permute.xlu1 %500 }
 0x76c   :  { %v503_v11 = vadd.f32 %v2105_v6, %v501_v10  ;;  %v513_v27 = vadd.f32 %v511_v26, %v501_v10 }
 0x76e   :  { %v2109_v12 = vmul.f32 -1.442695, %v503_v11  ;;  %v2110_v28 = vmul.f32 -1.442695, %v513_v27 }
 0x76f   :  { %v530_v18 = vpop.permute.xlu1 %529 }
 0x770   :  { %2565 = vpow2.f32 %v2109_v12 }
 0x77a   :  { %v2566_v13 = vpop.eup %2565 }
 0x77b   :  { %v507_v16 = vadd.f32 1.0, %v2566_v13 }
 0x77d   :  { %2567 = vrcp.f32 %v507_v16 }
 0x77e   :  { %2569 = vpow2.f32 %v2110_v28 }
 0x787   :  { %v2568_v17 = vpop.eup %2567 }
 0x788   :  { %v532_v19 = vmul.f32 %v2568_v17, %v530_v18  ;;  %v2570_v30 = vpop.eup %2569 }
 0x789   :  { %v517_v32 = vadd.f32 1.0, %v2570_v30 }
 0x78a   :  { %538 = vrot.lane.b32.xlu1 %v532_v19, %s2671_s4 }
 0x78b   :  { %2571 = vrcp.f32 %v517_v32 }
 0x795   :  { %v2572_v37 = vpop.eup %2571 }
 0x796   :  { %v543_v38 = vsub.f32 1.0, %v2572_v37  ;;  %v545_v41 = vmul.f32 %v2572_v37, %v2880_v44 }
 0x7bc   :  { %v744_v21 = vpop.permute.xlu0 %743 }
 0x7bd   :  { %v746_v23 = vmul.f32 %v744_v21, %v741_v20  ;;  %v768_v20 = vrot.slane %v2116_v1, 2 }
 0x7bf   :  { %v2913_v24 = vadd.f32 %v747_v22, %v746_v23 }
 0x7c1   :  { %v813_v25 = vrot.slane %v2913_v24, %v2741_v15 }
 0x7c3   :  { %814 = vrot.lane.b32.xlu0 %v813_v25, %s2670_s20 }
 0x7c7   :  { %533 = vrot.lane.b32.xlu0 %v2105_v6, %s2670_s20 }
 0x7fc   :  { %v539_v35 = vpop.permute.xlu1 %538 }
 0x835   :  { %v815_v7 = vpop.permute.xlu0 %814 }
 0x836   :  { %v817_v31 = vadd.f32 %v2122_v29, %v815_v7  ;;  %2333 = vmatmul.mubr.msk.f32.vlgmr.msra.gmra.mrb[6].mxu0 %vm52_vm2, %v815_v7 }
 0x837   :  { %2484 = vmatpush3.bf16.msra.mxu0 %v2714_v5  ;;  %2354 = vmatprep.mubr.msk.f32.mxu0 %vm2666_vm0, %v2667_v4 }
 0x838   :  { %2123 = vst.msk [vmem:[%s3234_s5 + $0x4] sm:$0x3] %vm40_vm1, %v817_v31  ;;  %2485 = vmatprep.subr.bf16.mxu0 %v2665_v0 }
 0x839   :  { %v534_v33 = vpop.permute.xlu0 %533 }
 0x83a   :  { %v535_v34 = vrot.slane %v534_v33, 2 }
 0x83b   :  { %2487 = vmatpush3.bf16.msra.mxu0 %v2727_v8 }
 0x83c   :  { %v541_v36 = vadd.f32 %v539_v35, %v535_v34  ;;  %2494 = vmatprep.subr.bf16.mxu0 %v2665_v0 }
 0x83e   :  { %2573 = vtanh.f32 %v541_v36 }
 0x848   :  { %v2574_v39 = vpop.eup %2573 }
 0x849   :  { %v544_v40 = vmul.f32 %v2574_v39, %v543_v38 }
 0x84b   :  { %v2937_v46 = vadd.f32 %v545_v41, %v544_v40 }
 0x84d   :  { %v564_v47 = vadd.f32 %v2113_v42, %v2937_v46  ;;  %2322 = vmatmul.mubr.msk.f32.vlgmr.msra.gmra.mrb[4].mxu1 %vm52_vm2, %v2937_v46  ;;  %v2133_v42 = vld [vmem:[%s3234_s5 + $0x6] sm:$0x3] }
 0x84e   :  { %2478 = vmatpush3.bf16.msra.mxu1 %v2816_v43  ;;  %2343 = vmatprep.mubr.msk.f32.mxu1 %vm2666_vm0, %v2667_v4 }
 0x84f   :  { %2114 = vst.msk [vmem:[%s3234_s5 + $0xc] sm:$0x3] %vm40_vm1, %v564_v47  ;;  %2479 = vmatprep.subr.bf16.mxu1 %v2665_v0 }
 0x852   :  { %2481 = vmatpush3.bf16.msra.mxu1 %v2822_v45 }
 0x853   :  { %2488 = vmatprep.subr.bf16.mxu1 %v2665_v0 }
 0x909   :  { %v895_v44 = vpop.f32.mrb[6].mxu0 }
 0x90a   :  { %v979_v48 = vadd.f32 %v895_v44, %v2739_v14  ;;  %v2334_v49 = vpop.f32.mrb[7].mxu0  ;;  %v972_v55 = vadd.f32 %v2126_v54, %v895_v44 }
 0x90c   :  { %v987_v50 = vrot.slane %v979_v48, %v2741_v15  ;;  %v2130_v56 = vmul.f32 -1.442695, %v972_v55 }
 0x90e   :  { %988 = vrot.lane.b32.xlu0 %v987_v50, %s2668_s28  ;;  %2575 = vpow2.f32 %v2130_v56 }
 0x918   :  { %v2576_v57 = vpop.eup %2575 }
 0x919   :  { %v976_v58 = vadd.f32 1.0, %v2576_v57  ;;  %v2137_v57 = vld [vmem:[%s3233_s0 + $0x10] sm:$0xf] }
 0x91b   :  { %2577 = vrcp.f32 %v976_v58 }
 0x920   :  { %v711_v51 = vpop.f32.mrb[4].mxu1 }
 0x921   :  { %v756_v52 = vrot.slane %v711_v51, %v2741_v15  ;;  %v2323_v53 = vpop.f32.mrb[5].mxu1  ;;  %v777_v61 = vadd.f32 %v711_v51, %v2848_v9 }
 0x923   :  { %757 = vrot.lane.b32.xlu0 %v756_v52, %s2670_s20  ;;  %v785_v63 = vrot.slane %v777_v61, %v2741_v15  ;;  %v2127_v52 = vld [vmem:[%s3233_s0 + $0x10] sm:$0xf] }
 0x925   :  { %v2578_v59 = vpop.eup %2577 }
 0x926   :  { %v998_v27 = vsub.f32 1.0, %v2578_v59  ;;  %v1004_v29 = vmul.f32 %v2578_v59, %v2913_v24  ;;  %v2124_v24 = vld [vmem:[%s3234_s5 + $0xa] sm:$0x3] }
 0x980   :  { %v989_v60 = vpop.permute.xlu0 %988 }
 0x981   :  { %v991_v62 = vmul.f32 %v2578_v59, %v989_v60 }
 0x983   :  { %993 = vrot.lane.b32.xlu1 %v991_v62, %s2668_s28 }
 0x987   :  { %786 = vrot.lane.b32.xlu1 %v785_v63, %s2671_s4 }
 0x98b   :  { %790 = vrot.lane.b32.xlu1 %v2116_v1, %s2670_s20 }
 0x995   :  { %v758_v2 = vpop.permute.xlu0 %757 }
 0x996   :  { %v760_v3 = vadd.f32 %v2116_v1, %v758_v2  ;;  %v770_v21 = vadd.f32 %v768_v20, %v758_v2 }
 0x998   :  { %v2120_v6 = vmul.f32 -1.442695, %v760_v3  ;;  %v2121_v22 = vmul.f32 -1.442695, %v770_v21 }
 0x99a   :  { %2579 = vpow2.f32 %v2120_v6 }
 0x9a4   :  { %v2580_v10 = vpop.eup %2579 }
 0x9a5   :  { %v764_v12 = vadd.f32 1.0, %v2580_v10 }
 0x9f5   :  { %v994_v11 = vpop.permute.xlu1 %993 }
 0x9f6   :  { %v996_v13 = vadd.f32 %v2126_v54, %v994_v11 }
 0x9f8   :  { %2581 = vtanh.f32 %v996_v13 }
 0x9f9   :  { %2583 = vrcp.f32 %v764_v12  ;;  %v787_v17 = vpop.permute.xlu1 %786 }
 0x9fa   :  { %2585 = vpow2.f32 %v2121_v22 }
 0x9fd   :  { %v791_v25 = vpop.permute.xlu1 %790 }
 0x9fe   :  { %v792_v7 = vrot.slane %v791_v25, 2 }
 0xa02   :  { %v2582_v16 = vpop.eup %2581 }
 0xa03   :  { %1000 = vrot.lane.b32.xlu0 %v2582_v16, %s2670_s20  ;;  %v2584_v18 = vpop.eup %2583 }
 0xa04   :  { %v789_v19 = vmul.f32 %v2584_v18, %v787_v17  ;;  %v2586_v23 = vpop.eup %2585  ;;  %v1025_v17 = vrot.slane %v2127_v52, 2 }
 0xa05   :  { %v774_v26 = vadd.f32 1.0, %v2586_v23 }
 0xa07   :  { %795 = vrot.lane.b32.xlu0 %v789_v19, %s2671_s4  ;;  %2587 = vrcp.f32 %v774_v26 }
 0xa11   :  { %v2588_v35 = vpop.eup %2587 }
 0xa12   :  { %v800_v36 = vsub.f32 1.0, %v2588_v35  ;;  %v802_v39 = vmul.f32 %v2588_v35, %v2937_v46  ;;  %v2135_v35 = vld [vmem:[%s3234_s5 + $0x8] sm:$0x3] }
 0xa75   :  { %v1001_v28 = vpop.permute.xlu0 %1000 }
 0xa76   :  { %v1003_v30 = vmul.f32 %v1001_v28, %v998_v27 }
 0xa78   :  { %v2971_v31 = vadd.f32 %v1004_v29, %v1003_v30 }
 0xa79   :  { %v796_v32 = vpop.permute.xlu0 %795 }
 0xa7a   :  { %v798_v33 = vadd.f32 %v796_v32, %v792_v7  ;;  %v1070_v34 = vrot.slane %v2971_v31, %v2741_v15 }
 0xa7c   :  { %2589 = vtanh.f32 %v798_v33  ;;  %1071 = vrot.lane.b32.xlu1 %v1070_v34, %s2670_s20 }
 0xa86   :  { %v2590_v37 = vpop.eup %2589 }
 0xa87   :  { %v801_v38 = vmul.f32 %v2590_v37, %v800_v36 }
 0xa89   :  { %v2980_v40 = vadd.f32 %v802_v39, %v801_v38 }
 0xa8b   :  { %v821_v41 = vadd.f32 %v2124_v24, %v2980_v40  ;;  %2344 = vmatmul.mubr.msk.f32.vlgmr.msra.gmra.mrb[6].mxu1 %vm52_vm2, %v2980_v40 }
 0xa8c   :  { %2490 = vmatpush3.bf16.msra.mxu1 %v2816_v43  ;;  %2365 = vmatprep.mubr.msk.f32.mxu1 %vm2666_vm0, %v2667_v4 }
 0xa8d   :  { %2125 = vst.msk [vmem:[%s3234_s5 + $0xa] sm:$0x3] %vm40_vm1, %v821_v41  ;;  %2491 = vmatprep.subr.bf16.mxu1 %v2665_v0 }
 0xa90   :  { %2493 = vmatpush3.bf16.msra.mxu1 %v2822_v45 }
 0xa91   :  { %2500 = vmatprep.subr.bf16.mxu1 %v2665_v0 }
 0xaee   :  { %v1072_v46 = vpop.permute.xlu1 %1071 }
 0xaef   :  { %v1074_v47 = vadd.f32 %v2133_v42, %v1072_v46  ;;  %2355 = vmatmul.mubr.msk.f32.vlgmr.msra.gmra.mrb[8].mxu0 %vm52_vm2, %v1072_v46 }
 0xaf0   :  { %2496 = vmatpush3.bf16.msra.mxu0 %v2714_v5  ;;  %2376 = vmatprep.mubr.msk.f32.mxu0 %vm2666_vm0, %v2667_v4 }
 0xaf1   :  { %2134 = vst.msk [vmem:[%s3234_s5 + $0x6] sm:$0x3] %vm40_vm1, %v1074_v47  ;;  %2497 = vmatprep.subr.bf16.mxu0 %v2665_v0 }
 0xaf4   :  { %2499 = vmatpush3.bf16.msra.mxu0 %v2727_v8 }
 0xaf5   :  { %2506 = vmatprep.subr.bf16.mxu0 %v2665_v0 }
 0xb5e   :  { %v968_v44 = vpop.f32.mrb[6].mxu1 }
 0xb5f   :  { %v1013_v48 = vrot.slane %v968_v44, %v2741_v15  ;;  %v1034_v49 = vadd.f32 %v968_v44, %v2848_v9  ;;  %v2345_v50 = vpop.f32.mrb[7].mxu1 }
 0xb61   :  { %1014 = vrot.lane.b32.xlu0 %v1013_v48, %s2670_s20  ;;  %v1042_v51 = vrot.slane %v1034_v49, %v2741_v15 }
 0xb65   :  { %1043 = vrot.lane.b32.xlu0 %v1042_v51, %s2671_s4 }
 0xb69   :  { %1047 = vrot.lane.b32.xlu0 %v2127_v52, %s2670_s20 }
 0xbc2   :  { %v1150_v53 = vpop.f32.mrb[8].mxu0 }
 0xbc3   :  { %v1234_v54 = vadd.f32 %v1150_v53, %v2739_v14  ;;  %v2356_v55 = vpop.f32.mrb[9].mxu0  ;;  %v1227_v59 = vadd.f32 %v2137_v57, %v1150_v53 }
 0xbc5   :  { %v1242_v56 = vrot.slane %v1234_v54, %v2741_v15  ;;  %v2141_v61 = vmul.f32 -1.442695, %v1227_v59 }
 0xbc7   :  { %1243 = vrot.lane.b32.xlu1 %v1242_v56, %s2668_s28  ;;  %2591 = vpow2.f32 %v2141_v61 }
 0xbd1   :  { %v2592_v63 = vpop.eup %2591 }
 0xbd2   :  { %v1231_v2 = vadd.f32 1.0, %v2592_v63 }
 0xbd3   :  { %v1015_v58 = vpop.permute.xlu0 %1014 }
 0xbd4   :  { %v1017_v60 = vadd.f32 %v2127_v52, %v1015_v58  ;;  %v1027_v18 = vadd.f32 %v1025_v17, %v1015_v58 }
 0xbd6   :  { %v2131_v62 = vmul.f32 -1.442695, %v1017_v60  ;;  %v2132_v19 = vmul.f32 -1.442695, %v1027_v18 }
 0xbd7   :  { %v1044_v13 = vpop.permute.xlu0 %1043 }
 0xbd8   :  { %2593 = vpow2.f32 %v2131_v62 }
 0xbd9   :  { %2595 = vrcp.f32 %v1231_v2 }
 0xbdb   :  { %v1048_v22 = vpop.permute.xlu0 %1047 }
 0xbdc   :  { %v1049_v26 = vrot.slane %v1048_v22, 2 }
 0xbe2   :  { %v2594_v1 = vpop.eup %2593 }
 0xbe3   :  { %v1021_v3 = vadd.f32 1.0, %v2594_v1  ;;  %v2596_v6 = vpop.eup %2595 }
 0xbe4   :  { %v1253_v38 = vsub.f32 1.0, %v2596_v6  ;;  %v1259_v24 = vmul.f32 %v2596_v6, %v2971_v31  ;;  %v2138_v31 = vld [vmem:[%s3233_s0 + $0xc] sm:$0xf] }
 0xbe5   :  { %2597 = vrcp.f32 %v1021_v3  ;;  %v1280_v2 = vrot.slane %v2138_v31, 2 }
 0xbe6   :  { %2599 = vpow2.f32 %v2132_v19 }
 0xbef   :  { %v2598_v12 = vpop.eup %2597 }
 0xbf0   :  { %v1046_v16 = vmul.f32 %v2598_v12, %v1044_v13  ;;  %v2600_v20 = vpop.eup %2599 }
 0xbf1   :  { %v1031_v21 = vadd.f32 1.0, %v2600_v20 }
 0xbf3   :  { %2601 = vrcp.f32 %v1031_v21 }
 0xbfd   :  { %v2602_v29 = vpop.eup %2601 }
 0xbfe   :  { %v1057_v7 = vsub.f32 1.0, %v2602_v29  ;;  %v1059_v34 = vmul.f32 %v2602_v29, %v2980_v40 }
 0xc39   :  { %v1244_v10 = vpop.permute.xlu1 %1243 }
 0xc3a   :  { %v1246_v11 = vmul.f32 %v2596_v6, %v1244_v10 }
 0xc3c   :  { %1248 = vrot.lane.b32.xlu1 %v1246_v11, %s2668_s28 }
 0xc40   :  { %1052 = vrot.lane.b32.xlu1 %v1046_v16, %s2671_s4 }
 0xcae   :  { %v1249_v23 = vpop.permute.xlu1 %1248 }
 0xcaf   :  { %v1251_v25 = vadd.f32 %v2137_v57, %v1249_v23 }
 0xcb1   :  { %2603 = vtanh.f32 %v1251_v25  ;;  %v2146_v25 = vld [vmem:[%s3234_s5 + $0x6] sm:$0x3] }
 0xcb2   :  { %v1053_v27 = vpop.permute.xlu1 %1052 }
 0xcb3   :  { %v1055_v28 = vadd.f32 %v1053_v27, %v1049_v26  ;;  %v2148_v27 = vld [vmem:[%s3233_s0 + $0x14] sm:$0xf] }
 0xcb5   :  { %2605 = vtanh.f32 %v1055_v28 }
 0xcbb   :  { %v2604_v30 = vpop.eup %2603 }
 0xcbc   :  { %1255 = vrot.lane.b32.xlu0 %v2604_v30, %s2670_s20 }
 0xcbf   :  { %v2606_v32 = vpop.eup %2605 }
 0xcc0   :  { %v1058_v33 = vmul.f32 %v2606_v32, %v1057_v7 }
 0xcc2   :  { %v3031_v36 = vadd.f32 %v1059_v34, %v1058_v33 }
 0xcc4   :  { %v1078_v37 = vadd.f32 %v2135_v35, %v3031_v36  ;;  %2366 = vmatmul.mubr.msk.f32.vlgmr.msra.gmra.mrb[8].mxu1 %vm52_vm2, %v3031_v36 }
 0xcc5   :  { %2502 = vmatpush3.bf16.msra.mxu1 %v2816_v43  ;;  %2387 = vmatprep.mubr.msk.f32.mxu1 %vm2666_vm0, %v2667_v4 }
 0xcc6   :  { %2136 = vst.msk [vmem:[%s3234_s5 + $0x8] sm:$0x3] %vm40_vm1, %v1078_v37  ;;  %2503 = vmatprep.subr.bf16.mxu1 %v2665_v0 }
 0xcc9   :  { %2505 = vmatpush3.bf16.msra.mxu1 %v2822_v45 }
 0xcca   :  { %2512 = vmatprep.subr.bf16.mxu1 %v2665_v0 }
 0xccd   :  { %v2144_v50 = vld [vmem:[%s3234_s5 + $0x8] sm:$0x3] }
 0xd2e   :  { %v1256_v39 = vpop.permute.xlu0 %1255 }
 0xd2f   :  { %v1258_v40 = vmul.f32 %v1256_v39, %v1253_v38 }
 0xd31   :  { %v3047_v41 = vadd.f32 %v1259_v24, %v1258_v40  ;;  %v2149_v40 = vld [vmem:[%s3233_s0 + $0x8] sm:$0xf] }
 0xd33   :  { %v1324_v42 = vrot.slane %v3047_v41, %v2741_v15 }
 0xd35   :  { %1325 = vrot.lane.b32.xlu1 %v1324_v42, %s2670_s20 }
 0xd97   :  { %v1223_v46 = vpop.f32.mrb[8].mxu1 }
 0xd98   :  { %v1268_v47 = vrot.slane %v1223_v46, %v2741_v15  ;;  %v1289_v44 = vadd.f32 %v1223_v46, %v2848_v9  ;;  %v2367_v48 = vpop.f32.mrb[9].mxu1 }
 0xd9a   :  { %v1297_v49 = vrot.slane %v1289_v44, %v2741_v15  ;;  %1269 = vrot.lane.b32.xlu0 %v1268_v47, %s2670_s20 }
 0xd9c   :  { %1298 = vrot.lane.b32.xlu1 %v1297_v49, %s2671_s4 }
 0xd9e   :  { %1302 = vrot.lane.b32.xlu0 %v2138_v31, %s2670_s20 }
 0xda7   :  { %v1326_v51 = vpop.permute.xlu1 %1325 }
 0xda8   :  { %v1328_v52 = vadd.f32 %v2144_v50, %v1326_v51  ;;  %2377 = vmatmul.mubr.msk.f32.vlgmr.msra.gmra.mrb[10].mxu0 %vm52_vm2, %v1326_v51 }
 0xda9   :  { %2508 = vmatpush3.bf16.msra.mxu0 %v2714_v5  ;;  %2398 = vmatprep.mubr.msk.f32.mxu0 %vm2666_vm0, %v2667_v4 }
 0xdaa   :  { %2145 = vst.msk [vmem:[%s3234_s5 + $0x8] sm:$0x3] %vm40_vm1, %v1328_v52  ;;  %2509 = vmatprep.subr.bf16.mxu0 %v2665_v0 }
 0xdad   :  { %2511 = vmatpush3.bf16.msra.mxu0 %v2727_v8 }
 0xdae   :  { %2518 = vmatprep.subr.bf16.mxu0 %v2665_v0 }
 0xe0c   :  { %v1270_v53 = vpop.permute.xlu0 %1269 }
 0xe0d   :  { %v1272_v54 = vadd.f32 %v2138_v31, %v1270_v53  ;;  %v1282_v3 = vadd.f32 %v1280_v2, %v1270_v53 }
 0xe0e   :  { %v1299_v59 = vpop.permute.xlu1 %1298 }
 0xe0f   :  { %v2142_v55 = vmul.f32 -1.442695, %v1272_v54  ;;  %v2143_v6 = vmul.f32 -1.442695, %v1282_v3 }
 0xe10   :  { %v1303_v11 = vpop.permute.xlu0 %1302 }
 0xe11   :  { %2607 = vpow2.f32 %v2142_v55  ;;  %v1304_v13 = vrot.slane %v1303_v11, 2  ;;  %v2155_v55 = vld [vmem:[%s3234_s5 + $0xa] sm:$0x3] }
 0xe1b   :  { %v2608_v56 = vpop.eup %2607 }
 0xe1c   :  { %v1276_v57 = vadd.f32 1.0, %v2608_v56 }
 0xe1e   :  { %2609 = vrcp.f32 %v1276_v57 }
 0xe1f   :  { %2611 = vpow2.f32 %v2143_v6 }
 0xe28   :  { %v2610_v58 = vpop.eup %2609 }
 0xe29   :  { %v1301_v60 = vmul.f32 %v2610_v58, %v1299_v59  ;;  %v2612_v10 = vpop.eup %2611 }
 0xe2a   :  { %v1286_v12 = vadd.f32 1.0, %v2612_v10 }
 0xe2b   :  { %1307 = vrot.lane.b32.xlu1 %v1301_v60, %s2671_s4 }
 0xe2c   :  { %2613 = vrcp.f32 %v1286_v12 }
 0xe36   :  { %v2614_v18 = vpop.eup %2613 }
 0xe37   :  { %v1312_v19 = vsub.f32 1.0, %v2614_v18  ;;  %v1314_v22 = vmul.f32 %v2614_v18, %v3031_v36  ;;  %v2157_v18 = vld [vmem:[%s3234_s5 + $0x4] sm:$0x3] }
 0xe7b   :  { %v1403_v61 = vpop.f32.mrb[10].mxu0 }
 0xe7c   :  { %v1487_v62 = vadd.f32 %v1403_v61, %v2739_v14  ;;  %v2378_v63 = vpop.f32.mrb[11].mxu0  ;;  %v1480_v28 = vadd.f32 %v2148_v27, %v1403_v61  ;;  %v1533_v61 = vrot.slane %v2149_v40, 2 }
 0xe7e   :  { %v1495_v1 = vrot.slane %v1487_v62, %v2741_v15  ;;  %v2152_v29 = vmul.f32 -1.442695, %v1480_v28 }
 0xe80   :  { %1496 = vrot.lane.b32.xlu0 %v1495_v1, %s2668_s28 }
 0xe9d   :  { %v1308_v16 = vpop.permute.xlu1 %1307 }
 0xe9e   :  { %v1310_v17 = vadd.f32 %v1308_v16, %v1304_v13 }
 0xea0   :  { %2615 = vtanh.f32 %v1310_v17 }
 0xea1   :  { %2617 = vpow2.f32 %v2152_v29 }
 0xeaa   :  { %v2616_v20 = vpop.eup %2615 }
 0xeab   :  { %v1313_v21 = vmul.f32 %v2616_v20, %v1312_v19  ;;  %v2618_v30 = vpop.eup %2617 }
 0xeac   :  { %v1484_v7 = vadd.f32 1.0, %v2618_v30 }
 0xead   :  { %v3080_v23 = vadd.f32 %v1314_v22, %v1313_v21 }
 0xeae   :  { %2619 = vrcp.f32 %v1484_v7 }
 0xeaf   :  { %v1331_v26 = vadd.f32 %v2146_v25, %v3080_v23  ;;  %2388 = vmatmul.mubr.msk.f32.vlgmr.msra.gmra.mrb[10].mxu1 %vm52_vm2, %v3080_v23 }
 0xeb0   :  { %2514 = vmatpush3.bf16.msra.mxu1 %v2816_v43  ;;  %2409 = vmatprep.mubr.msk.f32.mxu1 %vm2666_vm0, %v2667_v4 }
 0xeb1   :  { %2147 = vst.msk [vmem:[%s3234_s5 + $0x6] sm:$0x3] %vm40_vm1, %v1331_v26  ;;  %2515 = vmatprep.subr.bf16.mxu1 %v2665_v0 }
 0xeb4   :  { %2517 = vmatpush3.bf16.msra.mxu1 %v2822_v45 }
 0xeb5   :  { %2524 = vmatprep.subr.bf16.mxu1 %v2665_v0 }
 0xeb8   :  { %v2620_v32 = vpop.eup %2619 }
 0xeb9   :  { %v1506_v42 = vsub.f32 1.0, %v2620_v32  ;;  %v1512_v47 = vmul.f32 %v2620_v32, %v3047_v41 }
 0xef2   :  { %v1497_v33 = vpop.permute.xlu0 %1496 }
 0xef3   :  { %v1499_v34 = vmul.f32 %v2620_v32, %v1497_v33 }
 0xef5   :  { %1501 = vrot.lane.b32.xlu1 %v1499_v34, %s2668_s28 }
 0xf67   :  { %v1502_v35 = vpop.permute.xlu1 %1501 }
 0xf68   :  { %v1504_v36 = vadd.f32 %v2148_v27, %v1502_v35 }
 0xf6a   :  { %2621 = vtanh.f32 %v1504_v36 }
 0xf74   :  { %v2622_v37 = vpop.eup %2621 }
 0xf75   :  { %1508 = vrot.lane.b32.xlu0 %v2622_v37, %s2670_s20  ;;  %v2160_v37 = vld [vmem:[%s3233_s0 + $0x4] sm:$0xf] }
 0xf82   :  { %v1476_v38 = vpop.f32.mrb[10].mxu1 }
 0xf83   :  { %v1521_v39 = vrot.slane %v1476_v38, %v2741_v15  ;;  %v2389_v24 = vpop.f32.mrb[11].mxu1  ;;  %v1542_v49 = vadd.f32 %v1476_v38, %v2848_v9 }
 0xf85   :  { %1522 = vrot.lane.b32.xlu0 %v1521_v39, %s2670_s20  ;;  %v1550_v50 = vrot.slane %v1542_v49, %v2741_v15 }
 0xf89   :  { %1555 = vrot.lane.b32.xlu0 %v2149_v40, %s2670_s20 }
 0xfe7   :  { %v1509_v46 = vpop.permute.xlu0 %1508 }
 0xfe8   :  { %v1511_v44 = vmul.f32 %v1509_v46, %v1506_v42 }
 0xfea   :  { %v3110_v48 = vadd.f32 %v1512_v47, %v1511_v44 }
 0xfec   :  { %v1577_v31 = vrot.slane %v3110_v48, %v2741_v15 }
 0xfee   :  { %1578 = vrot.lane.b32.xlu1 %v1577_v31, %s2670_s20 }
 0xff2   :  { %1551 = vrot.lane.b32.xlu1 %v1550_v50, %s2671_s4 }
 0xff7   :  { %v1523_v51 = vpop.permute.xlu0 %1522 }
 0xff8   :  { %v1525_v52 = vadd.f32 %v2149_v40, %v1523_v51  ;;  %v1535_v62 = vadd.f32 %v1533_v61, %v1523_v51 }
 0xffa   :  { %v2153_v53 = vmul.f32 -1.442695, %v1525_v52 }
 0xffb   :  { %v1556_v1 = vpop.permute.xlu0 %1555 }
 0xffc   :  { %2623 = vpow2.f32 %v2153_v53  ;;  %v1557_v3 = vrot.slane %v1556_v1, 2 }
0x1006   :  { %v2624_v54 = vpop.eup %2623 }
0x1007   :  { %v1529_v41 = vadd.f32 1.0, %v2624_v54  ;;  %v1786_v54 = vrot.slane %v2160_v37, 2 }
0x1009   :  { %2625 = vrcp.f32 %v1529_v41 }
0x1013   :  { %v2626_v58 = vpop.eup %2625 }
0x1060   :  { %v1579_v56 = vpop.permute.xlu1 %1578 }
0x1061   :  { %v1581_v57 = vadd.f32 %v2155_v55, %v1579_v56  ;;  %2399 = vmatmul.mubr.msk.f32.vlgmr.msra.gmra.mrb[12].mxu0 %vm52_vm2, %v1579_v56 }
0x1062   :  { %2520 = vmatpush3.bf16.msra.mxu0 %v2714_v5  ;;  %2420 = vmatprep.mubr.msk.f32.mxu0 %vm2666_vm0, %v2667_v4  ;;  %v2154_v5 = vmul.f32 -1.442695, %v1535_v62 }
0x1063   :  { %2156 = vst.msk [vmem:[%s3234_s5 + $0xa] sm:$0x3] %vm40_vm1, %v1581_v57  ;;  %2521 = vmatprep.subr.bf16.mxu0 %v2665_v0  ;;  %v2166_v57 = vld [vmem:[%s3234_s5 + $0xc] sm:$0x3] }
0x1064   :  { %v1552_v59 = vpop.permute.xlu1 %1551  ;;  %2627 = vpow2.f32 %v2154_v5 }
0x1065   :  { %v1554_v60 = vmul.f32 %v2626_v58, %v1552_v59 }
0x1066   :  { %2523 = vmatpush3.bf16.msra.mxu0 %v2727_v8 }
0x1067   :  { %1560 = vrot.lane.b32.xlu1 %v1554_v60, %s2671_s4 }
0x106e   :  { %v2628_v63 = vpop.eup %2627 }
0x106f   :  { %v1539_v2 = vadd.f32 1.0, %v2628_v63 }
0x1071   :  { %2629 = vrcp.f32 %v1539_v2 }
0x107b   :  { %v2630_v11 = vpop.eup %2629 }
0x107c   :  { %v1565_v12 = vsub.f32 1.0, %v2630_v11  ;;  %v1567_v8 = vmul.f32 %v2630_v11, %v3080_v23  ;;  %v2168_v11 = vld [vmem:[%s3234_s5 + $0x2] sm:$0x3] }
0x10d9   :  { %v1561_v6 = vpop.permute.xlu1 %1560 }
0x10da   :  { %v1563_v10 = vadd.f32 %v1561_v6, %v1557_v3 }
0x10dc   :  { %2631 = vtanh.f32 %v1563_v10 }
0x10e6   :  { %v2632_v13 = vpop.eup %2631 }
0x10e7   :  { %v1566_v16 = vmul.f32 %v2632_v13, %v1565_v12 }
0x10e9   :  { %v3133_v17 = vadd.f32 %v1567_v8, %v1566_v16 }
0x10eb   :  { %v1584_v19 = vadd.f32 %v2157_v18, %v3133_v17  ;;  %2410 = vmatmul.mubr.msk.f32.vlgmr.msra.gmra.mrb[12].mxu1 %vm52_vm2, %v3133_v17 }
0x10ec   :  { %2526 = vmatpush3.bf16.msra.mxu1 %v2816_v43  ;;  %2431 = vmatprep.mubr.msk.f32.mxu1 %vm2666_vm0, %v2667_v4  ;;  %v2159_v4 = vld [vmem:[%s3233_s0 + $0x18] sm:$0xf] }
0x10ed   :  { %2158 = vst.msk [vmem:[%s3234_s5 + $0x4] sm:$0x3] %vm40_vm1, %v1584_v19  ;;  %2527 = vmatprep.subr.bf16.mxu1 %v2665_v0 }
0x10f0   :  { %2529 = vmatpush3.bf16.msra.mxu1 %v2822_v45 }
0x1134   :  { %v1656_v20 = vpop.f32.mrb[12].mxu0 }
0x1135   :  { %v1740_v21 = vadd.f32 %v1656_v20, %v2739_v14  ;;  %v2400_v22 = vpop.f32.mrb[13].mxu0  ;;  %v1733_v43 = vadd.f32 %v2159_v4, %v1656_v20 }
0x1137   :  { %v1748_v23 = vrot.slane %v1740_v21, %v2741_v15  ;;  %v2163_v25 = vmul.f32 -1.442695, %v1733_v43  ;;  %v2170_v21 = vld [vmem:[%s3233_s0 + $0x1c] sm:$0xf] }
0x1139   :  { %1749 = vrot.lane.b32.xlu0 %v1748_v23, %s2668_s28  ;;  %2633 = vpow2.f32 %v2163_v25 }
0x1143   :  { %v2634_v26 = vpop.eup %2633 }
0x1144   :  { %v1737_v27 = vadd.f32 1.0, %v2634_v26 }
0x1146   :  { %2635 = vrcp.f32 %v1737_v27 }
0x1150   :  { %v2636_v0 = vpop.eup %2635 }
0x1151   :  { %v1759_v49 = vsub.f32 1.0, %v2636_v0  ;;  %v1765_v50 = vmul.f32 %v2636_v0, %v3110_v48 }
0x11ab   :  { %v1750_v45 = vpop.permute.xlu0 %1749 }
0x11ac   :  { %v1752_v28 = vmul.f32 %v2636_v0, %v1750_v45  ;;  %v1840_v45 = vld [vmem:[%s3233_s0] sm:$0xf] }
0x11ae   :  { %1754 = vrot.lane.b32.xlu1 %v1752_v28, %s2668_s28 }
0x11be   :  { %v1729_v29 = vpop.f32.mrb[12].mxu1 }
0x11bf   :  { %v1774_v30 = vrot.slane %v1729_v29, %v2741_v15  ;;  %v1795_v7 = vadd.f32 %v1729_v29, %v2848_v9  ;;  %v2411_v32 = vpop.f32.mrb[13].mxu1 }
0x11c1   :  { %1775 = vrot.lane.b32.xlu1 %v1774_v30, %s2670_s20  ;;  %v1803_v33 = vrot.slane %v1795_v7, %v2741_v15 }
0x11c5   :  { %1804 = vrot.lane.b32.xlu1 %v1803_v33, %s2671_s4 }
0x1220   :  { %v1755_v34 = vpop.permute.xlu1 %1754 }
0x1221   :  { %v1757_v35 = vadd.f32 %v2159_v4, %v1755_v34 }
0x1223   :  { %2637 = vtanh.f32 %v1757_v35 }
0x122d   :  { %v2638_v36 = vpop.eup %2637 }
0x122e   :  { %1761 = vrot.lane.b32.xlu0 %v2638_v36, %s2670_s20 }
0x1233   :  { %v1776_v38 = vpop.permute.xlu1 %1775 }
0x1234   :  { %v1778_v39 = vadd.f32 %v2160_v37, %v1776_v38  ;;  %v1788_v41 = vadd.f32 %v1786_v54, %v1776_v38  ;;  %v2039_v38 = vrot.slane %v1840_v45, 2 }
0x1236   :  { %v2164_v24 = vmul.f32 -1.442695, %v1778_v39  ;;  %v2165_v55 = vmul.f32 -1.442695, %v1788_v41 }
0x1237   :  { %v1805_v47 = vpop.permute.xlu1 %1804 }
0x1238   :  { %2639 = vpow2.f32 %v2164_v24 }
0x1242   :  { %v2640_v40 = vpop.eup %2639 }
0x1243   :  { %v1782_v42 = vadd.f32 1.0, %v2640_v40 }
0x1245   :  { %2641 = vrcp.f32 %v1782_v42 }
0x1246   :  { %2643 = vpow2.f32 %v2165_v55 }
0x124f   :  { %v2642_v46 = vpop.eup %2641 }
0x1250   :  { %v1807_v44 = vmul.f32 %v2642_v46, %v1805_v47  ;;  %v2644_v56 = vpop.eup %2643 }
0x1251   :  { %v1792_v58 = vadd.f32 1.0, %v2644_v56 }
0x1252   :  { %1813 = vrot.lane.b32.xlu1 %v1807_v44, %s2671_s4 }
0x1253   :  { %2645 = vrcp.f32 %v1792_v58 }
0x125d   :  { %v2646_v63 = vpop.eup %2645 }
0x125e   :  { %v1818_v1 = vsub.f32 1.0, %v2646_v63  ;;  %v1820_v6 = vmul.f32 %v2646_v63, %v3133_v17 }
0x12a0   :  { %v1762_v31 = vpop.permute.xlu0 %1761 }
0x12a1   :  { %v1764_v51 = vmul.f32 %v1762_v31, %v1759_v49 }
0x12a3   :  { %v3168_v52 = vadd.f32 %v1765_v50, %v1764_v51 }
0x12a5   :  { %v1830_v53 = vrot.slane %v3168_v52, %v2741_v15 }
0x12a7   :  { %1831 = vrot.lane.b32.xlu0 %v1830_v53, %s2670_s20 }
0x12ab   :  { %1808 = vrot.lane.b32.xlu0 %v2160_v37, %s2670_s20 }
0x12c4   :  { %v1814_v62 = vpop.permute.xlu1 %1813 }
0x1319   :  { %v1832_v48 = vpop.permute.xlu0 %1831 }
0x131a   :  { %v1834_v59 = vadd.f32 %v2166_v57, %v1832_v48  ;;  %2421 = vmatmul.mubr.msk.f32.vlgmr.msra.gmra.mrb[14].mxu0 %vm52_vm2, %v1832_v48 }
0x131c   :  { %2167 = vst.msk [vmem:[%s3234_s5 + $0xc] sm:$0x3] %vm40_vm1, %v1834_v59 }
0x131d   :  { %v1809_v60 = vpop.permute.xlu0 %1808 }
0x131e   :  { %v1810_v61 = vrot.slane %v1809_v60, 2 }
0x1320   :  { %v1816_v5 = vadd.f32 %v1814_v62, %v1810_v61 }
0x1322   :  { %2647 = vtanh.f32 %v1816_v5 }
0x132c   :  { %v2648_v2 = vpop.eup %2647 }
0x132d   :  { %v1819_v3 = vmul.f32 %v2648_v2, %v1818_v1 }
0x132f   :  { %v3183_v10 = vadd.f32 %v1820_v6, %v1819_v3 }
0x1331   :  { %v1837_v12 = vadd.f32 %v2168_v11, %v3183_v10  ;;  %2432 = vmatmul.mubr.msk.f32.vlgmr.msra.gmra.mrb[14].mxu1 %vm52_vm2, %v3183_v10 }
0x1333   :  { %2169 = vst.msk [vmem:[%s3234_s5 + $0x2] sm:$0x3] %vm40_vm1, %v1837_v12 }
0x13ed   :  { %v1909_v13 = vpop.f32.mrb[14].mxu0 }
0x13ee   :  { %v1993_v16 = vadd.f32 %v1909_v13, %v2739_v14  ;;  %v2422_v8 = vpop.f32.mrb[15].mxu0  ;;  %v1986_v22 = vadd.f32 %v2170_v21, %v1909_v13 }
0x13f0   :  { %v2001_v17 = vrot.slane %v1993_v16, %v2741_v15  ;;  %v2173_v23 = vmul.f32 -1.442695, %v1986_v22 }
0x13f2   :  { %2002 = vrot.lane.b32.xlu0 %v2001_v17, %s2668_s28  ;;  %2649 = vpow2.f32 %v2173_v23 }
0x13fc   :  { %v2650_v4 = vpop.eup %2649 }
0x13fd   :  { %v1990_v14 = vadd.f32 1.0, %v2650_v4 }
0x13ff   :  { %2651 = vrcp.f32 %v1990_v14 }
0x1404   :  { %v1982_v18 = vpop.f32.mrb[14].mxu1 }
0x1405   :  { %v2027_v19 = vrot.slane %v1982_v18, %v2741_v15  ;;  %v2433_v20 = vpop.f32.mrb[15].mxu1  ;;  %v2048_v26 = vadd.f32 %v1982_v18, %v2848_v9 }
0x1407   :  { %2028 = vrot.lane.b32.xlu0 %v2027_v19, %s2670_s20  ;;  %v2056_v0 = vrot.slane %v2048_v26, %v2741_v15 }
0x1409   :  { %v2652_v43 = vpop.eup %2651 }
0x140a   :  { %v2012_v47 = vsub.f32 1.0, %v2652_v43  ;;  %v2018_v49 = vmul.f32 %v2652_v43, %v3168_v52  ;;  %v2089_v52 = vld [vmem:[%s3234_s5] sm:$0x3] }
0x1464   :  { %v2003_v25 = vpop.permute.xlu0 %2002 }
0x1465   :  { %v2005_v27 = vmul.f32 %v2652_v43, %v2003_v25 }
0x1467   :  { %2007 = vrot.lane.b32.xlu1 %v2005_v27, %s2668_s28 }
0x146b   :  { %2057 = vrot.lane.b32.xlu1 %v2056_v0, %s2671_s4 }
0x146f   :  { %2061 = vrot.lane.b32.xlu1 %v1840_v45, %s2670_s20 }
0x1479   :  { %v2029_v28 = vpop.permute.xlu0 %2028 }
0x147a   :  { %v2031_v29 = vadd.f32 %v2029_v28, %v1840_v45  ;;  %v2041_v39 = vadd.f32 %v2039_v38, %v2029_v28 }
0x147c   :  { %v2174_v30 = vmul.f32 -1.442695, %v2031_v29  ;;  %v2175_v24 = vmul.f32 -1.442695, %v2041_v39 }
0x147e   :  { %2653 = vpow2.f32 %v2174_v30 }
0x1488   :  { %v2654_v7 = vpop.eup %2653 }
0x1489   :  { %v2035_v9 = vadd.f32 1.0, %v2654_v7 }
0x14d9   :  { %v2008_v32 = vpop.permute.xlu1 %2007 }
0x14da   :  { %v2010_v33 = vadd.f32 %v2170_v21, %v2008_v32 }
0x14dc   :  { %2655 = vtanh.f32 %v2010_v33 }
0x14dd   :  { %2657 = vrcp.f32 %v2035_v9  ;;  %v2058_v35 = vpop.permute.xlu1 %2057 }
0x14de   :  { %2659 = vpow2.f32 %v2175_v24 }
0x14e1   :  { %v2062_v42 = vpop.permute.xlu1 %2061 }
0x14e2   :  { %v2063_v50 = vrot.slane %v2062_v42, 2 }
0x14e6   :  { %v2656_v34 = vpop.eup %2655 }
0x14e7   :  { %2014 = vrot.lane.b32.xlu0 %v2656_v34, %s2670_s20  ;;  %v2658_v36 = vpop.eup %2657 }
0x14e8   :  { %v2060_v37 = vmul.f32 %v2658_v36, %v2058_v35  ;;  %v2660_v40 = vpop.eup %2659 }
0x14e9   :  { %v2045_v46 = vadd.f32 1.0, %v2660_v40 }
0x14eb   :  { %2066 = vrot.lane.b32.xlu0 %v2060_v37, %s2671_s4  ;;  %2661 = vrcp.f32 %v2045_v46 }
0x14f5   :  { %v2662_v55 = vpop.eup %2661 }
0x14f6   :  { %v2071_v56 = vsub.f32 1.0, %v2662_v55  ;;  %v2073_v48 = vmul.f32 %v2662_v55, %v3183_v10 }
0x1559   :  { %v2015_v44 = vpop.permute.xlu0 %2014 }
0x155a   :  { %v2017_v31 = vmul.f32 %v2015_v44, %v2012_v47 }
0x155c   :  { %v2019_v51 = vadd.f32 %v2018_v49, %v2017_v31 }
0x155d   :  { %v2067_v53 = vpop.permute.xlu0 %2066 }
0x155e   :  { %v2069_v54 = vadd.f32 %v2067_v53, %v2063_v50  ;;  %v2083_v41 = vrot.slane %v2019_v51, %v2741_v15  ;;  %v2176_v15 = vld [vmem:[%s3234_s5 + $0xe] sm:$0x3] }
0x1560   :  { %2663 = vtanh.f32 %v2069_v54  ;;  %2084 = vrot.lane.b32.xlu1 %v2083_v41, %s2670_s20 }
0x156a   :  { %v2664_v57 = vpop.eup %2663 }
0x156b   :  { %v2072_v58 = vmul.f32 %v2664_v57, %v2071_v56 }
0x156d   :  { %v2074_v59 = vadd.f32 %v2073_v48, %v2072_v58 }
0x156f   :  { %v2090_v60 = vadd.f32 %v2089_v52, %v2074_v59 }
0x1571   :  { %2091 = vst.msk [vmem:[%s3234_s5] sm:$0x3] %vm40_vm1, %v2090_v60 }
0x15d2   :  { %v2085_v61 = vpop.permute.xlu1 %2084 }
0x15d3   :  { %v2087_v62 = vadd.f32 %v2176_v15, %v2085_v61 }
0x15d5   :  { %2177 = vst.msk [vmem:[%s3234_s5 + $0xe] sm:$0x3] %vm40_vm1, %v2087_v62 }

</bundles_post_ra>
